<compile_context>
chip_gen: v7x
topology: tpu7x:2x2x1
jax: 0.10.0
libtpu: 0.0.40
codegen_flags: <defaults>
</compile_context>

<pallas_src>
import functools
import math

import jax
import jax.numpy as jnp
from jax import lax
from jax.experimental import pallas as pl
from jax.experimental.pallas import tpu as pltpu  # noqa: F401  (used by the large-N tiled variant)


# ----------------------------------------------------------------------------
# In-kernel helpers (operate on loaded values, not Refs)
# ----------------------------------------------------------------------------
def _recip(z):
    """1/z via the EUP approximate reciprocal + one Newton step (f32-accurate)."""
    r = pl.reciprocal(z, approx=True)
    return r * (2.0 - z * r)


def _batchnorm(x, gamma, beta, eps):
    """Training-mode BatchNorm1d (biased batch stats), matching PyTorch."""
    mean = jnp.mean(x, axis=0, keepdims=True)
    centered = x - mean
    var = jnp.mean(centered * centered, axis=0, keepdims=True)
    return centered * lax.rsqrt(var + eps) * gamma + beta


def _graph_attention(q, k, v, mask3, num_heads, d_head, compute_dtype):
    """DGL-style exp-clamped graph attention, all heads batched.

    q, k, v : (N, H*d) f32 -- the 1/sqrt(d) scale is already folded into q.
    mask3   : (1, N, N) bool with mask[0, dst, src] = edge exists.
    Returns (N, H*d) f32 with heads concatenated along lanes (PyTorch .view order).
    """
    def split(x):  # (N, H*d) -> (H, N, d); trace-time unrolled lane slices
        return jnp.stack(
            [x[:, h * d_head:(h + 1) * d_head] for h in range(num_heads)], axis=0)

    qh = split(q).astype(compute_dtype)
    kh = split(k).astype(compute_dtype)
    vh = split(v).astype(compute_dtype)

    # score[h, dst, src] = Q_h[dst] . K_h[src]   (one batched, transpose-free matmul)
    s = jnp.einsum("hnd,hmd->hnm", qh, kh, preferred_element_type=jnp.float32)
    s = jnp.exp(jnp.clip(s, -5.0, 5.0))
    s = jnp.where(mask3, s, 0.0)                    # only real edges contribute

    wv = jnp.einsum("hnm,hmd->hnd", s.astype(compute_dtype), vh,
                    preferred_element_type=jnp.float32)
    z = jnp.sum(s, axis=-1, keepdims=True)          # (H, N, 1)
    # Guard isolated dst nodes (documented self-loop precondition in the demo;
    # PyTorch/DGL would produce NaN/Inf from 0/0 here).
    z = jnp.maximum(z, 1e-30)
    out = wv * _recip(z)                            # one reciprocal for all heads

    return jnp.concatenate([out[h] for h in range(num_heads)], axis=-1)


# ----------------------------------------------------------------------------
# Fully fused layer kernel (both branches, attention + FFN + BatchNorms)
# ----------------------------------------------------------------------------
def _layer_kernel(adj_ref, h_ref, sv_ref,
                  nwx_ref, nwy_ref, swx_ref, swy_ref, gate_b_ref,
                  ow_ref, ob_ref, f1w_ref, f1b_ref, f2w_ref, f2b_ref,
                  ohw_ref, ohb_ref, f1hw_ref, f1hb_ref, f2hw_ref, f2hb_ref,
                  bn_node_ref, bn_state_ref,
                  h_out_ref, sv_out_ref,
                  *, num_heads, d_head, eps, compute_dtype):
    D = num_heads * d_head
    cd = compute_dtype

    h = h_ref[...]                                   # (N, D)  == h_in1
    sv = sv_ref[...]                                 # (N, D)  == sv_in1
    mask3 = (adj_ref[...] != 0)[None]                # (1, N, N) bool edge mask
    hc = h.astype(cd)
    svc = sv.astype(cd)

    def mm(a, w_ref, b_ref=None):
        out = jnp.dot(a.astype(cd), w_ref[...].astype(cd),
                      preferred_element_type=jnp.float32)
        return out if b_ref is None else out + b_ref[...]

    # ---------------- node branch ----------------
    # nwx : (D, 4D) = [Wq_self*s | Wq_cross*s | Wk_self | Wv_self]
    # nwy : (D, 2D) = [Wk_cross | Wv_cross]
    xw = mm(hc, nwx_ref)                             # (N, 4D)
    yw = mm(svc, nwy_ref)                            # (N, 2D)
    a_self = _graph_attention(xw[:, :D], xw[:, 2 * D:3 * D], xw[:, 3 * D:],
                              mask3, num_heads, d_head, cd)
    a_cross = _graph_attention(xw[:, D:2 * D], yw[:, :D], yw[:, D:],
                               mask3, num_heads, d_head, cd)
    proj = mm(jnp.concatenate([a_self, a_cross], axis=-1), ow_ref, ob_ref)

    bnn = bn_node_ref[...]                           # (4, D): g1,b1,g2,b2
    h2 = _batchnorm(h + proj, bnn[0:1], bnn[1:2], eps)
    f = jnp.maximum(mm(h2, f1w_ref, f1b_ref), 0.0)
    f = mm(f, f2w_ref, f2b_ref)
    h_out_ref[...] = _batchnorm(h2 + f, bnn[2:3], bnn[3:4], eps)

    # ---------------- state branch ----------------
    # swx : (D, 4D) = [Wq_self_h*s | Wq_cross_v*s | Wk_self_h | Wv_self_h]
    # swy : (D, 4D) = [Wk_cross_v | Wv_cross_v | Wg1 | Wg2]   (gates ride the matmul)
    xw2 = mm(svc, swx_ref)                           # (N, 4D)
    yw2 = mm(hc, swy_ref)                            # (N, 4D)
    a_self_h = _graph_attention(xw2[:, :D], xw2[:, 2 * D:3 * D], xw2[:, 3 * D:],
                                mask3, num_heads, d_head, cd)
    a_cross_h = _graph_attention(xw2[:, D:2 * D], yw2[:, :D], yw2[:, D:2 * D],
                                 mask3, num_heads, d_head, cd)
    svp = mm(jnp.concatenate([a_self_h, a_cross_h], axis=-1), ohw_ref, ohb_ref)

    gates = jax.nn.sigmoid(yw2[:, 2 * D:] + gate_b_ref[...])    # (N, 2D)
    g1, g2 = gates[:, :D], gates[:, D:]

    bns = bn_state_ref[...]                          # (4, D)
    sv1 = _batchnorm((1.0 - g1) * sv + g1 * svp, bns[0:1], bns[1:2], eps)
    fh = jnp.maximum(mm(sv1, f1hw_ref, f1hb_ref), 0.0)
    fh = mm(fh, f2hw_ref, f2hb_ref)
    sv_out_ref[...] = _batchnorm((1.0 - g2) * sv1 + g2 * fh, bns[2:3], bns[3:4], eps)


# ----------------------------------------------------------------------------
# pallas_call wrapper: the whole layer is ONE fused kernel
# ----------------------------------------------------------------------------
def rec_graph_transformer_layer(params, adj, h, state_vectors, *, num_heads,
                                compute_dtype=jnp.float32, eps=1e-5):
    N, D = h.shape
    d_head = D // num_heads
    adj_mask = adj if adj.dtype == jnp.int8 else (adj != 0).astype(jnp.int8)

    kernel = functools.partial(_layer_kernel, num_heads=num_heads, d_head=d_head,
                               eps=eps, compute_dtype=compute_dtype)
    out_shape = (jax.ShapeDtypeStruct((N, D), jnp.float32),
                 jax.ShapeDtypeStruct((N, D), jnp.float32))
    return pl.pallas_call(kernel, out_shape=out_shape)(
        adj_mask, h, state_vectors,
        params["node_Wx"], params["node_Wy"],
        params["state_Wx"], params["state_Wy"], params["gate_b"],
        params["O_w"], params["O_b"],
        params["ffn1_w"], params["ffn1_b"], params["ffn2_w"], params["ffn2_b"],
        params["Oh_w"], params["Oh_b"],
        params["ffn1h_w"], params["ffn1h_b"], params["ffn2h_w"], params["ffn2h_b"],
        params["bn_node"], params["bn_state"])


# ----------------------------------------------------------------------------
# Deterministic parameter init (shapes per the PyTorch __init__) + weight packing
# ----------------------------------------------------------------------------
def init_params(key, in_dim, out_dim):
    keys = iter(jax.random.split(key, 40))

    def lin_w(din, dout):
        s = 1.0 / math.sqrt(din)
        return jax.random.uniform(next(keys), (din, dout), jnp.float32, -s, s)

    def lin_b(din, dout):
        s = 1.0 / math.sqrt(din)
        return jax.random.uniform(next(keys), (dout,), jnp.float32, -s, s)

    def attn():  # Q/K/V with use_bias=False; out = (out_dim // H) * H = out_dim
        return dict(Wq=lin_w(in_dim, out_dim),
                    Wk=lin_w(in_dim, out_dim),
                    Wv=lin_w(in_dim, out_dim))

    return dict(
        self_v=attn(),
        cross_v=attn(),
        self_h=attn(),
        cross_h=attn(),  # created in __init__ but unused in forward (kept for parity)
        O_w=lin_w(2 * out_dim, out_dim), O_b=lin_b(2 * out_dim, out_dim),
        ffn1_w=lin_w(out_dim, 2 * out_dim), ffn1_b=lin_b(out_dim, 2 * out_dim),
        ffn2_w=lin_w(2 * out_dim, out_dim), ffn2_b=lin_b(2 * out_dim, out_dim),
        Oh_w=lin_w(2 * out_dim, out_dim), Oh_b=lin_b(2 * out_dim, out_dim),
        ffn1h_w=lin_w(out_dim, 2 * out_dim), ffn1h_b=lin_b(out_dim, 2 * out_dim),
        ffn2h_w=lin_w(2 * out_dim, out_dim), ffn2h_b=lin_b(2 * out_dim, out_dim),
        gate1_w=lin_w(in_dim, out_dim), gate1_b=lin_b(in_dim, out_dim),
        gate2_w=lin_w(in_dim, out_dim), gate2_b=lin_b(in_dim, out_dim),
        bn1_g=jnp.ones((out_dim,), jnp.float32), bn1_b=jnp.zeros((out_dim,), jnp.float32),
        bn2_g=jnp.ones((out_dim,), jnp.float32), bn2_b=jnp.zeros((out_dim,), jnp.float32),
        bn1h_g=jnp.ones((out_dim,), jnp.float32), bn1h_b=jnp.zeros((out_dim,), jnp.float32),
        bn2h_g=jnp.ones((out_dim,), jnp.float32), bn2h_b=jnp.zeros((out_dim,), jnp.float32),
    )


def pack_params(p, num_heads):
    """Pack Q/K/V (+gate) weights so the fused kernel needs only 4 input matmuls.

    The 1/sqrt(d_head) attention scale is folded into the Q columns here.
    """
    out_dim = p["O_w"].shape[1]
    inv_scale = jnp.float32(1.0 / math.sqrt(out_dim // num_heads))
    return dict(
        node_Wx=jnp.concatenate([p["self_v"]["Wq"] * inv_scale,
                                 p["cross_v"]["Wq"] * inv_scale,
                                 p["self_v"]["Wk"], p["self_v"]["Wv"]], axis=1),
        node_Wy=jnp.concatenate([p["cross_v"]["Wk"], p["cross_v"]["Wv"]], axis=1),
        state_Wx=jnp.concatenate([p["self_h"]["Wq"] * inv_scale,
                                  p["cross_v"]["Wq"] * inv_scale,   # cross_attention_v reused
                                  p["self_h"]["Wk"], p["self_h"]["Wv"]], axis=1),
        state_Wy=jnp.concatenate([p["cross_v"]["Wk"], p["cross_v"]["Wv"],
                                  p["gate1_w"], p["gate2_w"]], axis=1),
        gate_b=jnp.concatenate([p["gate1_b"], p["gate2_b"]])[None, :],
        O_w=p["O_w"], O_b=p["O_b"][None, :],
        ffn1_w=p["ffn1_w"], ffn1_b=p["ffn1_b"][None, :],
        ffn2_w=p["ffn2_w"], ffn2_b=p["ffn2_b"][None, :],
        Oh_w=p["Oh_w"], Oh_b=p["Oh_b"][None, :],
        ffn1h_w=p["ffn1h_w"], ffn1h_b=p["ffn1h_b"][None, :],
        ffn2h_w=p["ffn2h_w"], ffn2h_b=p["ffn2h_b"][None, :],
        bn_node=jnp.stack([p["bn1_g"], p["bn1_b"], p["bn2_g"], p["bn2_b"]], axis=0),
        bn_state=jnp.stack([p["bn1h_g"], p["bn1h_b"], p["bn2h_g"], p["bn2h_b"]], axis=0),
    )


# ----------------------------------------------------------------------------
# Pure-JAX reference (mirrors the PyTorch forward) for in-script verification
# ----------------------------------------------------------------------------
def _reference_forward(params, adj_f32, h, sv, *, num_heads):
    D = h.shape[-1]
    d_head = D // num_heads

    def mha(p, q_in, kv_in):
        Q, K, V = q_in @ p["Wq"], kv_in @ p["Wk"], kv_in @ p["Wv"]
        split = lambda x: x.reshape(-1, num_heads, d_head).transpose(1, 0, 2)
        Qh, Kh, Vh = split(Q), split(K), split(V)
        s = jnp.einsum("hnd,hmd->hnm", Qh, Kh) / math.sqrt(d_head)
        s = jnp.exp(jnp.clip(s, -5.0, 5.0)) * adj_f32[None]
        wv = jnp.einsum("hnm,hmd->hnd", s, Vh)
        z = s.sum(-1, keepdims=True)
        return (wv / z).transpose(1, 0, 2).reshape(-1, D)

    def bn(x, g, b):
        m = x.mean(0, keepdims=True)
        v = ((x - m) ** 2).mean(0, keepdims=True)
        return (x - m) / jnp.sqrt(v + 1e-5) * g + b

    h_in1 = h
    h2 = jnp.concatenate([mha(params["self_v"], h, h),
                          mha(params["cross_v"], h, sv)], -1) @ params["O_w"] + params["O_b"]
    h2 = bn(h_in1 + h2, params["bn1_g"], params["bn1_b"])
    f = jnp.maximum(h2 @ params["ffn1_w"] + params["ffn1_b"], 0.0) @ params["ffn2_w"] + params["ffn2_b"]
    h3 = bn(h2 + f, params["bn2_g"], params["bn2_b"])

    svp = jnp.concatenate([mha(params["self_h"], sv, sv),
                           mha(params["cross_v"], sv, h_in1)], -1) @ params["Oh_w"] + params["Oh_b"]
    g1 = jax.nn.sigmoid(h_in1 @ params["gate1_w"] + params["gate1_b"])
    sv1 = bn((1 - g1) * sv + g1 * svp, params["bn1h_g"], params["bn1h_b"])
    fh = jnp.maximum(sv1 @ params["ffn1h_w"] + params["ffn1h_b"], 0.0) @ params["ffn2h_w"] + params["ffn2h_b"]
    g2 = jax.nn.sigmoid(h_in1 @ params["gate2_w"] + params["gate2_b"])
    sv2 = bn((1 - g2) * sv1 + g2 * fh, params["bn2h_g"], params["bn2h_b"])
    return h3, sv2


# ----------------------------------------------------------------------------
if __name__ == "__main__":
    # Full f32 matmul precision so the kernel and the pure-JAX reference agree tightly.
    jax.config.update("jax_default_matmul_precision", "highest")

    N, in_dim, out_dim, num_heads = 8, 32, 32, 4   # residual requires in_dim == out_dim

    key = jax.random.PRNGKey(0)
    kp, kh, ks, ka = jax.random.split(key, 4)

    raw_params = init_params(kp, in_dim, out_dim)
    params = pack_params(raw_params, num_heads)
    h = jax.random.normal(kh, (N, in_dim), jnp.float32)
    state_vectors = jax.random.normal(ks, (N, in_dim), jnp.float32)

    # Dense adjacency adj[dst, src]; add self-loops so every node has z > 0.
    adj_f32 = (jax.random.uniform(ka, (N, N)) < 0.6).astype(jnp.float32)
    adj_f32 = jnp.maximum(adj_f32, jnp.eye(N, dtype=jnp.float32))
    adj_i8 = adj_f32.astype(jnp.int8)              # compact edge mask for the kernel

    # f32 path (verification).
    fwd = jax.jit(functools.partial(rec_graph_transformer_layer, num_heads=num_heads))
    h_out, sv_out = fwd(params, adj_i8, h, state_vectors)
    jax.block_until_ready((h_out, sv_out))

    h_ref, sv_ref = _reference_forward(raw_params, adj_f32, h, state_vectors,
                                       num_heads=num_heads)

    assert h_out.shape == (N, out_dim) and sv_out.shape == (N, out_dim)
    assert bool(jnp.all(jnp.isfinite(h_out))) and bool(jnp.all(jnp.isfinite(sv_out)))
    assert bool(jnp.allclose(h_out, h_ref, rtol=2e-3, atol=2e-3)), "node branch mismatch"
    assert bool(jnp.allclose(sv_out, sv_ref, rtol=2e-3, atol=2e-3)), "state branch mismatch"

    # bf16-operand path (v6e/v7x deployment mode; f32 accumulation kept).
    fwd_bf16 = jax.jit(functools.partial(rec_graph_transformer_layer,
                                         num_heads=num_heads,
                                         compute_dtype=jnp.bfloat16))
    h_b, sv_b = fwd_bf16(params, adj_i8, h, state_vectors)
    jax.block_until_ready((h_b, sv_b))
    assert bool(jnp.all(jnp.isfinite(h_b))) and bool(jnp.all(jnp.isfinite(sv_b)))

    print("KERNEL_OK")
</pallas_src>

<mosaic_0001>
module attributes {stable_mosaic.version = 11 : i64} {
  func.func @_layer_kernel(%arg0: memref<8x8xi8, #tpu.memory_space<vmem>>, %arg1: memref<8x32xf32, #tpu.memory_space<vmem>>, %arg2: memref<8x32xf32, #tpu.memory_space<vmem>>, %arg3: memref<32x128xf32, #tpu.memory_space<vmem>>, %arg4: memref<32x64xf32, #tpu.memory_space<vmem>>, %arg5: memref<32x128xf32, #tpu.memory_space<vmem>>, %arg6: memref<32x128xf32, #tpu.memory_space<vmem>>, %arg7: memref<1x64xf32, #tpu.memory_space<vmem>>, %arg8: memref<64x32xf32, #tpu.memory_space<vmem>>, %arg9: memref<1x32xf32, #tpu.memory_space<vmem>>, %arg10: memref<32x64xf32, #tpu.memory_space<vmem>>, %arg11: memref<1x64xf32, #tpu.memory_space<vmem>>, %arg12: memref<64x32xf32, #tpu.memory_space<vmem>>, %arg13: memref<1x32xf32, #tpu.memory_space<vmem>>, %arg14: memref<64x32xf32, #tpu.memory_space<vmem>>, %arg15: memref<1x32xf32, #tpu.memory_space<vmem>>, %arg16: memref<32x64xf32, #tpu.memory_space<vmem>>, %arg17: memref<1x64xf32, #tpu.memory_space<vmem>>, %arg18: memref<64x32xf32, #tpu.memory_space<vmem>>, %arg19: memref<1x32xf32, #tpu.memory_space<vmem>>, %arg20: memref<4x32xf32, #tpu.memory_space<vmem>>, %arg21: memref<4x32xf32, #tpu.memory_space<vmem>>, %arg22: memref<8x32xf32, #tpu.memory_space<vmem>>, %arg23: memref<8x32xf32, #tpu.memory_space<vmem>>) attributes {dimension_semantics = [], scalar_prefetch = 0 : i64, scratch_operands = 0 : i64, tpu.core_type = #tpu.core_type<tc>} {
    %c0 = arith.constant 0 : index
    %c0_0 = arith.constant 0 : index
    %0 = vector.load %arg1[%c0, %c0_0] : memref<8x32xf32, #tpu.memory_space<vmem>>, vector<8x32xf32>
    %c0_1 = arith.constant 0 : index
    %c0_2 = arith.constant 0 : index
    %1 = vector.load %arg2[%c0_1, %c0_2] : memref<8x32xf32, #tpu.memory_space<vmem>>, vector<8x32xf32>
    %c0_3 = arith.constant 0 : index
    %c0_4 = arith.constant 0 : index
    %2 = vector.load %arg0[%c0_3, %c0_4] : memref<8x8xi8, #tpu.memory_space<vmem>>, vector<8x8xi8>
    %c0_i8 = arith.constant 0 : i8
    %3 = vector.broadcast %c0_i8 : i8 to vector<8x8xi8>
    %4 = arith.cmpi ne, %2, %3 : vector<8x8xi8>
    %5 = vector.shape_cast %4 : vector<8x8xi1> to vector<1x8x8xi1>
    %c0_5 = arith.constant 0 : index
    %c0_6 = arith.constant 0 : index
    %6 = vector.load %arg3[%c0_5, %c0_6] : memref<32x128xf32, #tpu.memory_space<vmem>>, vector<32x128xf32>
    %cst = arith.constant dense<0.000000e+00> : vector<8x128xf32>
    %7 = tpu.matmul %0, %6, %cst {dimension_numbers = #tpu.dot_dimension_numbers<[1], [0], [0], [1], [0, 0, 1, 1], [], []>, precision = #tpu.contract_precision<fp32>} : vector<8x32xf32>, vector<32x128xf32>, vector<8x128xf32> -> vector<8x128xf32>
    %c0_7 = arith.constant 0 : index
    %c0_8 = arith.constant 0 : index
    %8 = vector.load %arg4[%c0_7, %c0_8] : memref<32x64xf32, #tpu.memory_space<vmem>>, vector<32x64xf32>
    %cst_9 = arith.constant dense<0.000000e+00> : vector<8x64xf32>
    %9 = tpu.matmul %1, %8, %cst_9 {dimension_numbers = #tpu.dot_dimension_numbers<[1], [0], [0], [1], [0, 0, 1, 1], [], []>, precision = #tpu.contract_precision<fp32>} : vector<8x32xf32>, vector<32x64xf32>, vector<8x64xf32> -> vector<8x64xf32>
    %10 = vector.extract_strided_slice %7 {offsets = [0, 0], sizes = [8, 32], strides = [1, 1]} : vector<8x128xf32> to vector<8x32xf32>
    %11 = vector.extract_strided_slice %7 {offsets = [0, 64], sizes = [8, 32], strides = [1, 1]} : vector<8x128xf32> to vector<8x32xf32>
    %12 = vector.extract_strided_slice %7 {offsets = [0, 96], sizes = [8, 32], strides = [1, 1]} : vector<8x128xf32> to vector<8x32xf32>
    %13 = vector.extract_strided_slice %10 {offsets = [0, 0], sizes = [8, 8], strides = [1, 1]} : vector<8x32xf32> to vector<8x8xf32>
    %14 = vector.extract_strided_slice %10 {offsets = [0, 8], sizes = [8, 8], strides = [1, 1]} : vector<8x32xf32> to vector<8x8xf32>
    %15 = vector.extract_strided_slice %10 {offsets = [0, 16], sizes = [8, 8], strides = [1, 1]} : vector<8x32xf32> to vector<8x8xf32>
    %16 = vector.extract_strided_slice %10 {offsets = [0, 24], sizes = [8, 8], strides = [1, 1]} : vector<8x32xf32> to vector<8x8xf32>
    %17 = vector.shape_cast %13 : vector<8x8xf32> to vector<1x8x8xf32>
    %18 = vector.shape_cast %14 : vector<8x8xf32> to vector<1x8x8xf32>
    %19 = vector.shape_cast %15 : vector<8x8xf32> to vector<1x8x8xf32>
    %20 = vector.shape_cast %16 : vector<8x8xf32> to vector<1x8x8xf32>
    %21 = tpu.concatenate %17, %18, %19, %20 in 0 : vector<1x8x8xf32>, vector<1x8x8xf32>, vector<1x8x8xf32>, vector<1x8x8xf32> -> vector<4x8x8xf32>
    %22 = vector.extract_strided_slice %11 {offsets = [0, 0], sizes = [8, 8], strides = [1, 1]} : vector<8x32xf32> to vector<8x8xf32>
    %23 = vector.extract_strided_slice %11 {offsets = [0, 8], sizes = [8, 8], strides = [1, 1]} : vector<8x32xf32> to vector<8x8xf32>
    %24 = vector.extract_strided_slice %11 {offsets = [0, 16], sizes = [8, 8], strides = [1, 1]} : vector<8x32xf32> to vector<8x8xf32>
    %25 = vector.extract_strided_slice %11 {offsets = [0, 24], sizes = [8, 8], strides = [1, 1]} : vector<8x32xf32> to vector<8x8xf32>
    %26 = vector.shape_cast %22 : vector<8x8xf32> to vector<1x8x8xf32>
    %27 = vector.shape_cast %23 : vector<8x8xf32> to vector<1x8x8xf32>
    %28 = vector.shape_cast %24 : vector<8x8xf32> to vector<1x8x8xf32>
    %29 = vector.shape_cast %25 : vector<8x8xf32> to vector<1x8x8xf32>
    %30 = tpu.concatenate %26, %27, %28, %29 in 0 : vector<1x8x8xf32>, vector<1x8x8xf32>, vector<1x8x8xf32>, vector<1x8x8xf32> -> vector<4x8x8xf32>
    %31 = vector.extract_strided_slice %12 {offsets = [0, 0], sizes = [8, 8], strides = [1, 1]} : vector<8x32xf32> to vector<8x8xf32>
    %32 = vector.extract_strided_slice %12 {offsets = [0, 8], sizes = [8, 8], strides = [1, 1]} : vector<8x32xf32> to vector<8x8xf32>
    %33 = vector.extract_strided_slice %12 {offsets = [0, 16], sizes = [8, 8], strides = [1, 1]} : vector<8x32xf32> to vector<8x8xf32>
    %34 = vector.extract_strided_slice %12 {offsets = [0, 24], sizes = [8, 8], strides = [1, 1]} : vector<8x32xf32> to vector<8x8xf32>
    %35 = vector.shape_cast %31 : vector<8x8xf32> to vector<1x8x8xf32>
    %36 = vector.shape_cast %32 : vector<8x8xf32> to vector<1x8x8xf32>
    %37 = vector.shape_cast %33 : vector<8x8xf32> to vector<1x8x8xf32>
    %38 = vector.shape_cast %34 : vector<8x8xf32> to vector<1x8x8xf32>
    %39 = tpu.concatenate %35, %36, %37, %38 in 0 : vector<1x8x8xf32>, vector<1x8x8xf32>, vector<1x8x8xf32>, vector<1x8x8xf32> -> vector<4x8x8xf32>
    "tpu.trace_start"() <{level = 10 : i32, message = "hnd,hmd->hnm"}> : () -> ()
    %cst_10 = arith.constant dense<0.000000e+00> : vector<4x8x8xf32>
    %40 = tpu.matmul %21, %30, %cst_10 {dimension_numbers = #tpu.dot_dimension_numbers<[2], [2], [1], [1], [0, 0, 0, 1, 1, 1], [0], [0]>, precision = #tpu.contract_precision<fp32>} : vector<4x8x8xf32>, vector<4x8x8xf32>, vector<4x8x8xf32> -> vector<4x8x8xf32>
    %cst_11 = arith.constant -5.000000e+00 : f32
    %cst_12 = arith.constant 5.000000e+00 : f32
    "tpu.trace_stop"() : () -> ()
    %41 = vector.broadcast %cst_11 : f32 to vector<4x8x8xf32>
    %42 = arith.maximumf %41, %40 : vector<4x8x8xf32>
    %43 = vector.broadcast %cst_12 : f32 to vector<4x8x8xf32>
    %44 = arith.minimumf %43, %42 : vector<4x8x8xf32>
    %45 = math.exp %44 : vector<4x8x8xf32>
    %cst_13 = arith.constant 0.000000e+00 : f32
    %46 = vector.shape_cast %5 : vector<1x8x8xi1> to vector<1x8x8xi1>
    %47 = vector.broadcast %46 : vector<1x8x8xi1> to vector<4x8x8xi1>
    %48 = vector.broadcast %cst_13 : f32 to vector<4x8x8xf32>
    %49 = arith.select %47, %45, %48 : vector<4x8x8xi1>, vector<4x8x8xf32>
    "tpu.trace_start"() <{level = 10 : i32, message = "hnm,hmd->hnd"}> : () -> ()
    %cst_14 = arith.constant dense<0.000000e+00> : vector<4x8x8xf32>
    %50 = tpu.matmul %49, %39, %cst_14 {dimension_numbers = #tpu.dot_dimension_numbers<[2], [1], [1], [2], [0, 0, 0, 1, 1, 2], [0], [0]>, precision = #tpu.contract_precision<fp32>} : vector<4x8x8xf32>, vector<4x8x8xf32>, vector<4x8x8xf32> -> vector<4x8x8xf32>
    "tpu.trace_stop"() : () -> ()
    %cst_15 = arith.constant dense<0.000000e+00> : vector<4x8xf32>
    %51 = vector.multi_reduction <add>, %49, %cst_15 [2] : vector<4x8x8xf32> to vector<4x8xf32>
    %52 = vector.shape_cast %51 : vector<4x8xf32> to vector<4x8x1xf32>
    %cst_16 = arith.constant 1.000000e-30 : f32
    %53 = vector.broadcast %cst_16 : f32 to vector<4x8x1xf32>
    %54 = arith.maximumf %52, %53 : vector<4x8x1xf32>
    %55 = tpu.reciprocal %54 {approx = true} : vector<4x8x1xf32> -> vector<4x8x1xf32>
    %56 = arith.mulf %54, %55 : vector<4x8x1xf32>
    %cst_17 = arith.constant 2.000000e+00 : f32
    %57 = vector.broadcast %cst_17 : f32 to vector<4x8x1xf32>
    %58 = arith.subf %57, %56 : vector<4x8x1xf32>
    %59 = arith.mulf %55, %58 : vector<4x8x1xf32>
    %60 = vector.broadcast %59 : vector<4x8x1xf32> to vector<4x8x8xf32>
    %61 = arith.mulf %50, %60 : vector<4x8x8xf32>
    %62 = vector.extract_strided_slice %61 {offsets = [0, 0, 0], sizes = [1, 8, 8], strides = [1, 1, 1]} : vector<4x8x8xf32> to vector<1x8x8xf32>
    %63 = vector.shape_cast %62 : vector<1x8x8xf32> to vector<8x8xf32>
    %64 = vector.extract_strided_slice %61 {offsets = [1, 0, 0], sizes = [1, 8, 8], strides = [1, 1, 1]} : vector<4x8x8xf32> to vector<1x8x8xf32>
    %65 = vector.shape_cast %64 : vector<1x8x8xf32> to vector<8x8xf32>
    %66 = vector.extract_strided_slice %61 {offsets = [2, 0, 0], sizes = [1, 8, 8], strides = [1, 1, 1]} : vector<4x8x8xf32> to vector<1x8x8xf32>
    %67 = vector.shape_cast %66 : vector<1x8x8xf32> to vector<8x8xf32>
    %68 = vector.extract_strided_slice %61 {offsets = [3, 0, 0], sizes = [1, 8, 8], strides = [1, 1, 1]} : vector<4x8x8xf32> to vector<1x8x8xf32>
    %69 = vector.shape_cast %68 : vector<1x8x8xf32> to vector<8x8xf32>
    %70 = tpu.concatenate %63, %65, %67, %69 in 1 : vector<8x8xf32>, vector<8x8xf32>, vector<8x8xf32>, vector<8x8xf32> -> vector<8x32xf32>
    %71 = vector.extract_strided_slice %7 {offsets = [0, 32], sizes = [8, 32], strides = [1, 1]} : vector<8x128xf32> to vector<8x32xf32>
    %72 = vector.extract_strided_slice %9 {offsets = [0, 0], sizes = [8, 32], strides = [1, 1]} : vector<8x64xf32> to vector<8x32xf32>
    %73 = vector.extract_strided_slice %9 {offsets = [0, 32], sizes = [8, 32], strides = [1, 1]} : vector<8x64xf32> to vector<8x32xf32>
    %74 = vector.extract_strided_slice %71 {offsets = [0, 0], sizes = [8, 8], strides = [1, 1]} : vector<8x32xf32> to vector<8x8xf32>
    %75 = vector.extract_strided_slice %71 {offsets = [0, 8], sizes = [8, 8], strides = [1, 1]} : vector<8x32xf32> to vector<8x8xf32>
    %76 = vector.extract_strided_slice %71 {offsets = [0, 16], sizes = [8, 8], strides = [1, 1]} : vector<8x32xf32> to vector<8x8xf32>
    %77 = vector.extract_strided_slice %71 {offsets = [0, 24], sizes = [8, 8], strides = [1, 1]} : vector<8x32xf32> to vector<8x8xf32>
    %78 = vector.shape_cast %74 : vector<8x8xf32> to vector<1x8x8xf32>
    %79 = vector.shape_cast %75 : vector<8x8xf32> to vector<1x8x8xf32>
    %80 = vector.shape_cast %76 : vector<8x8xf32> to vector<1x8x8xf32>
    %81 = vector.shape_cast %77 : vector<8x8xf32> to vector<1x8x8xf32>
    %82 = tpu.concatenate %78, %79, %80, %81 in 0 : vector<1x8x8xf32>, vector<1x8x8xf32>, vector<1x8x8xf32>, vector<1x8x8xf32> -> vector<4x8x8xf32>
    %83 = vector.extract_strided_slice %72 {offsets = [0, 0], sizes = [8, 8], strides = [1, 1]} : vector<8x32xf32> to vector<8x8xf32>
    %84 = vector.extract_strided_slice %72 {offsets = [0, 8], sizes = [8, 8], strides = [1, 1]} : vector<8x32xf32> to vector<8x8xf32>
    %85 = vector.extract_strided_slice %72 {offsets = [0, 16], sizes = [8, 8], strides = [1, 1]} : vector<8x32xf32> to vector<8x8xf32>
    %86 = vector.extract_strided_slice %72 {offsets = [0, 24], sizes = [8, 8], strides = [1, 1]} : vector<8x32xf32> to vector<8x8xf32>
    %87 = vector.shape_cast %83 : vector<8x8xf32> to vector<1x8x8xf32>
    %88 = vector.shape_cast %84 : vector<8x8xf32> to vector<1x8x8xf32>
    %89 = vector.shape_cast %85 : vector<8x8xf32> to vector<1x8x8xf32>
    %90 = vector.shape_cast %86 : vector<8x8xf32> to vector<1x8x8xf32>
    %91 = tpu.concatenate %87, %88, %89, %90 in 0 : vector<1x8x8xf32>, vector<1x8x8xf32>, vector<1x8x8xf32>, vector<1x8x8xf32> -> vector<4x8x8xf32>
    %92 = vector.extract_strided_slice %73 {offsets = [0, 0], sizes = [8, 8], strides = [1, 1]} : vector<8x32xf32> to vector<8x8xf32>
    %93 = vector.extract_strided_slice %73 {offsets = [0, 8], sizes = [8, 8], strides = [1, 1]} : vector<8x32xf32> to vector<8x8xf32>
    %94 = vector.extract_strided_slice %73 {offsets = [0, 16], sizes = [8, 8], strides = [1, 1]} : vector<8x32xf32> to vector<8x8xf32>
    %95 = vector.extract_strided_slice %73 {offsets = [0, 24], sizes = [8, 8], strides = [1, 1]} : vector<8x32xf32> to vector<8x8xf32>
    %96 = vector.shape_cast %92 : vector<8x8xf32> to vector<1x8x8xf32>
    %97 = vector.shape_cast %93 : vector<8x8xf32> to vector<1x8x8xf32>
    %98 = vector.shape_cast %94 : vector<8x8xf32> to vector<1x8x8xf32>
    %99 = vector.shape_cast %95 : vector<8x8xf32> to vector<1x8x8xf32>
    %100 = tpu.concatenate %96, %97, %98, %99 in 0 : vector<1x8x8xf32>, vector<1x8x8xf32>, vector<1x8x8xf32>, vector<1x8x8xf32> -> vector<4x8x8xf32>
    "tpu.trace_start"() <{level = 10 : i32, message = "hnd,hmd->hnm"}> : () -> ()
    %cst_18 = arith.constant dense<0.000000e+00> : vector<4x8x8xf32>
    %101 = tpu.matmul %82, %91, %cst_18 {dimension_numbers = #tpu.dot_dimension_numbers<[2], [2], [1], [1], [0, 0, 0, 1, 1, 1], [0], [0]>, precision = #tpu.contract_precision<fp32>} : vector<4x8x8xf32>, vector<4x8x8xf32>, vector<4x8x8xf32> -> vector<4x8x8xf32>
    %cst_19 = arith.constant -5.000000e+00 : f32
    %cst_20 = arith.constant 5.000000e+00 : f32
    "tpu.trace_stop"() : () -> ()
    %102 = vector.broadcast %cst_19 : f32 to vector<4x8x8xf32>
    %103 = arith.maximumf %102, %101 : vector<4x8x8xf32>
    %104 = vector.broadcast %cst_20 : f32 to vector<4x8x8xf32>
    %105 = arith.minimumf %104, %103 : vector<4x8x8xf32>
    %106 = math.exp %105 : vector<4x8x8xf32>
    %cst_21 = arith.constant 0.000000e+00 : f32
    %107 = vector.shape_cast %5 : vector<1x8x8xi1> to vector<1x8x8xi1>
    %108 = vector.broadcast %107 : vector<1x8x8xi1> to vector<4x8x8xi1>
    %109 = vector.broadcast %cst_21 : f32 to vector<4x8x8xf32>
    %110 = arith.select %108, %106, %109 : vector<4x8x8xi1>, vector<4x8x8xf32>
    "tpu.trace_start"() <{level = 10 : i32, message = "hnm,hmd->hnd"}> : () -> ()
    %cst_22 = arith.constant dense<0.000000e+00> : vector<4x8x8xf32>
    %111 = tpu.matmul %110, %100, %cst_22 {dimension_numbers = #tpu.dot_dimension_numbers<[2], [1], [1], [2], [0, 0, 0, 1, 1, 2], [0], [0]>, precision = #tpu.contract_precision<fp32>} : vector<4x8x8xf32>, vector<4x8x8xf32>, vector<4x8x8xf32> -> vector<4x8x8xf32>
    "tpu.trace_stop"() : () -> ()
    %cst_23 = arith.constant dense<0.000000e+00> : vector<4x8xf32>
    %112 = vector.multi_reduction <add>, %110, %cst_23 [2] : vector<4x8x8xf32> to vector<4x8xf32>
    %113 = vector.shape_cast %112 : vector<4x8xf32> to vector<4x8x1xf32>
    %cst_24 = arith.constant 1.000000e-30 : f32
    %114 = vector.broadcast %cst_24 : f32 to vector<4x8x1xf32>
    %115 = arith.maximumf %113, %114 : vector<4x8x1xf32>
    %116 = tpu.reciprocal %115 {approx = true} : vector<4x8x1xf32> -> vector<4x8x1xf32>
    %117 = arith.mulf %115, %116 : vector<4x8x1xf32>
    %cst_25 = arith.constant 2.000000e+00 : f32
    %118 = vector.broadcast %cst_25 : f32 to vector<4x8x1xf32>
    %119 = arith.subf %118, %117 : vector<4x8x1xf32>
    %120 = arith.mulf %116, %119 : vector<4x8x1xf32>
    %121 = vector.broadcast %120 : vector<4x8x1xf32> to vector<4x8x8xf32>
    %122 = arith.mulf %111, %121 : vector<4x8x8xf32>
    %123 = vector.extract_strided_slice %122 {offsets = [0, 0, 0], sizes = [1, 8, 8], strides = [1, 1, 1]} : vector<4x8x8xf32> to vector<1x8x8xf32>
    %124 = vector.shape_cast %123 : vector<1x8x8xf32> to vector<8x8xf32>
    %125 = vector.extract_strided_slice %122 {offsets = [1, 0, 0], sizes = [1, 8, 8], strides = [1, 1, 1]} : vector<4x8x8xf32> to vector<1x8x8xf32>
    %126 = vector.shape_cast %125 : vector<1x8x8xf32> to vector<8x8xf32>
    %127 = vector.extract_strided_slice %122 {offsets = [2, 0, 0], sizes = [1, 8, 8], strides = [1, 1, 1]} : vector<4x8x8xf32> to vector<1x8x8xf32>
    %128 = vector.shape_cast %127 : vector<1x8x8xf32> to vector<8x8xf32>
    %129 = vector.extract_strided_slice %122 {offsets = [3, 0, 0], sizes = [1, 8, 8], strides = [1, 1, 1]} : vector<4x8x8xf32> to vector<1x8x8xf32>
    %130 = vector.shape_cast %129 : vector<1x8x8xf32> to vector<8x8xf32>
    %131 = tpu.concatenate %124, %126, %128, %130 in 1 : vector<8x8xf32>, vector<8x8xf32>, vector<8x8xf32>, vector<8x8xf32> -> vector<8x32xf32>
    %132 = tpu.concatenate %70, %131 in 1 : vector<8x32xf32>, vector<8x32xf32> -> vector<8x64xf32>
    %c0_26 = arith.constant 0 : index
    %c0_27 = arith.constant 0 : index
    %133 = vector.load %arg8[%c0_26, %c0_27] : memref<64x32xf32, #tpu.memory_space<vmem>>, vector<64x32xf32>
    %cst_28 = arith.constant dense<0.000000e+00> : vector<8x32xf32>
    %134 = tpu.matmul %132, %133, %cst_28 {dimension_numbers = #tpu.dot_dimension_numbers<[1], [0], [0], [1], [0, 0, 1, 1], [], []>, precision = #tpu.contract_precision<fp32>} : vector<8x64xf32>, vector<64x32xf32>, vector<8x32xf32> -> vector<8x32xf32>
    %c0_29 = arith.constant 0 : index
    %c0_30 = arith.constant 0 : index
    %135 = vector.load %arg9[%c0_29, %c0_30] : memref<1x32xf32, #tpu.memory_space<vmem>>, vector<1x32xf32>
    %136 = vector.broadcast %135 : vector<1x32xf32> to vector<8x32xf32>
    %137 = arith.addf %134, %136 : vector<8x32xf32>
    %c0_31 = arith.constant 0 : index
    %c0_32 = arith.constant 0 : index
    %138 = vector.load %arg20[%c0_31, %c0_32] : memref<4x32xf32, #tpu.memory_space<vmem>>, vector<4x32xf32>
    %139 = arith.addf %0, %137 : vector<8x32xf32>
    %140 = vector.extract_strided_slice %138 {offsets = [0, 0], sizes = [1, 32], strides = [1, 1]} : vector<4x32xf32> to vector<1x32xf32>
    %141 = vector.extract_strided_slice %138 {offsets = [1, 0], sizes = [1, 32], strides = [1, 1]} : vector<4x32xf32> to vector<1x32xf32>
    %cst_33 = arith.constant dense<0.000000e+00> : vector<32xf32>
    %142 = vector.multi_reduction <add>, %139, %cst_33 [0] : vector<8x32xf32> to vector<32xf32>
    %143 = vector.shape_cast %142 : vector<32xf32> to vector<1x32xf32>
    %cst_34 = arith.constant 8.000000e+00 : f32
    %144 = vector.broadcast %cst_34 : f32 to vector<1x32xf32>
    %145 = arith.divf %143, %144 : vector<1x32xf32>
    %146 = vector.broadcast %145 : vector<1x32xf32> to vector<8x32xf32>
    %147 = arith.subf %139, %146 : vector<8x32xf32>
    %148 = arith.mulf %147, %147 : vector<8x32xf32>
    %cst_35 = arith.constant dense<0.000000e+00> : vector<32xf32>
    %149 = vector.multi_reduction <add>, %148, %cst_35 [0] : vector<8x32xf32> to vector<32xf32>
    %150 = vector.shape_cast %149 : vector<32xf32> to vector<1x32xf32>
    %cst_36 = arith.constant 8.000000e+00 : f32
    %151 = vector.broadcast %cst_36 : f32 to vector<1x32xf32>
    %152 = arith.divf %150, %151 : vector<1x32xf32>
    %cst_37 = arith.constant 9.99999974E-6 : f32
    %153 = vector.broadcast %cst_37 : f32 to vector<1x32xf32>
    %154 = arith.addf %152, %153 : vector<1x32xf32>
    %155 = math.rsqrt %154 : vector<1x32xf32>
    %156 = vector.broadcast %155 : vector<1x32xf32> to vector<8x32xf32>
    %157 = arith.mulf %147, %156 : vector<8x32xf32>
    %158 = vector.broadcast %140 : vector<1x32xf32> to vector<8x32xf32>
    %159 = arith.mulf %157, %158 : vector<8x32xf32>
    %160 = vector.broadcast %141 : vector<1x32xf32> to vector<8x32xf32>
    %161 = arith.addf %159, %160 : vector<8x32xf32>
    %c0_38 = arith.constant 0 : index
    %c0_39 = arith.constant 0 : index
    %162 = vector.load %arg10[%c0_38, %c0_39] : memref<32x64xf32, #tpu.memory_space<vmem>>, vector<32x64xf32>
    %cst_40 = arith.constant dense<0.000000e+00> : vector<8x64xf32>
    %163 = tpu.matmul %161, %162, %cst_40 {dimension_numbers = #tpu.dot_dimension_numbers<[1], [0], [0], [1], [0, 0, 1, 1], [], []>, precision = #tpu.contract_precision<fp32>} : vector<8x32xf32>, vector<32x64xf32>, vector<8x64xf32> -> vector<8x64xf32>
    %c0_41 = arith.constant 0 : index
    %c0_42 = arith.constant 0 : index
    %164 = vector.load %arg11[%c0_41, %c0_42] : memref<1x64xf32, #tpu.memory_space<vmem>>, vector<1x64xf32>
    %165 = vector.broadcast %164 : vector<1x64xf32> to vector<8x64xf32>
    %166 = arith.addf %163, %165 : vector<8x64xf32>
    %cst_43 = arith.constant 0.000000e+00 : f32
    %167 = vector.broadcast %cst_43 : f32 to vector<8x64xf32>
    %168 = arith.maximumf %166, %167 : vector<8x64xf32>
    %c0_44 = arith.constant 0 : index
    %c0_45 = arith.constant 0 : index
    %169 = vector.load %arg12[%c0_44, %c0_45] : memref<64x32xf32, #tpu.memory_space<vmem>>, vector<64x32xf32>
    %cst_46 = arith.constant dense<0.000000e+00> : vector<8x32xf32>
    %170 = tpu.matmul %168, %169, %cst_46 {dimension_numbers = #tpu.dot_dimension_numbers<[1], [0], [0], [1], [0, 0, 1, 1], [], []>, precision = #tpu.contract_precision<fp32>} : vector<8x64xf32>, vector<64x32xf32>, vector<8x32xf32> -> vector<8x32xf32>
    %c0_47 = arith.constant 0 : index
    %c0_48 = arith.constant 0 : index
    %171 = vector.load %arg13[%c0_47, %c0_48] : memref<1x32xf32, #tpu.memory_space<vmem>>, vector<1x32xf32>
    %172 = vector.broadcast %171 : vector<1x32xf32> to vector<8x32xf32>
    %173 = arith.addf %170, %172 : vector<8x32xf32>
    %174 = arith.addf %161, %173 : vector<8x32xf32>
    %175 = vector.extract_strided_slice %138 {offsets = [2, 0], sizes = [1, 32], strides = [1, 1]} : vector<4x32xf32> to vector<1x32xf32>
    %176 = vector.extract_strided_slice %138 {offsets = [3, 0], sizes = [1, 32], strides = [1, 1]} : vector<4x32xf32> to vector<1x32xf32>
    %cst_49 = arith.constant dense<0.000000e+00> : vector<32xf32>
    %177 = vector.multi_reduction <add>, %174, %cst_49 [0] : vector<8x32xf32> to vector<32xf32>
    %178 = vector.shape_cast %177 : vector<32xf32> to vector<1x32xf32>
    %cst_50 = arith.constant 8.000000e+00 : f32
    %179 = vector.broadcast %cst_50 : f32 to vector<1x32xf32>
    %180 = arith.divf %178, %179 : vector<1x32xf32>
    %181 = vector.broadcast %180 : vector<1x32xf32> to vector<8x32xf32>
    %182 = arith.subf %174, %181 : vector<8x32xf32>
    %183 = arith.mulf %182, %182 : vector<8x32xf32>
    %cst_51 = arith.constant dense<0.000000e+00> : vector<32xf32>
    %184 = vector.multi_reduction <add>, %183, %cst_51 [0] : vector<8x32xf32> to vector<32xf32>
    %185 = vector.shape_cast %184 : vector<32xf32> to vector<1x32xf32>
    %cst_52 = arith.constant 8.000000e+00 : f32
    %186 = vector.broadcast %cst_52 : f32 to vector<1x32xf32>
    %187 = arith.divf %185, %186 : vector<1x32xf32>
    %cst_53 = arith.constant 9.99999974E-6 : f32
    %188 = vector.broadcast %cst_53 : f32 to vector<1x32xf32>
    %189 = arith.addf %187, %188 : vector<1x32xf32>
    %190 = math.rsqrt %189 : vector<1x32xf32>
    %191 = vector.broadcast %190 : vector<1x32xf32> to vector<8x32xf32>
    %192 = arith.mulf %182, %191 : vector<8x32xf32>
    %193 = vector.broadcast %175 : vector<1x32xf32> to vector<8x32xf32>
    %194 = arith.mulf %192, %193 : vector<8x32xf32>
    %195 = vector.broadcast %176 : vector<1x32xf32> to vector<8x32xf32>
    %196 = arith.addf %194, %195 : vector<8x32xf32>
    %c0_54 = arith.constant 0 : index
    %c0_55 = arith.constant 0 : index
    %197 = vector.load %arg22[%c0_54, %c0_55] : memref<8x32xf32, #tpu.memory_space<vmem>>, vector<8x32xf32>
    tpu.vector_store %arg22[%c0_54, %c0_55], %196 {strides = array<i32>} : memref<8x32xf32, #tpu.memory_space<vmem>>, vector<8x32xf32>,
    %c0_56 = arith.constant 0 : index
    %c0_57 = arith.constant 0 : index
    %198 = vector.load %arg5[%c0_56, %c0_57] : memref<32x128xf32, #tpu.memory_space<vmem>>, vector<32x128xf32>
    %cst_58 = arith.constant dense<0.000000e+00> : vector<8x128xf32>
    %199 = tpu.matmul %1, %198, %cst_58 {dimension_numbers = #tpu.dot_dimension_numbers<[1], [0], [0], [1], [0, 0, 1, 1], [], []>, precision = #tpu.contract_precision<fp32>} : vector<8x32xf32>, vector<32x128xf32>, vector<8x128xf32> -> vector<8x128xf32>
    %c0_59 = arith.constant 0 : index
    %c0_60 = arith.constant 0 : index
    %200 = vector.load %arg6[%c0_59, %c0_60] : memref<32x128xf32, #tpu.memory_space<vmem>>, vector<32x128xf32>
    %cst_61 = arith.constant dense<0.000000e+00> : vector<8x128xf32>
    %201 = tpu.matmul %0, %200, %cst_61 {dimension_numbers = #tpu.dot_dimension_numbers<[1], [0], [0], [1], [0, 0, 1, 1], [], []>, precision = #tpu.contract_precision<fp32>} : vector<8x32xf32>, vector<32x128xf32>, vector<8x128xf32> -> vector<8x128xf32>
    %202 = vector.extract_strided_slice %199 {offsets = [0, 0], sizes = [8, 32], strides = [1, 1]} : vector<8x128xf32> to vector<8x32xf32>
    %203 = vector.extract_strided_slice %199 {offsets = [0, 64], sizes = [8, 32], strides = [1, 1]} : vector<8x128xf32> to vector<8x32xf32>
    %204 = vector.extract_strided_slice %199 {offsets = [0, 96], sizes = [8, 32], strides = [1, 1]} : vector<8x128xf32> to vector<8x32xf32>
    %205 = vector.extract_strided_slice %202 {offsets = [0, 0], sizes = [8, 8], strides = [1, 1]} : vector<8x32xf32> to vector<8x8xf32>
    %206 = vector.extract_strided_slice %202 {offsets = [0, 8], sizes = [8, 8], strides = [1, 1]} : vector<8x32xf32> to vector<8x8xf32>
    %207 = vector.extract_strided_slice %202 {offsets = [0, 16], sizes = [8, 8], strides = [1, 1]} : vector<8x32xf32> to vector<8x8xf32>
    %208 = vector.extract_strided_slice %202 {offsets = [0, 24], sizes = [8, 8], strides = [1, 1]} : vector<8x32xf32> to vector<8x8xf32>
    %209 = vector.shape_cast %205 : vector<8x8xf32> to vector<1x8x8xf32>
    %210 = vector.shape_cast %206 : vector<8x8xf32> to vector<1x8x8xf32>
    %211 = vector.shape_cast %207 : vector<8x8xf32> to vector<1x8x8xf32>
    %212 = vector.shape_cast %208 : vector<8x8xf32> to vector<1x8x8xf32>
    %213 = tpu.concatenate %209, %210, %211, %212 in 0 : vector<1x8x8xf32>, vector<1x8x8xf32>, vector<1x8x8xf32>, vector<1x8x8xf32> -> vector<4x8x8xf32>
    %214 = vector.extract_strided_slice %203 {offsets = [0, 0], sizes = [8, 8], strides = [1, 1]} : vector<8x32xf32> to vector<8x8xf32>
    %215 = vector.extract_strided_slice %203 {offsets = [0, 8], sizes = [8, 8], strides = [1, 1]} : vector<8x32xf32> to vector<8x8xf32>
    %216 = vector.extract_strided_slice %203 {offsets = [0, 16], sizes = [8, 8], strides = [1, 1]} : vector<8x32xf32> to vector<8x8xf32>
    %217 = vector.extract_strided_slice %203 {offsets = [0, 24], sizes = [8, 8], strides = [1, 1]} : vector<8x32xf32> to vector<8x8xf32>
    %218 = vector.shape_cast %214 : vector<8x8xf32> to vector<1x8x8xf32>
    %219 = vector.shape_cast %215 : vector<8x8xf32> to vector<1x8x8xf32>
    %220 = vector.shape_cast %216 : vector<8x8xf32> to vector<1x8x8xf32>
    %221 = vector.shape_cast %217 : vector<8x8xf32> to vector<1x8x8xf32>
    %222 = tpu.concatenate %218, %219, %220, %221 in 0 : vector<1x8x8xf32>, vector<1x8x8xf32>, vector<1x8x8xf32>, vector<1x8x8xf32> -> vector<4x8x8xf32>
    %223 = vector.extract_strided_slice %204 {offsets = [0, 0], sizes = [8, 8], strides = [1, 1]} : vector<8x32xf32> to vector<8x8xf32>
    %224 = vector.extract_strided_slice %204 {offsets = [0, 8], sizes = [8, 8], strides = [1, 1]} : vector<8x32xf32> to vector<8x8xf32>
    %225 = vector.extract_strided_slice %204 {offsets = [0, 16], sizes = [8, 8], strides = [1, 1]} : vector<8x32xf32> to vector<8x8xf32>
    %226 = vector.extract_strided_slice %204 {offsets = [0, 24], sizes = [8, 8], strides = [1, 1]} : vector<8x32xf32> to vector<8x8xf32>
    %227 = vector.shape_cast %223 : vector<8x8xf32> to vector<1x8x8xf32>
    %228 = vector.shape_cast %224 : vector<8x8xf32> to vector<1x8x8xf32>
    %229 = vector.shape_cast %225 : vector<8x8xf32> to vector<1x8x8xf32>
    %230 = vector.shape_cast %226 : vector<8x8xf32> to vector<1x8x8xf32>
    %231 = tpu.concatenate %227, %228, %229, %230 in 0 : vector<1x8x8xf32>, vector<1x8x8xf32>, vector<1x8x8xf32>, vector<1x8x8xf32> -> vector<4x8x8xf32>
    "tpu.trace_start"() <{level = 10 : i32, message = "hnd,hmd->hnm"}> : () -> ()
    %cst_62 = arith.constant dense<0.000000e+00> : vector<4x8x8xf32>
    %232 = tpu.matmul %213, %222, %cst_62 {dimension_numbers = #tpu.dot_dimension_numbers<[2], [2], [1], [1], [0, 0, 0, 1, 1, 1], [0], [0]>, precision = #tpu.contract_precision<fp32>} : vector<4x8x8xf32>, vector<4x8x8xf32>, vector<4x8x8xf32> -> vector<4x8x8xf32>
    %cst_63 = arith.constant -5.000000e+00 : f32
    %cst_64 = arith.constant 5.000000e+00 : f32
    "tpu.trace_stop"() : () -> ()
    %233 = vector.broadcast %cst_63 : f32 to vector<4x8x8xf32>
    %234 = arith.maximumf %233, %232 : vector<4x8x8xf32>
    %235 = vector.broadcast %cst_64 : f32 to vector<4x8x8xf32>
    %236 = arith.minimumf %235, %234 : vector<4x8x8xf32>
    %237 = math.exp %236 : vector<4x8x8xf32>
    %cst_65 = arith.constant 0.000000e+00 : f32
    %238 = vector.shape_cast %5 : vector<1x8x8xi1> to vector<1x8x8xi1>
    %239 = vector.broadcast %238 : vector<1x8x8xi1> to vector<4x8x8xi1>
    %240 = vector.broadcast %cst_65 : f32 to vector<4x8x8xf32>
    %241 = arith.select %239, %237, %240 : vector<4x8x8xi1>, vector<4x8x8xf32>
    "tpu.trace_start"() <{level = 10 : i32, message = "hnm,hmd->hnd"}> : () -> ()
    %cst_66 = arith.constant dense<0.000000e+00> : vector<4x8x8xf32>
    %242 = tpu.matmul %241, %231, %cst_66 {dimension_numbers = #tpu.dot_dimension_numbers<[2], [1], [1], [2], [0, 0, 0, 1, 1, 2], [0], [0]>, precision = #tpu.contract_precision<fp32>} : vector<4x8x8xf32>, vector<4x8x8xf32>, vector<4x8x8xf32> -> vector<4x8x8xf32>
    "tpu.trace_stop"() : () -> ()
    %cst_67 = arith.constant dense<0.000000e+00> : vector<4x8xf32>
    %243 = vector.multi_reduction <add>, %241, %cst_67 [2] : vector<4x8x8xf32> to vector<4x8xf32>
    %244 = vector.shape_cast %243 : vector<4x8xf32> to vector<4x8x1xf32>
    %cst_68 = arith.constant 1.000000e-30 : f32
    %245 = vector.broadcast %cst_68 : f32 to vector<4x8x1xf32>
    %246 = arith.maximumf %244, %245 : vector<4x8x1xf32>
    %247 = tpu.reciprocal %246 {approx = true} : vector<4x8x1xf32> -> vector<4x8x1xf32>
    %248 = arith.mulf %246, %247 : vector<4x8x1xf32>
    %cst_69 = arith.constant 2.000000e+00 : f32
    %249 = vector.broadcast %cst_69 : f32 to vector<4x8x1xf32>
    %250 = arith.subf %249, %248 : vector<4x8x1xf32>
    %251 = arith.mulf %247, %250 : vector<4x8x1xf32>
    %252 = vector.broadcast %251 : vector<4x8x1xf32> to vector<4x8x8xf32>
    %253 = arith.mulf %242, %252 : vector<4x8x8xf32>
    %254 = vector.extract_strided_slice %253 {offsets = [0, 0, 0], sizes = [1, 8, 8], strides = [1, 1, 1]} : vector<4x8x8xf32> to vector<1x8x8xf32>
    %255 = vector.shape_cast %254 : vector<1x8x8xf32> to vector<8x8xf32>
    %256 = vector.extract_strided_slice %253 {offsets = [1, 0, 0], sizes = [1, 8, 8], strides = [1, 1, 1]} : vector<4x8x8xf32> to vector<1x8x8xf32>
    %257 = vector.shape_cast %256 : vector<1x8x8xf32> to vector<8x8xf32>
    %258 = vector.extract_strided_slice %253 {offsets = [2, 0, 0], sizes = [1, 8, 8], strides = [1, 1, 1]} : vector<4x8x8xf32> to vector<1x8x8xf32>
    %259 = vector.shape_cast %258 : vector<1x8x8xf32> to vector<8x8xf32>
    %260 = vector.extract_strided_slice %253 {offsets = [3, 0, 0], sizes = [1, 8, 8], strides = [1, 1, 1]} : vector<4x8x8xf32> to vector<1x8x8xf32>
    %261 = vector.shape_cast %260 : vector<1x8x8xf32> to vector<8x8xf32>
    %262 = tpu.concatenate %255, %257, %259, %261 in 1 : vector<8x8xf32>, vector<8x8xf32>, vector<8x8xf32>, vector<8x8xf32> -> vector<8x32xf32>
    %263 = vector.extract_strided_slice %199 {offsets = [0, 32], sizes = [8, 32], strides = [1, 1]} : vector<8x128xf32> to vector<8x32xf32>
    %264 = vector.extract_strided_slice %201 {offsets = [0, 0], sizes = [8, 32], strides = [1, 1]} : vector<8x128xf32> to vector<8x32xf32>
    %265 = vector.extract_strided_slice %201 {offsets = [0, 32], sizes = [8, 32], strides = [1, 1]} : vector<8x128xf32> to vector<8x32xf32>
    %266 = vector.extract_strided_slice %263 {offsets = [0, 0], sizes = [8, 8], strides = [1, 1]} : vector<8x32xf32> to vector<8x8xf32>
    %267 = vector.extract_strided_slice %263 {offsets = [0, 8], sizes = [8, 8], strides = [1, 1]} : vector<8x32xf32> to vector<8x8xf32>
    %268 = vector.extract_strided_slice %263 {offsets = [0, 16], sizes = [8, 8], strides = [1, 1]} : vector<8x32xf32> to vector<8x8xf32>
    %269 = vector.extract_strided_slice %263 {offsets = [0, 24], sizes = [8, 8], strides = [1, 1]} : vector<8x32xf32> to vector<8x8xf32>
    %270 = vector.shape_cast %266 : vector<8x8xf32> to vector<1x8x8xf32>
    %271 = vector.shape_cast %267 : vector<8x8xf32> to vector<1x8x8xf32>
    %272 = vector.shape_cast %268 : vector<8x8xf32> to vector<1x8x8xf32>
    %273 = vector.shape_cast %269 : vector<8x8xf32> to vector<1x8x8xf32>
    %274 = tpu.concatenate %270, %271, %272, %273 in 0 : vector<1x8x8xf32>, vector<1x8x8xf32>, vector<1x8x8xf32>, vector<1x8x8xf32> -> vector<4x8x8xf32>
    %275 = vector.extract_strided_slice %264 {offsets = [0, 0], sizes = [8, 8], strides = [1, 1]} : vector<8x32xf32> to vector<8x8xf32>
    %276 = vector.extract_strided_slice %264 {offsets = [0, 8], sizes = [8, 8], strides = [1, 1]} : vector<8x32xf32> to vector<8x8xf32>
    %277 = vector.extract_strided_slice %264 {offsets = [0, 16], sizes = [8, 8], strides = [1, 1]} : vector<8x32xf32> to vector<8x8xf32>
    %278 = vector.extract_strided_slice %264 {offsets = [0, 24], sizes = [8, 8], strides = [1, 1]} : vector<8x32xf32> to vector<8x8xf32>
    %279 = vector.shape_cast %275 : vector<8x8xf32> to vector<1x8x8xf32>
    %280 = vector.shape_cast %276 : vector<8x8xf32> to vector<1x8x8xf32>
    %281 = vector.shape_cast %277 : vector<8x8xf32> to vector<1x8x8xf32>
    %282 = vector.shape_cast %278 : vector<8x8xf32> to vector<1x8x8xf32>
    %283 = tpu.concatenate %279, %280, %281, %282 in 0 : vector<1x8x8xf32>, vector<1x8x8xf32>, vector<1x8x8xf32>, vector<1x8x8xf32> -> vector<4x8x8xf32>
    %284 = vector.extract_strided_slice %265 {offsets = [0, 0], sizes = [8, 8], strides = [1, 1]} : vector<8x32xf32> to vector<8x8xf32>
    %285 = vector.extract_strided_slice %265 {offsets = [0, 8], sizes = [8, 8], strides = [1, 1]} : vector<8x32xf32> to vector<8x8xf32>
    %286 = vector.extract_strided_slice %265 {offsets = [0, 16], sizes = [8, 8], strides = [1, 1]} : vector<8x32xf32> to vector<8x8xf32>
    %287 = vector.extract_strided_slice %265 {offsets = [0, 24], sizes = [8, 8], strides = [1, 1]} : vector<8x32xf32> to vector<8x8xf32>
    %288 = vector.shape_cast %284 : vector<8x8xf32> to vector<1x8x8xf32>
    %289 = vector.shape_cast %285 : vector<8x8xf32> to vector<1x8x8xf32>
    %290 = vector.shape_cast %286 : vector<8x8xf32> to vector<1x8x8xf32>
    %291 = vector.shape_cast %287 : vector<8x8xf32> to vector<1x8x8xf32>
    %292 = tpu.concatenate %288, %289, %290, %291 in 0 : vector<1x8x8xf32>, vector<1x8x8xf32>, vector<1x8x8xf32>, vector<1x8x8xf32> -> vector<4x8x8xf32>
    "tpu.trace_start"() <{level = 10 : i32, message = "hnd,hmd->hnm"}> : () -> ()
    %cst_70 = arith.constant dense<0.000000e+00> : vector<4x8x8xf32>
    %293 = tpu.matmul %274, %283, %cst_70 {dimension_numbers = #tpu.dot_dimension_numbers<[2], [2], [1], [1], [0, 0, 0, 1, 1, 1], [0], [0]>, precision = #tpu.contract_precision<fp32>} : vector<4x8x8xf32>, vector<4x8x8xf32>, vector<4x8x8xf32> -> vector<4x8x8xf32>
    %cst_71 = arith.constant -5.000000e+00 : f32
    %cst_72 = arith.constant 5.000000e+00 : f32
    "tpu.trace_stop"() : () -> ()
    %294 = vector.broadcast %cst_71 : f32 to vector<4x8x8xf32>
    %295 = arith.maximumf %294, %293 : vector<4x8x8xf32>
    %296 = vector.broadcast %cst_72 : f32 to vector<4x8x8xf32>
    %297 = arith.minimumf %296, %295 : vector<4x8x8xf32>
    %298 = math.exp %297 : vector<4x8x8xf32>
    %cst_73 = arith.constant 0.000000e+00 : f32
    %299 = vector.shape_cast %5 : vector<1x8x8xi1> to vector<1x8x8xi1>
    %300 = vector.broadcast %299 : vector<1x8x8xi1> to vector<4x8x8xi1>
    %301 = vector.broadcast %cst_73 : f32 to vector<4x8x8xf32>
    %302 = arith.select %300, %298, %301 : vector<4x8x8xi1>, vector<4x8x8xf32>
    "tpu.trace_start"() <{level = 10 : i32, message = "hnm,hmd->hnd"}> : () -> ()
    %cst_74 = arith.constant dense<0.000000e+00> : vector<4x8x8xf32>
    %303 = tpu.matmul %302, %292, %cst_74 {dimension_numbers = #tpu.dot_dimension_numbers<[2], [1], [1], [2], [0, 0, 0, 1, 1, 2], [0], [0]>, precision = #tpu.contract_precision<fp32>} : vector<4x8x8xf32>, vector<4x8x8xf32>, vector<4x8x8xf32> -> vector<4x8x8xf32>
    "tpu.trace_stop"() : () -> ()
    %cst_75 = arith.constant dense<0.000000e+00> : vector<4x8xf32>
    %304 = vector.multi_reduction <add>, %302, %cst_75 [2] : vector<4x8x8xf32> to vector<4x8xf32>
    %305 = vector.shape_cast %304 : vector<4x8xf32> to vector<4x8x1xf32>
    %cst_76 = arith.constant 1.000000e-30 : f32
    %306 = vector.broadcast %cst_76 : f32 to vector<4x8x1xf32>
    %307 = arith.maximumf %305, %306 : vector<4x8x1xf32>
    %308 = tpu.reciprocal %307 {approx = true} : vector<4x8x1xf32> -> vector<4x8x1xf32>
    %309 = arith.mulf %307, %308 : vector<4x8x1xf32>
    %cst_77 = arith.constant 2.000000e+00 : f32
    %310 = vector.broadcast %cst_77 : f32 to vector<4x8x1xf32>
    %311 = arith.subf %310, %309 : vector<4x8x1xf32>
    %312 = arith.mulf %308, %311 : vector<4x8x1xf32>
    %313 = vector.broadcast %312 : vector<4x8x1xf32> to vector<4x8x8xf32>
    %314 = arith.mulf %303, %313 : vector<4x8x8xf32>
    %315 = vector.extract_strided_slice %314 {offsets = [0, 0, 0], sizes = [1, 8, 8], strides = [1, 1, 1]} : vector<4x8x8xf32> to vector<1x8x8xf32>
    %316 = vector.shape_cast %315 : vector<1x8x8xf32> to vector<8x8xf32>
    %317 = vector.extract_strided_slice %314 {offsets = [1, 0, 0], sizes = [1, 8, 8], strides = [1, 1, 1]} : vector<4x8x8xf32> to vector<1x8x8xf32>
    %318 = vector.shape_cast %317 : vector<1x8x8xf32> to vector<8x8xf32>
    %319 = vector.extract_strided_slice %314 {offsets = [2, 0, 0], sizes = [1, 8, 8], strides = [1, 1, 1]} : vector<4x8x8xf32> to vector<1x8x8xf32>
    %320 = vector.shape_cast %319 : vector<1x8x8xf32> to vector<8x8xf32>
    %321 = vector.extract_strided_slice %314 {offsets = [3, 0, 0], sizes = [1, 8, 8], strides = [1, 1, 1]} : vector<4x8x8xf32> to vector<1x8x8xf32>
    %322 = vector.shape_cast %321 : vector<1x8x8xf32> to vector<8x8xf32>
    %323 = tpu.concatenate %316, %318, %320, %322 in 1 : vector<8x8xf32>, vector<8x8xf32>, vector<8x8xf32>, vector<8x8xf32> -> vector<8x32xf32>
    %324 = tpu.concatenate %262, %323 in 1 : vector<8x32xf32>, vector<8x32xf32> -> vector<8x64xf32>
    %c0_78 = arith.constant 0 : index
    %c0_79 = arith.constant 0 : index
    %325 = vector.load %arg14[%c0_78, %c0_79] : memref<64x32xf32, #tpu.memory_space<vmem>>, vector<64x32xf32>
    %cst_80 = arith.constant dense<0.000000e+00> : vector<8x32xf32>
    %326 = tpu.matmul %324, %325, %cst_80 {dimension_numbers = #tpu.dot_dimension_numbers<[1], [0], [0], [1], [0, 0, 1, 1], [], []>, precision = #tpu.contract_precision<fp32>} : vector<8x64xf32>, vector<64x32xf32>, vector<8x32xf32> -> vector<8x32xf32>
    %c0_81 = arith.constant 0 : index
    %c0_82 = arith.constant 0 : index
    %327 = vector.load %arg15[%c0_81, %c0_82] : memref<1x32xf32, #tpu.memory_space<vmem>>, vector<1x32xf32>
    %328 = vector.broadcast %327 : vector<1x32xf32> to vector<8x32xf32>
    %329 = arith.addf %326, %328 : vector<8x32xf32>
    %330 = vector.extract_strided_slice %201 {offsets = [0, 64], sizes = [8, 64], strides = [1, 1]} : vector<8x128xf32> to vector<8x64xf32>
    %c0_83 = arith.constant 0 : index
    %c0_84 = arith.constant 0 : index
    %331 = vector.load %arg7[%c0_83, %c0_84] : memref<1x64xf32, #tpu.memory_space<vmem>>, vector<1x64xf32>
    %332 = vector.broadcast %331 : vector<1x64xf32> to vector<8x64xf32>
    %333 = arith.addf %330, %332 : vector<8x64xf32>
    %334 = arith.negf %333 : vector<8x64xf32>
    %335 = math.exp %334 : vector<8x64xf32>
    %cst_85 = arith.constant 1.000000e+00 : f32
    %336 = vector.broadcast %cst_85 : f32 to vector<8x64xf32>
    %337 = arith.addf %336, %335 : vector<8x64xf32>
    %338 = arith.divf %336, %337 : vector<8x64xf32>
    %339 = vector.extract_strided_slice %338 {offsets = [0, 0], sizes = [8, 32], strides = [1, 1]} : vector<8x64xf32> to vector<8x32xf32>
    %340 = vector.extract_strided_slice %338 {offsets = [0, 32], sizes = [8, 32], strides = [1, 1]} : vector<8x64xf32> to vector<8x32xf32>
    %c0_86 = arith.constant 0 : index
    %c0_87 = arith.constant 0 : index
    %341 = vector.load %arg21[%c0_86, %c0_87] : memref<4x32xf32, #tpu.memory_space<vmem>>, vector<4x32xf32>
    %cst_88 = arith.constant 1.000000e+00 : f32
    %342 = vector.broadcast %cst_88 : f32 to vector<8x32xf32>
    %343 = arith.subf %342, %339 : vector<8x32xf32>
    %344 = arith.mulf %343, %1 : vector<8x32xf32>
    %345 = arith.mulf %339, %329 : vector<8x32xf32>
    %346 = arith.addf %344, %345 : vector<8x32xf32>
    %347 = vector.extract_strided_slice %341 {offsets = [0, 0], sizes = [1, 32], strides = [1, 1]} : vector<4x32xf32> to vector<1x32xf32>
    %348 = vector.extract_strided_slice %341 {offsets = [1, 0], sizes = [1, 32], strides = [1, 1]} : vector<4x32xf32> to vector<1x32xf32>
    %cst_89 = arith.constant dense<0.000000e+00> : vector<32xf32>
    %349 = vector.multi_reduction <add>, %346, %cst_89 [0] : vector<8x32xf32> to vector<32xf32>
    %350 = vector.shape_cast %349 : vector<32xf32> to vector<1x32xf32>
    %cst_90 = arith.constant 8.000000e+00 : f32
    %351 = vector.broadcast %cst_90 : f32 to vector<1x32xf32>
    %352 = arith.divf %350, %351 : vector<1x32xf32>
    %353 = vector.broadcast %352 : vector<1x32xf32> to vector<8x32xf32>
    %354 = arith.subf %346, %353 : vector<8x32xf32>
    %355 = arith.mulf %354, %354 : vector<8x32xf32>
    %cst_91 = arith.constant dense<0.000000e+00> : vector<32xf32>
    %356 = vector.multi_reduction <add>, %355, %cst_91 [0] : vector<8x32xf32> to vector<32xf32>
    %357 = vector.shape_cast %356 : vector<32xf32> to vector<1x32xf32>
    %cst_92 = arith.constant 8.000000e+00 : f32
    %358 = vector.broadcast %cst_92 : f32 to vector<1x32xf32>
    %359 = arith.divf %357, %358 : vector<1x32xf32>
    %cst_93 = arith.constant 9.99999974E-6 : f32
    %360 = vector.broadcast %cst_93 : f32 to vector<1x32xf32>
    %361 = arith.addf %359, %360 : vector<1x32xf32>
    %362 = math.rsqrt %361 : vector<1x32xf32>
    %363 = vector.broadcast %362 : vector<1x32xf32> to vector<8x32xf32>
    %364 = arith.mulf %354, %363 : vector<8x32xf32>
    %365 = vector.broadcast %347 : vector<1x32xf32> to vector<8x32xf32>
    %366 = arith.mulf %364, %365 : vector<8x32xf32>
    %367 = vector.broadcast %348 : vector<1x32xf32> to vector<8x32xf32>
    %368 = arith.addf %366, %367 : vector<8x32xf32>
    %c0_94 = arith.constant 0 : index
    %c0_95 = arith.constant 0 : index
    %369 = vector.load %arg16[%c0_94, %c0_95] : memref<32x64xf32, #tpu.memory_space<vmem>>, vector<32x64xf32>
    %cst_96 = arith.constant dense<0.000000e+00> : vector<8x64xf32>
    %370 = tpu.matmul %368, %369, %cst_96 {dimension_numbers = #tpu.dot_dimension_numbers<[1], [0], [0], [1], [0, 0, 1, 1], [], []>, precision = #tpu.contract_precision<fp32>} : vector<8x32xf32>, vector<32x64xf32>, vector<8x64xf32> -> vector<8x64xf32>
    %c0_97 = arith.constant 0 : index
    %c0_98 = arith.constant 0 : index
    %371 = vector.load %arg17[%c0_97, %c0_98] : memref<1x64xf32, #tpu.memory_space<vmem>>, vector<1x64xf32>
    %372 = vector.broadcast %371 : vector<1x64xf32> to vector<8x64xf32>
    %373 = arith.addf %370, %372 : vector<8x64xf32>
    %cst_99 = arith.constant 0.000000e+00 : f32
    %374 = vector.broadcast %cst_99 : f32 to vector<8x64xf32>
    %375 = arith.maximumf %373, %374 : vector<8x64xf32>
    %c0_100 = arith.constant 0 : index
    %c0_101 = arith.constant 0 : index
    %376 = vector.load %arg18[%c0_100, %c0_101] : memref<64x32xf32, #tpu.memory_space<vmem>>, vector<64x32xf32>
    %cst_102 = arith.constant dense<0.000000e+00> : vector<8x32xf32>
    %377 = tpu.matmul %375, %376, %cst_102 {dimension_numbers = #tpu.dot_dimension_numbers<[1], [0], [0], [1], [0, 0, 1, 1], [], []>, precision = #tpu.contract_precision<fp32>} : vector<8x64xf32>, vector<64x32xf32>, vector<8x32xf32> -> vector<8x32xf32>
    %c0_103 = arith.constant 0 : index
    %c0_104 = arith.constant 0 : index
    %378 = vector.load %arg19[%c0_103, %c0_104] : memref<1x32xf32, #tpu.memory_space<vmem>>, vector<1x32xf32>
    %379 = vector.broadcast %378 : vector<1x32xf32> to vector<8x32xf32>
    %380 = arith.addf %377, %379 : vector<8x32xf32>
    %cst_105 = arith.constant 1.000000e+00 : f32
    %381 = vector.broadcast %cst_105 : f32 to vector<8x32xf32>
    %382 = arith.subf %381, %340 : vector<8x32xf32>
    %383 = arith.mulf %382, %368 : vector<8x32xf32>
    %384 = arith.mulf %340, %380 : vector<8x32xf32>
    %385 = arith.addf %383, %384 : vector<8x32xf32>
    %386 = vector.extract_strided_slice %341 {offsets = [2, 0], sizes = [1, 32], strides = [1, 1]} : vector<4x32xf32> to vector<1x32xf32>
    %387 = vector.extract_strided_slice %341 {offsets = [3, 0], sizes = [1, 32], strides = [1, 1]} : vector<4x32xf32> to vector<1x32xf32>
    %cst_106 = arith.constant dense<0.000000e+00> : vector<32xf32>
    %388 = vector.multi_reduction <add>, %385, %cst_106 [0] : vector<8x32xf32> to vector<32xf32>
    %389 = vector.shape_cast %388 : vector<32xf32> to vector<1x32xf32>
    %cst_107 = arith.constant 8.000000e+00 : f32
    %390 = vector.broadcast %cst_107 : f32 to vector<1x32xf32>
    %391 = arith.divf %389, %390 : vector<1x32xf32>
    %392 = vector.broadcast %391 : vector<1x32xf32> to vector<8x32xf32>
    %393 = arith.subf %385, %392 : vector<8x32xf32>
    %394 = arith.mulf %393, %393 : vector<8x32xf32>
    %cst_108 = arith.constant dense<0.000000e+00> : vector<32xf32>
    %395 = vector.multi_reduction <add>, %394, %cst_108 [0] : vector<8x32xf32> to vector<32xf32>
    %396 = vector.shape_cast %395 : vector<32xf32> to vector<1x32xf32>
    %cst_109 = arith.constant 8.000000e+00 : f32
    %397 = vector.broadcast %cst_109 : f32 to vector<1x32xf32>
    %398 = arith.divf %396, %397 : vector<1x32xf32>
    %cst_110 = arith.constant 9.99999974E-6 : f32
    %399 = vector.broadcast %cst_110 : f32 to vector<1x32xf32>
    %400 = arith.addf %398, %399 : vector<1x32xf32>
    %401 = math.rsqrt %400 : vector<1x32xf32>
    %402 = vector.broadcast %401 : vector<1x32xf32> to vector<8x32xf32>
    %403 = arith.mulf %393, %402 : vector<8x32xf32>
    %404 = vector.broadcast %386 : vector<1x32xf32> to vector<8x32xf32>
    %405 = arith.mulf %403, %404 : vector<8x32xf32>
    %406 = vector.broadcast %387 : vector<1x32xf32> to vector<8x32xf32>
    %407 = arith.addf %405, %406 : vector<8x32xf32>
    %c0_111 = arith.constant 0 : index
    %c0_112 = arith.constant 0 : index
    %408 = vector.load %arg23[%c0_111, %c0_112] : memref<8x32xf32, #tpu.memory_space<vmem>>, vector<8x32xf32>
    tpu.vector_store %arg23[%c0_111, %c0_112], %407 {strides = array<i32>} : memref<8x32xf32, #tpu.memory_space<vmem>>, vector<8x32xf32>,
    return
  }
}

</mosaic_0001>

<bundles_post_ra>
// kernel: rec_graph_transformer_layer.1
= control target key start
LH: loop header
LB: loop body
LE: loop exit
PB: predicated region body
PF: predicated region fallthrough
CT: control target
= control target key end

     0   :  { %s26441_s0 = inlined_call_operand.vmem [shape: s8[8,8], index: 0, kind: input, shape index: {}]   ;;  %s26442_s1 = inlined_call_operand.vmem [shape: f32[8,32], index: 1, kind: input, shape index: {}]   ;;  %s26443_s2 = inlined_call_operand.vmem [shape: f32[8,32], index: 2, kind: input, shape index: {}]   ;;  %s26444_s3 = inlined_call_operand.vmem [shape: f32[32,128], index: 3, kind: input, shape index: {}]   ;;  %s26445_s4 = inlined_call_operand.vmem [shape: f32[32,64], index: 4, kind: input, shape index: {}]   ;;  %s26446_s5 = inlined_call_operand.vmem [shape: f32[32,128], index: 5, kind: input, shape index: {}]   ;;  %s26447_s6 = inlined_call_operand.vmem [shape: f32[32,128], index: 6, kind: input, shape index: {}]   ;;  %s26448_s7 = inlined_call_operand.vmem [shape: f32[1,64], index: 7, kind: input, shape index: {}]   ;;  %s26449_s8 = inlined_call_operand.vmem [shape: f32[64,32], index: 8, kind: input, shape index: {}]   ;;  %s26450_s9 = inlined_call_operand.vmem [shape: f32[1,32], index: 9, kind: input, shape index: {}]   ;;  %s26451_s10 = inlined_call_operand.vmem [shape: f32[32,64], index: 10, kind: input, shape index: {}]   ;;  %s26452_s11 = inlined_call_operand.vmem [shape: f32[1,64], index: 11, kind: input, shape index: {}]   ;;  %s26453_s12 = inlined_call_operand.vmem [shape: f32[64,32], index: 12, kind: input, shape index: {}]   ;;  %s26454_s13 = inlined_call_operand.vmem [shape: f32[1,32], index: 13, kind: input, shape index: {}]   ;;  %s26455_s14 = inlined_call_operand.vmem [shape: f32[64,32], index: 14, kind: input, shape index: {}]   ;;  %s26456_s15 = inlined_call_operand.vmem [shape: f32[1,32], index: 15, kind: input, shape index: {}]   ;;  %s26457_s16 = inlined_call_operand.vmem [shape: f32[32,64], index: 16, kind: input, shape index: {}]   ;;  %s26458_s17 = inlined_call_operand.vmem [shape: f32[1,64], index: 17, kind: input, shape index: {}]   ;;  %s26459_s18 = inlined_call_operand.vmem [shape: f32[64,32], index: 18, kind: input, shape index: {}]   ;;  %s26460_s19 = inlined_call_operand.vmem [shape: f32[1,32], index: 19, kind: input, shape index: {}]   ;;  %s26461_s20 = inlined_call_operand.vmem [shape: f32[4,32], index: 20, kind: input, shape index: {}]   ;;  %s26462_s21 = inlined_call_operand.vmem [shape: f32[4,32], index: 21, kind: input, shape index: {}]   ;;  %s26463_s22 = inlined_call_operand.hbm [shape: f32[8,32], index: 22, kind: output, shape index: {0}]   ;;  %s26464_s23 = inlined_call_operand.hbm [shape: f32[8,32], index: 23, kind: output, shape index: {1}]  }
   0x1   :  { %26483 = sst [smem:[#allocation8_spill]] %s26441_s0 }
   0x2   :  { %26484 = sst [smem:[#allocation9_spill]] %s26442_s1 }
   0x3   :  { %26485 = sst [smem:[#allocation10_spill]] %s26443_s2 }
   0x4   :  { %26486 = sst [smem:[#allocation11_spill]] %s26444_s3 }
   0x5   :  { %26487 = sst [smem:[#allocation12_spill]] %s26445_s4 }
   0x6   :  { %26488 = sst [smem:[#allocation13_spill]] %s26446_s5 }
   0x7   :  { %26489 = sst [smem:[#allocation14_spill]] %s26447_s6 }
   0x8   :  { %26490 = sst [smem:[#allocation15_spill]] %s26448_s7 }
   0x9   :  { %29 = vsyncpa [#allocation3], 0  ;;  %s26491_s24 = sld [smem:[#allocation11_spill]]  ;;  %v23944_v3 = vmov 0.0|0.0   ;;  %vm23945_vm0 = vmmov 0   ;;  %v23946_v8 = vmov 0.0  }
   0xa   :  { %22895 = vmatprep.subr.bf16.mxu0 %v23944_v3  ;;  %21091 = vmatprep.mubr.msk.f32.mxu0 %vm23945_vm0, %v23946_v8  ;;  %s26492_s28 = sld [smem:[#allocation9_spill]]  ;;  %vm85_vm1 = vcmask 261120   ;;  %s26493_s0 = sld [smem:[#allocation12_spill]] }
   0xb   :  { %22931 = vmatprep.subr.bf16.mxu1 %v23944_v3  ;;  %21157 = vmatprep.mubr.msk.f32.mxu1 %vm23945_vm0, %v23946_v8 }
   0xf   :  { %v81_v0 = vld [vmem:[%s26491_s24] sm:$0xff]  ;;  %v82_v1 = vld [vmem:[%s26491_s24 + $0x8] sm:$0xff]  ;;  %v83_v2 = vld [vmem:[%s26491_s24 + $0x10] sm:$0xff] }
  0x10   :  { %v90_v4 = vand.u32 4294901760, %v81_v0  ;;  %v93_v5 = vand.u32 4294901760, %v82_v1  ;;  %v84_v6 = vld [vmem:[%s26491_s24 + $0x18] sm:$0xff]  ;;  %v96_v7 = vand.u32 4294901760, %v83_v2  ;;  %v77_v9 = vld [vmem:[%s26492_s28] sm:$0xff]  ;;  %v575_v17 = vld [vmem:[%s26493_s0 + $0x8] sm:$0xff] }
  0x11   :  { %v99_v10 = vand.u32 4294901760, %v84_v6  ;;  %v87_v11 = vsel %vm85_vm1, %v77_v9, 0  ;;  %v574_v12 = vld [vmem:[%s26493_s0] sm:$0xff] }
  0x12   :  { %v24104_v13 = vpack.c.bf16 %v93_v5, %v90_v4  ;;  %v24106_v14 = vsub.f32 %v81_v0, %v90_v4  ;;  %v24108_v15 = vsub.f32 %v82_v1, %v93_v5  ;;  %v24110_v16 = vsub.f32 %v83_v2, %v96_v7 }
  0x13   :  { %30 = vsyncpa [#allocation5], 0  ;;  %v24115_v18 = vsub.f32 %v84_v6, %v99_v10  ;;  %v24117_v19 = vand.u32 4294901760, %v87_v11  ;;  %v582_v20 = vand.u32 4294901760, %v574_v12  ;;  %v24120_v21 = vpack.c.bf16 %v99_v10, %v96_v7  ;;  %v576_v31 = vld [vmem:[%s26493_s0 + $0x10] sm:$0xff]  ;;  %v577_v35 = vld [vmem:[%s26493_s0 + $0x18] sm:$0xff] }
  0x14   :  { %22897 = vmatpush3.bf16.msra.mxu0 %v24104_v13  ;;  %v171_v22 = vand.u32 4294901760, %v24106_v14  ;;  %v178_v23 = vand.u32 4294901760, %v24108_v15  ;;  %v185_v24 = vand.u32 4294901760, %v24110_v16  ;;  %v585_v27 = vand.u32 4294901760, %v575_v17  ;;  %s26494_s6 = sld [smem:[#allocation10_spill]]  ;;  %s26481_s27 = smov 104  }
  0x15   :  { %22898 = vmatprep.subr.bf16.mxu0 %v23944_v3  ;;  %v24127_v25 = vsub.f32 %v87_v11, %v24117_v19  ;;  %v192_v26 = vand.u32 4294901760, %v24115_v18  ;;  %v24157_v40 = vsub.f32 %v574_v12, %v582_v20  ;;  %v588_v44 = vand.u32 4294901760, %v576_v31  ;;  %s23948_s7 = smov 120   ;;  %s26473_s29 = smov 64  }
  0x16   :  { %v172_v28 = vsub.f32 %v24106_v14, %v171_v22  ;;  %v179_v29 = vsub.f32 %v24108_v15, %v178_v23  ;;  %v186_v30 = vsub.f32 %v24110_v16, %v185_v24  ;;  %v24148_v34 = vpack.c.bf16 %v585_v27, %v582_v20  ;;  %s23950_s3 = smov 112   ;;  %s23951_s0 = smov 32  }
  0x17   :  { %v24143_v32 = vand.u32 4294901760, %v24127_v25  ;;  %v193_v33 = vsub.f32 %v24115_v18, %v192_v26  ;;  %v24163_v43 = vsub.f32 %v575_v17, %v585_v27  ;;  %v591_v46 = vand.u32 4294901760, %v577_v35  ;;  %s26471_s4 = smov 96   ;;  %s26495_s25 = sld [smem:[#allocation8_spill]] }
  0x18   :  { %22900 = vmatpush3.bf16.msra.mxu0 %v24120_v21  ;;  %v173_v37 = vand.u32 4294901760, %v172_v28  ;;  %v180_v38 = vand.u32 4294901760, %v179_v29  ;;  %v187_v39 = vand.u32 4294901760, %v186_v30  ;;  %22933 = vmatpush3.bf16.msra.mxu1 %v24148_v34  ;;  %v663_v48 = vand.u32 4294901760, %v24157_v40  ;;  %s26475_s5 = smov 8   ;;  %s26477_s1 = smov 16  }
  0x19   :  { %v161_v41 = vsub.f32 %v24127_v25, %v24143_v32  ;;  %22901 = vmatprep.subr.bf16.mxu0 %v23944_v3  ;;  %v194_v42 = vand.u32 4294901760, %v193_v33  ;;  %22934 = vmatprep.subr.bf16.mxu1 %v23944_v3  ;;  %v24170_v50 = vsub.f32 %v576_v31, %v588_v44  ;;  %v24174_v52 = vpack.c.bf16 %v591_v46, %v588_v44  ;;  %s26479_s26 = smov 24   ;;  %s26502_s2 = smov 96  }
  0x1a   :  { %v78_v36 = vld [vmem:[%s26494_s6] sm:$0xff]  ;;  %v22902_v45 = vpack.c.bf16 %v180_v38, %v173_v37  ;;  %v24176_v53 = vsub.f32 %v577_v35, %v591_v46  ;;  %v664_v54 = vsub.f32 %v24157_v40, %v663_v48  ;;  %v670_v55 = vand.u32 4294901760, %v24163_v43 }
  0x1b   :  { %v579_v47 = vsel %vm85_vm1, %v78_v36, 0  ;;  %v24168_v49 = vand.u32 4294901760, %v161_v41  ;;  %v677_v57 = vand.u32 4294901760, %v24170_v50  ;;  %v22905_v58 = vpack.c.bf16 %v194_v42, %v187_v39 }
  0x1c   :  { %v24172_v51 = vand.u32 4294901760, %v579_v47  ;;  %v671_v59 = vsub.f32 %v24163_v43, %v670_v55  ;;  %v684_v60 = vand.u32 4294901760, %v24176_v53  ;;  %22936 = vmatpush3.bf16.msra.mxu1 %v24174_v52  ;;  %v665_v62 = vand.u32 4294901760, %v664_v54 }
  0x1d   :  { %21092 = vmatmul.mubr.f32.vlgmr.msra.gmra.mrb[0].mxu0 %v24168_v49  ;;  %v678_v63 = vsub.f32 %v24170_v50, %v677_v57  ;;  %22937 = vmatprep.subr.bf16.mxu1 %v23944_v3  ;;  %v22908_v4 = vpack.c.bf16 %v24108_v15, %v24106_v14  ;;  %v22911_v10 = vpack.c.bf16 %v24115_v18, %v24110_v16  ;;  %vm1075_vm2 = vcmask 64512  }
  0x1e   :  { %v24184_v56 = vsub.f32 %v579_v47, %v24172_v51  ;;  %22903 = vmatpush3.bf16.msra.mxu0 %v22902_v45  ;;  %21102 = vmatprep.mubr.msk.f32.mxu0 %vm23945_vm0, %v23946_v8  ;;  %v672_v0 = vand.u32 4294901760, %v671_v59  ;;  %v685_v1 = vsub.f32 %v24176_v53, %v684_v60  ;;  %v22944_v12 = vpack.c.bf16 %v24163_v43, %v24157_v40 }
  0x1f   :  { %22904 = vmatprep.subr.bf16.mxu0 %v23944_v3  ;;  %v679_v7 = vand.u32 4294901760, %v678_v63  ;;  %v22947_v17 = vpack.c.bf16 %v24176_v53, %v24170_v50  ;;  %v22920_v20 = vpack.c.bf16 %v178_v23, %v171_v22  ;;  %v22923_v27 = vpack.c.bf16 %v192_v26, %v185_v24 }
  0x20   :  { %v24196_v61 = vand.u32 4294901760, %v24184_v56  ;;  %v22938_v6 = vpack.c.bf16 %v672_v0, %v665_v62  ;;  %v686_v9 = vand.u32 4294901760, %v685_v1  ;;  %v22956_v14 = vpack.c.bf16 %v670_v55, %v663_v48 }
  0x21   :  { %v22959_v15 = vpack.c.bf16 %v684_v60, %v677_v57  ;;  %vm4764_vm5 = vcmask 130048   ;;  %vm4766_vm6 = vcmask 195584   ;;  %vm8482_vm7 = vcmask 523264  }
  0x22   :  { %v653_v2 = vsub.f32 %v24184_v56, %v24196_v61  ;;  %22906 = vmatpush3.bf16.msra.mxu0 %v22905_v58  ;;  %v22941_v11 = vpack.c.bf16 %v686_v9, %v679_v7  ;;  %vm19099_vm8 = vcmask 785920   ;;  %vm20206_vm9 = vcmask 1048320  }
  0x23   :  { %22907 = vmatprep.subr.bf16.mxu0 %v23944_v3 }
  0x24   :  { %v24210_v5 = vand.u32 4294901760, %v653_v2 }
  0x25   :  { %21103 = vmatmul.mubr.f32.vlgmr.msra.gmra.mrb[0].mxu0 %v24117_v19 }
  0x26   :  { %21158 = vmatmul.mubr.f32.vlgmr.msra.gmra.mrb[0].mxu1 %v24210_v5  ;;  %22909 = vmatpush3.bf16.msra.mxu0 %v22908_v4 }
  0x27   :  { %21113 = vmatprep.mubr.msk.f32.mxu0 %vm23945_vm0, %v23946_v8  ;;  %22910 = vmatprep.subr.bf16.mxu0 %v23944_v3 }
  0x28   :  { %22939 = vmatpush3.bf16.msra.mxu1 %v22938_v6  ;;  %21168 = vmatprep.mubr.msk.f32.mxu1 %vm23945_vm0, %v23946_v8 }
  0x29   :  { %22940 = vmatprep.subr.bf16.mxu1 %v23944_v3 }
  0x2a   :  { %22912 = vmatpush3.bf16.msra.mxu0 %v22911_v10 }
  0x2b   :  { %22913 = vmatprep.subr.bf16.mxu0 %v23944_v3 }
  0x2c   :  { %22942 = vmatpush3.bf16.msra.mxu1 %v22941_v11 }
  0x2d   :  { %22943 = vmatprep.subr.bf16.mxu1 %v23944_v3  ;;  %21114 = vmatmul.mubr.f32.vlgmr.msra.gmra.mrb[0].mxu0 %v24127_v25 }
  0x2e   :  { %22915 = vmatpush3.bf16.msra.mxu0 %v24104_v13  ;;  %21124 = vmatprep.mubr.msk.f32.mxu0 %vm23945_vm0, %v23946_v8 }
  0x2f   :  { %22916 = vmatprep.subr.bf16.mxu0 %v23944_v3  ;;  %21169 = vmatmul.mubr.f32.vlgmr.msra.gmra.mrb[0].mxu1 %v24172_v51 }
  0x30   :  { %22945 = vmatpush3.bf16.msra.mxu1 %v22944_v12  ;;  %21179 = vmatprep.mubr.msk.f32.mxu1 %vm23945_vm0, %v23946_v8 }
  0x31   :  { %22946 = vmatprep.subr.bf16.mxu1 %v23944_v3 }
  0x32   :  { %22918 = vmatpush3.bf16.msra.mxu0 %v24120_v21 }
  0x33   :  { %22919 = vmatprep.subr.bf16.mxu0 %v23944_v3 }
  0x34   :  { %22948 = vmatpush3.bf16.msra.mxu1 %v22947_v17 }
  0x35   :  { %21125 = vmatmul.mubr.f32.vlgmr.msra.gmra.mrb[0].mxu0 %v24143_v32  ;;  %22949 = vmatprep.subr.bf16.mxu1 %v23944_v3 }
  0x36   :  { %22921 = vmatpush3.bf16.msra.mxu0 %v22920_v20  ;;  %21135 = vmatprep.mubr.msk.f32.mxu0 %vm23945_vm0, %v23946_v8 }
  0x37   :  { %22922 = vmatprep.subr.bf16.mxu0 %v23944_v3  ;;  %21180 = vmatmul.mubr.f32.vlgmr.msra.gmra.mrb[0].mxu1 %v24184_v56 }
  0x38   :  { %22951 = vmatpush3.bf16.msra.mxu1 %v24148_v34  ;;  %21190 = vmatprep.mubr.msk.f32.mxu1 %vm23945_vm0, %v23946_v8 }
  0x39   :  { %22952 = vmatprep.subr.bf16.mxu1 %v23944_v3 }
  0x3a   :  { %22924 = vmatpush3.bf16.msra.mxu0 %v22923_v27 }
  0x3b   :  { %22925 = vmatprep.subr.bf16.mxu0 %v23944_v3 }
  0x3c   :  { %22954 = vmatpush3.bf16.msra.mxu1 %v24174_v52 }
  0x3d   :  { %21136 = vmatmul.mubr.f32.vlgmr.msra.gmra.mrb[0].mxu0 %v24117_v19  ;;  %22955 = vmatprep.subr.bf16.mxu1 %v23944_v3 }
  0x3e   :  { %22927 = vmatpush3.bf16.msra.mxu0 %v24104_v13  ;;  %21146 = vmatprep.mubr.msk.f32.mxu0 %vm23945_vm0, %v23946_v8 }
  0x3f   :  { %22928 = vmatprep.subr.bf16.mxu0 %v23944_v3  ;;  %21191 = vmatmul.mubr.f32.vlgmr.msra.gmra.mrb[0].mxu1 %v24196_v61 }
  0x40   :  { %22957 = vmatpush3.bf16.msra.mxu1 %v22956_v14  ;;  %21201 = vmatprep.mubr.msk.f32.mxu1 %vm23945_vm0, %v23946_v8 }
  0x41   :  { %22958 = vmatprep.subr.bf16.mxu1 %v23944_v3 }
  0x42   :  { %22930 = vmatpush3.bf16.msra.mxu0 %v24120_v21 }
  0x43   :  { %21215 = vmatprep.subr.mxu0 %v23946_v8 }
  0x44   :  { %22960 = vmatpush3.bf16.msra.mxu1 %v22959_v15 }
  0x45   :  { %21147 = vmatmul.mubr.f32.vlgmr.msra.gmra.mrb[0].mxu0 %v24117_v19  ;;  %22961 = vmatprep.subr.bf16.mxu1 %v23944_v3 }
  0x46   :  { %21217 = vmatprep.mubr.msk.f32.mxu0 %vm23945_vm0, %v23946_v8 }
  0x47   :  { %21202 = vmatmul.mubr.f32.vlgmr.msra.gmra.mrb[0].mxu1 %v24172_v51 }
  0x48   :  { %22963 = vmatpush3.bf16.msra.mxu1 %v24148_v34  ;;  %21212 = vmatprep.mubr.msk.f32.mxu1 %vm23945_vm0, %v23946_v8 }
  0x49   :  { %22964 = vmatprep.subr.bf16.mxu1 %v23944_v3 }
  0x4c   :  { %22966 = vmatpush3.bf16.msra.mxu1 %v24174_v52 }
  0x4d   :  { %21245 = vmatprep.subr.mxu1 %v23946_v8 }
  0x4f   :  { %21213 = vmatmul.mubr.f32.vlgmr.msra.gmra.mrb[0].mxu1 %v24172_v51 }
  0x50   :  { %21247 = vmatprep.mubr.msk.f32.mxu1 %vm23945_vm0, %v23946_v8 }
 0x118   :  { %v570_v13 = vpop.f32.mrb[0].mxu0 }
 0x119   :  { %1071 = vrot.lane.b32.xlu1 %v570_v13, %s26481_s27  ;;  %1067 = vrot.lane.b32.xlu0 %v570_v13, %s23948_s7  ;;  %v21148_v16 = vpop.f32.mrb[1].mxu0  ;;  %v1076_v22 = vsel %vm1075_vm2, %v570_v13, 0 }
 0x11a   :  { %v1146_v23 = vand.u32 4294901760, %v1076_v22 }
 0x11c   :  { %v1147_v24 = vsub.f32 %v1076_v22, %v1146_v23 }
 0x11d   :  { %1073 = vrot.lane.b32.xlu1 %v570_v13, %s26473_s29  ;;  %1069 = vrot.lane.b32.xlu0 %v570_v13, %s23950_s3 }
 0x11e   :  { %v1148_v29 = vand.u32 4294901760, %v1147_v24 }
 0x120   :  { %v1149_v34 = vsub.f32 %v1147_v24, %v1148_v29 }
 0x122   :  { %v24297_v18 = vpop.f32.mrb[0].mxu1  ;;  %v1150_v37 = vand.u32 4294901760, %v1149_v34 }
 0x123   :  { %v21214_v21 = vpop.f32.mrb[1].mxu1 }
 0x18b   :  { %v24300_v26 = vpop.permute.xlu1 %1071  ;;  %v1068_v28 = vpop.permute.xlu0 %1067 }
 0x18c   :  { %1526 = vrot.lane.b32.xlu0 %v1068_v28, %s26473_s29  ;;  %v1528_v41 = vsel %vm1075_vm2, %v1068_v28, 0  ;;  %v2432_v27 = vsel %vm1075_vm2, %v24300_v26, 0 }
 0x18d   :  { %v24344_v42 = vand.u32 4294901760, %v1528_v41  ;;  %v2502_v15 = vand.u32 4294901760, %v2432_v27 }
 0x18f   :  { %v1074_v30 = vpop.permute.xlu1 %1073  ;;  %v1070_v31 = vpop.permute.xlu0 %1069  ;;  %v1599_v44 = vsub.f32 %v1528_v41, %v24344_v42  ;;  %v2503_v16 = vsub.f32 %v2432_v27, %v2502_v15 }
 0x190   :  { %v1078_v33 = vsel %vm1075_vm2, %v1074_v30, 0  ;;  %2430 = vrot.lane.b32.xlu0 %v24300_v26, %s26473_s29  ;;  %1978 = vrot.lane.b32.xlu1 %v1070_v31, %s26473_s29  ;;  %v1980_v43 = vsel %vm1075_vm2, %v1070_v31, 0 }
 0x191   :  { %v1081_v35 = vand.u32 4294901760, %v1078_v33  ;;  %v24348_v45 = vand.u32 4294901760, %v1980_v43  ;;  %v1600_v47 = vand.u32 4294901760, %v1599_v44  ;;  %v2504_v22 = vand.u32 4294901760, %v2503_v16 }
 0x193   :  { %v1158_v36 = vsub.f32 %v1078_v33, %v1081_v35  ;;  %21216 = vmatpush3.xpose.msra.mxu0 %v1081_v35  ;;  %v24351_v46 = vsub.f32 %v1980_v43, %v24348_v45  ;;  %v1601_v52 = vsub.f32 %v1599_v44, %v1600_v47 }
 0x194   :  { %3359 = vrot.lane.b32.xlu0 %v1068_v28, %s23951_s0  ;;  %2907 = vrot.lane.b32.xlu1 %v570_v13, %s23951_s0 }
 0x195   :  { %v1159_v38 = vand.u32 4294901760, %v1158_v36  ;;  %21220 = vmatprep.subr.mxu0 %v23946_v8  ;;  %v2052_v53 = vand.u32 4294901760, %v24351_v46  ;;  %v1602_v59 = vand.u32 4294901760, %v1601_v52 }
 0x196   :  { %21218 = vmatmul.mubr.f32.vlgmr.msra.gmra.mrb[2].mxu0 %v1150_v37 }
 0x197   :  { %v1160_v39 = vsub.f32 %v1158_v36, %v1159_v38  ;;  %21222 = vmatprep.mubr.msk.f32.mxu0 %vm23945_vm0, %v23946_v8  ;;  %v2053_v60 = vsub.f32 %v24351_v46, %v2052_v53 }
 0x198   :  { %4263 = vrot.lane.b32.xlu0 %v24300_v26, %s23951_s0  ;;  %3811 = vrot.lane.b32.xlu1 %v1070_v31, %s23951_s0 }
 0x199   :  { %v1161_v40 = vand.u32 4294901760, %v1160_v39  ;;  %v2054_v4 = vand.u32 4294901760, %v2053_v60 }
 0x19b   :  { %21221 = vmatpush3.xpose.msra.mxu0 %v1161_v40 }
 0x19c   :  { %5227 = vrot.lane.b32.xlu0 %v1068_v28, %s26471_s4  ;;  %4775 = vrot.lane.b32.xlu1 %v570_v13, %s26471_s4 }
 0x19d   :  { %21225 = vmatprep.subr.mxu0 %v23946_v8 }
 0x19e   :  { %21223 = vmatmul.mubr.f32.vlgmr.msra.gmra.mrb[2].mxu0 %v1146_v23 }
 0x19f   :  { %21226 = vmatpush3.xpose.msra.mxu0 %v1158_v36  ;;  %21227 = vmatprep.mubr.msk.f32.mxu0 %vm23945_vm0, %v23946_v8 }
 0x1a0   :  { %5679 = vrot.lane.b32.xlu0 %v1070_v31, %s26471_s4  ;;  %4769 = vrot.lane.b32.xlu1 %v24297_v18, %s23948_s7 }
 0x1a1   :  { %21230 = vmatprep.subr.mxu0 %v23946_v8 }
 0x1a4   :  { %6131 = vrot.lane.b32.xlu1 %v24300_v26, %s26471_s4  ;;  %4771 = vrot.lane.b32.xlu0 %v24297_v18, %s23950_s3 }
 0x1a6   :  { %21228 = vmatmul.mubr.f32.vlgmr.msra.gmra.mrb[2].mxu0 %v1147_v24  ;;  %v2505_v24 = vsub.f32 %v2503_v16, %v2504_v22 }
 0x1a7   :  { %21231 = vmatpush3.xpose.msra.mxu0 %v1081_v35  ;;  %21232 = vmatprep.mubr.msk.f32.mxu0 %vm23945_vm0, %v23946_v8 }
 0x1a8   :  { %21235 = vmatprep.subr.mxu0 %v23946_v8  ;;  %6603 = vrot.lane.b32.xlu0 %v24297_v18, %s26471_s4  ;;  %v2506_v28 = vand.u32 4294901760, %v2505_v24 }
 0x1a9   :  { %4773 = vrot.lane.b32.xlu1 %v24297_v18, %s26481_s27 }
 0x1ae   :  { %21233 = vmatmul.mubr.f32.vlgmr.msra.gmra.mrb[2].mxu0 %v1148_v29 }
 0x1af   :  { %21236 = vmatpush3.xpose.msra.mxu0 %v1159_v38  ;;  %21237 = vmatprep.mubr.msk.f32.mxu0 %vm23945_vm0, %v23946_v8  ;;  %v79_v38 = vld [vmem:[%s26495_s25] sm:$0x3]  ;;  %s26501_s25 = smov 64  }
 0x1b0   :  { %21240 = vmatprep.subr.mxu0 %v23946_v8  ;;  %vm80_vm3 = vnez %v79_v38 }
 0x1b6   :  { %21238 = vmatmul.mubr.f32.vlgmr.msra.gmra.mrb[2].mxu0 %v1146_v23 }
 0x1b7   :  { %21241 = vmatpush3.xpose.msra.mxu0 %v1081_v35  ;;  %21242 = vmatprep.mubr.msk.f32.mxu0 %vm23945_vm0, %v23946_v8 }
 0x1b8   :  { %21275 = vmatprep.subr.mxu0 %v23946_v8 }
 0x1be   :  { %21243 = vmatmul.mubr.f32.vlgmr.msra.gmra.mrb[2].mxu0 %v1146_v23 }
 0x1bf   :  { %21277 = vmatprep.mubr.msk.f32.mxu0 %vm23945_vm0, %v23946_v8 }
 0x1fe   :  { %v1527_v48 = vpop.permute.xlu0 %1526 }
 0x1ff   :  { %v1530_v50 = vsel %vm1075_vm2, %v1527_v48, 0 }
 0x200   :  { %v24355_v54 = vand.u32 4294901760, %v1530_v50 }
 0x202   :  { %v1610_v55 = vsub.f32 %v1530_v50, %v24355_v54  ;;  %v1979_v57 = vpop.permute.xlu1 %1978  ;;  %21246 = vmatpush3.xpose.msra.mxu1 %v24355_v54  ;;  %v2431_v20 = vpop.permute.xlu0 %2430 }
 0x203   :  { %v1982_v58 = vsel %vm1075_vm2, %v1979_v57, 0  ;;  %21250 = vmatprep.subr.mxu1 %v23946_v8  ;;  %v2434_v14 = vsel %vm1075_vm2, %v2431_v20, 0 }
 0x204   :  { %v1611_v62 = vand.u32 4294901760, %v1610_v55  ;;  %v1985_v63 = vand.u32 4294901760, %v1982_v58  ;;  %v2437_v13 = vand.u32 4294901760, %v2434_v14 }
 0x205   :  { %21248 = vmatmul.mubr.f32.vlgmr.msra.gmra.mrb[2].mxu1 %v1602_v59 }
 0x206   :  { %v1612_v0 = vsub.f32 %v1610_v55, %v1611_v62  ;;  %v2062_v1 = vsub.f32 %v1982_v58, %v1985_v63  ;;  %v24362_v2 = vpop.permute.xlu1 %2907  ;;  %21276 = vmatpush3.xpose.msra.mxu0 %v1985_v63  ;;  %21252 = vmatprep.mubr.msk.f32.mxu1 %vm23945_vm0, %v23946_v8  ;;  %v2514_v21 = vsub.f32 %v2434_v14, %v2437_v13  ;;  %v24440_v31 = vpop.permute.xlu0 %3359 }
 0x207   :  { %21280 = vmatprep.subr.mxu0 %v23946_v8  ;;  %v24418_v30 = vand.u32 4294901760, %v24362_v2  ;;  %v24443_v33 = vand.u32 4294901760, %v24440_v31 }
 0x208   :  { %v1613_v6 = vand.u32 4294901760, %v1612_v0  ;;  %v2063_v7 = vand.u32 4294901760, %v2062_v1  ;;  %v2515_v23 = vand.u32 4294901760, %v2514_v21 }
 0x209   :  { %21278 = vmatmul.mubr.f32.vlgmr.msra.gmra.mrb[4].mxu0 %v2054_v4  ;;  %v2991_v52 = vsub.f32 %v24362_v2, %v24418_v30 }
 0x20a   :  { %v2064_v9 = vsub.f32 %v2062_v1, %v2063_v7  ;;  %v24367_v10 = vpop.permute.xlu1 %3811  ;;  %21251 = vmatpush3.xpose.msra.mxu1 %v1613_v6  ;;  %21282 = vmatprep.mubr.msk.f32.mxu0 %vm23945_vm0, %v23946_v8  ;;  %v2516_v26 = vsub.f32 %v2514_v21, %v2515_v23  ;;  %v24449_v34 = vpop.permute.xlu0 %4263 }
 0x20b   :  { %21255 = vmatprep.subr.mxu1 %v23946_v8  ;;  %v2992_v57 = vand.u32 4294901760, %v2991_v52 }
 0x20c   :  { %v2065_v11 = vand.u32 4294901760, %v2064_v9  ;;  %v2517_v29 = vand.u32 4294901760, %v2516_v26 }
 0x20d   :  { %21253 = vmatmul.mubr.f32.vlgmr.msra.gmra.mrb[2].mxu1 %v24344_v42  ;;  %v2993_v60 = vsub.f32 %v2991_v52, %v2992_v57 }
 0x20e   :  { %v24373_v12 = vpop.permute.xlu1 %4775  ;;  %21256 = vmatpush3.xpose.msra.mxu1 %v1610_v55  ;;  %21281 = vmatpush3.xpose.msra.mxu0 %v2065_v11  ;;  %v24451_v35 = vpop.permute.xlu0 %5227 }
 0x20f   :  { %21285 = vmatprep.subr.mxu0 %v23946_v8  ;;  %21257 = vmatprep.mubr.msk.f32.mxu1 %vm23945_vm0, %v23946_v8  ;;  %v2994_v0 = vand.u32 4294901760, %v2993_v60  ;;  %v4777_v60 = vsel %vm1075_vm2, %v24373_v12, 0 }
 0x210   :  { %21260 = vmatprep.subr.mxu1 %v23946_v8 }
 0x211   :  { %21283 = vmatmul.mubr.f32.vlgmr.msra.gmra.mrb[4].mxu0 %v24348_v45 }
 0x212   :  { %v24380_v17 = vpop.permute.xlu1 %4769  ;;  %21286 = vmatpush3.xpose.msra.mxu0 %v2062_v1  ;;  %21287 = vmatprep.mubr.msk.f32.mxu0 %vm23945_vm0, %v23946_v8  ;;  %v24453_v36 = vpop.permute.xlu0 %5679  ;;  %v24498_v1 = vand.u32 4294901760, %v24367_v10 }
 0x213   :  { %21290 = vmatprep.subr.mxu0 %v23946_v8  ;;  %7055 = vrot.lane.b32.xlu1 %v24380_v17, %s26471_s4 }
 0x214   :  { %v3895_v24 = vsub.f32 %v24367_v10, %v24498_v1 }
 0x215   :  { %21258 = vmatmul.mubr.f32.vlgmr.msra.gmra.mrb[2].mxu1 %v1599_v44 }
 0x216   :  { %21261 = vmatpush3.xpose.msra.mxu1 %v24355_v54  ;;  %21262 = vmatprep.mubr.msk.f32.mxu1 %vm23945_vm0, %v23946_v8  ;;  %v24455_v37 = vpop.permute.xlu1 %6131  ;;  %v24460_v43 = vpop.permute.xlu0 %4771 }
 0x217   :  { %21265 = vmatprep.subr.mxu1 %v23946_v8  ;;  %7507 = vrot.lane.b32.xlu0 %v24460_v43, %s26471_s4 }
 0x219   :  { %21288 = vmatmul.mubr.f32.vlgmr.msra.gmra.mrb[4].mxu0 %v24351_v46 }
 0x21a   :  { %21291 = vmatpush3.xpose.msra.mxu0 %v1985_v63  ;;  %21292 = vmatprep.mubr.msk.f32.mxu0 %vm23945_vm0, %v23946_v8 }
 0x21b   :  { %21295 = vmatprep.subr.mxu0 %v23946_v8  ;;  %v24462_v44 = vpop.permute.xlu1 %4773 }
 0x21c   :  { %7959 = vrot.lane.b32.xlu1 %v24462_v44, %s26471_s4 }
 0x21d   :  { %21263 = vmatmul.mubr.f32.vlgmr.msra.gmra.mrb[2].mxu1 %v1600_v47 }
 0x21e   :  { %21266 = vmatpush3.xpose.msra.mxu1 %v1611_v62  ;;  %21267 = vmatprep.mubr.msk.f32.mxu1 %vm23945_vm0, %v23946_v8 }
 0x21f   :  { %21270 = vmatprep.subr.mxu1 %v23946_v8 }
 0x221   :  { %21293 = vmatmul.mubr.f32.vlgmr.msra.gmra.mrb[4].mxu0 %v2052_v53 }
 0x222   :  { %21296 = vmatpush3.xpose.msra.mxu0 %v2063_v7  ;;  %21297 = vmatprep.mubr.msk.f32.mxu0 %vm23945_vm0, %v23946_v8 }
 0x223   :  { %21300 = vmatprep.subr.mxu0 %v23946_v8 }
 0x225   :  { %21268 = vmatmul.mubr.f32.vlgmr.msra.gmra.mrb[2].mxu1 %v24344_v42 }
 0x226   :  { %21271 = vmatpush3.xpose.msra.mxu1 %v24355_v54  ;;  %21272 = vmatprep.mubr.msk.f32.mxu1 %vm23945_vm0, %v23946_v8 }
 0x227   :  { %21305 = vmatprep.subr.mxu1 %v23946_v8 }
 0x229   :  { %21298 = vmatmul.mubr.f32.vlgmr.msra.gmra.mrb[4].mxu0 %v24348_v45 }
 0x22a   :  { %21301 = vmatpush3.xpose.msra.mxu0 %v1985_v63  ;;  %21302 = vmatprep.mubr.msk.f32.mxu0 %vm23945_vm0, %v23946_v8 }
 0x22b   :  { %21335 = vmatprep.subr.mxu0 %v23946_v8 }
 0x22d   :  { %21273 = vmatmul.mubr.f32.vlgmr.msra.gmra.mrb[2].mxu1 %v24344_v42 }
 0x22e   :  { %21306 = vmatpush3.xpose.msra.mxu1 %v2437_v13  ;;  %21307 = vmatprep.mubr.msk.f32.mxu1 %vm23945_vm0, %v23946_v8 }
 0x22f   :  { %21310 = vmatprep.subr.mxu1 %v23946_v8 }
 0x231   :  { %21303 = vmatmul.mubr.f32.vlgmr.msra.gmra.mrb[4].mxu0 %v24348_v45  ;;  %21308 = vmatmul.mubr.f32.vlgmr.msra.gmra.mrb[4].mxu1 %v2506_v28  ;;  %v23953_v45 = vmov 0  }
 0x232   :  { %21311 = vmatpush3.xpose.msra.mxu1 %v2517_v29  ;;  %21336 = vmatpush3.msra.mxu0 %v24418_v30  ;;  %v2898_v46 = vsel %vm80_vm3, 16843009, %v23953_v45 }
 0x233   :  { %21312 = vmatprep.mubr.msk.f32.mxu1 %vm23945_vm0, %v23946_v8  ;;  %21315 = vmatprep.subr.mxu1 %v23946_v8  ;;  %v2899_v47 = vunpack.c.0.s8 %v2898_v46 }
 0x234   :  { %21337 = vmatprep.mubr.msk.f32.mxu0 %vm23945_vm0, %v23946_v8  ;;  %21340 = vmatprep.subr.mxu0 %v23946_v8 }
 0x235   :  { %vm24468_vm4 = vcmp.ne.s32.totalorder %v2899_v47, 0 }
 0x239   :  { %21313 = vmatmul.mubr.f32.vlgmr.msra.gmra.mrb[4].mxu1 %v2502_v15 }
 0x23a   :  { %21316 = vmatpush3.xpose.msra.mxu1 %v2514_v21  ;;  %21317 = vmatprep.mubr.msk.f32.mxu1 %vm23945_vm0, %v23946_v8 }
 0x23b   :  { %21320 = vmatprep.subr.mxu1 %v23946_v8 }
 0x241   :  { %21318 = vmatmul.mubr.f32.vlgmr.msra.gmra.mrb[4].mxu1 %v2503_v16 }
 0x242   :  { %21321 = vmatpush3.xpose.msra.mxu1 %v2437_v13  ;;  %21322 = vmatprep.mubr.msk.f32.mxu1 %vm23945_vm0, %v23946_v8 }
 0x243   :  { %21325 = vmatprep.subr.mxu1 %v23946_v8 }
 0x249   :  { %21323 = vmatmul.mubr.f32.vlgmr.msra.gmra.mrb[4].mxu1 %v2504_v22 }
 0x24a   :  { %21326 = vmatpush3.xpose.msra.mxu1 %v2515_v23  ;;  %21327 = vmatprep.mubr.msk.f32.mxu1 %vm23945_vm0, %v23946_v8 }
 0x24b   :  { %21330 = vmatprep.subr.mxu1 %v23946_v8 }
 0x251   :  { %21328 = vmatmul.mubr.f32.vlgmr.msra.gmra.mrb[4].mxu1 %v2502_v15 }
 0x252   :  { %21331 = vmatpush3.xpose.msra.mxu1 %v2437_v13  ;;  %21332 = vmatprep.mubr.msk.f32.mxu1 %vm23945_vm0, %v23946_v8 }
 0x253   :  { %21365 = vmatprep.subr.mxu1 %v23946_v8 }
 0x259   :  { %21333 = vmatmul.mubr.f32.vlgmr.msra.gmra.mrb[4].mxu1 %v2502_v15  ;;  %v3443_v15 = vsub.f32 %v24440_v31, %v24443_v33 }
 0x25a   :  { %21366 = vmatpush3.msra.mxu1 %v24443_v33  ;;  %21367 = vmatprep.mubr.msk.f32.mxu1 %vm23945_vm0, %v23946_v8 }
 0x25b   :  { %21370 = vmatprep.subr.mxu1 %v23946_v8  ;;  %v3444_v23 = vand.u32 4294901760, %v3443_v15 }
 0x25d   :  { %v3445_v38 = vsub.f32 %v3443_v15, %v3444_v23 }
 0x25f   :  { %v3446_v10 = vand.u32 4294901760, %v3445_v38  ;;  %v5681_v38 = vsel %vm1075_vm2, %v24453_v36, 0 }
 0x291   :  { %v1522_v39 = vpop.f32.mrb[2].mxu0 }
 0x292   :  { %v20279_v40 = vclamps-f32 %v1522_v39, 5.0  ;;  %v21244_v41 = vpop.f32.mrb[3].mxu0  ;;  %v3896_v39 = vand.u32 4294901760, %v3895_v24 }
 0x294   :  { %v2890_v42 = vmul.f32 1.442695, %v20279_v40  ;;  %v3897_v46 = vsub.f32 %v3895_v24, %v3896_v39 }
 0x296   :  { %23818 = vpow2.f32 %v2890_v42 }
 0x2a0   :  { %v23819_v50 = vpop.eup %23818 }
 0x2a1   :  { %v24476_v53 = vsel %vm24468_vm4, %v23819_v50, 0.0 }
 0x2a2   :  { %v2911_v54 = vsel %vm1075_vm2, %v24476_v53, 0 }
 0x2a3   :  { %v2979_v55 = vand.u32 4294901760, %v2911_v54 }
 0x2a5   :  { %v2980_v58 = vsub.f32 %v2911_v54, %v2979_v55 }
 0x2a7   :  { %v2981_v59 = vand.u32 4294901760, %v2980_v58 }
 0x2a9   :  { %v2982_v62 = vsub.f32 %v2980_v58, %v2981_v59 }
 0x2ab   :  { %v2983_v63 = vand.u32 4294901760, %v2982_v62  ;;  %v4779_v62 = vsel %vm1075_vm2, %v24297_v18, 0 }
 0x2ad   :  { %21338 = vmatmul.mubr.f32.vlgmr.msra.gmra.mrb[6].mxu0 %v2983_v63  ;;  %v24560_v63 = vand.u32 4294901760, %v4777_v60 }
 0x2ae   :  { %21341 = vmatpush3.msra.mxu0 %v2994_v0  ;;  %21342 = vmatprep.mubr.msk.f32.mxu0 %vm23945_vm0, %v23946_v8 }
 0x2af   :  { %21345 = vmatprep.subr.mxu0 %v23946_v8 }
 0x2b5   :  { %21343 = vmatmul.mubr.f32.vlgmr.msra.gmra.mrb[6].mxu0 %v2979_v55 }
 0x2b6   :  { %21346 = vmatpush3.msra.mxu0 %v2991_v52  ;;  %21347 = vmatprep.mubr.msk.f32.mxu0 %vm23945_vm0, %v23946_v8  ;;  %v3898_v52 = vand.u32 4294901760, %v3897_v46 }
 0x2b7   :  { %21350 = vmatprep.subr.mxu0 %v23946_v8 }
 0x2bd   :  { %21348 = vmatmul.mubr.f32.vlgmr.msra.gmra.mrb[6].mxu0 %v2980_v58 }
 0x2be   :  { %21351 = vmatpush3.msra.mxu0 %v24418_v30  ;;  %21352 = vmatprep.mubr.msk.f32.mxu0 %vm23945_vm0, %v23946_v8 }
 0x2bf   :  { %21355 = vmatprep.subr.mxu0 %v23946_v8 }
 0x2c5   :  { %21353 = vmatmul.mubr.f32.vlgmr.msra.gmra.mrb[6].mxu0 %v2981_v59  ;;  %v24552_v59 = vand.u32 4294901760, %v24449_v34 }
 0x2c6   :  { %21356 = vmatpush3.msra.mxu0 %v2992_v57  ;;  %21357 = vmatprep.mubr.msk.f32.mxu0 %vm23945_vm0, %v23946_v8 }
 0x2c7   :  { %21360 = vmatprep.subr.mxu0 %v23946_v8 }
 0x2cd   :  { %21358 = vmatmul.mubr.f32.vlgmr.msra.gmra.mrb[6].mxu0 %v2979_v55 }
 0x2ce   :  { %21361 = vmatpush3.msra.mxu0 %v24418_v30  ;;  %21362 = vmatprep.mubr.msk.f32.mxu0 %vm23945_vm0, %v23946_v8 }
 0x2cf   :  { %21395 = vmatprep.subr.mxu0 %v23946_v8 }
 0x2d5   :  { %21363 = vmatmul.mubr.f32.vlgmr.msra.gmra.mrb[6].mxu0 %v2979_v55 }
 0x2d6   :  { %21396 = vmatpush3.msra.mxu0 %v24498_v1  ;;  %21397 = vmatprep.mubr.msk.f32.mxu0 %vm23945_vm0, %v23946_v8 }
 0x2d7   :  { %21400 = vmatprep.subr.mxu0 %v23946_v8 }
 0x300   :  { %v1974_v2 = vpop.f32.mrb[2].mxu1 }
 0x301   :  { %v20280_v4 = vclamps-f32 %v1974_v2, 5.0  ;;  %v21274_v6 = vpop.f32.mrb[3].mxu1  ;;  %v24565_v2 = vsub.f32 %v24449_v34, %v24552_v59 }
 0x302   :  { %v24580_v6 = vsub.f32 %v4777_v60, %v24560_v63  ;;  %v6133_v60 = vsel %vm1075_vm2, %v24455_v37, 0 }
 0x303   :  { %v2892_v7 = vmul.f32 1.442695, %v20280_v4  ;;  %v24567_v4 = vand.u32 4294901760, %v4779_v62 }
 0x304   :  { %v2426_v9 = vpop.f32.mrb[4].mxu0 }
 0x305   :  { %23820 = vpow2.f32 %v2892_v7  ;;  %v20281_v11 = vclamps-f32 %v2426_v9, 5.0  ;;  %v21304_v20 = vpop.f32.mrb[5].mxu0  ;;  %v4348_v7 = vand.u32 4294901760, %v24565_v2  ;;  %v4859_v9 = vsub.f32 %v4779_v62, %v24567_v4 }
 0x306   :  { %v6135_v62 = vsel %vm1075_vm2, %v24462_v44, 0 }
 0x307   :  { %v2894_v27 = vmul.f32 1.442695, %v20281_v11  ;;  %v4849_v11 = vand.u32 4294901760, %v24580_v6 }
 0x309   :  { %23822 = vpow2.f32 %v2894_v27  ;;  %v4349_v27 = vsub.f32 %v24565_v2, %v4348_v7 }
 0x30f   :  { %v23821_v14 = vpop.eup %23820 }
 0x310   :  { %v24508_v13 = vsel %vm24468_vm4, %v23821_v14, 0.0  ;;  %v4860_v14 = vand.u32 4294901760, %v4859_v9 }
 0x311   :  { %v3363_v16 = vsel %vm1075_vm2, %v24508_v13, 0 }
 0x312   :  { %v24512_v21 = vand.u32 4294901760, %v3363_v16 }
 0x313   :  { %v23823_v22 = vpop.eup %23822 }
 0x314   :  { %v24518_v26 = vsel %vm24468_vm4, %v23823_v22, 0.0  ;;  %v3432_v28 = vsub.f32 %v3363_v16, %v24512_v21  ;;  %v4350_v22 = vand.u32 4294901760, %v4349_v27  ;;  %v7056_v27 = vpop.permute.xlu1 %7055 }
 0x315   :  { %v3815_v29 = vsel %vm1075_vm2, %v24518_v26, 0 }
 0x316   :  { %v3433_v30 = vand.u32 4294901760, %v3432_v28  ;;  %v24523_v31 = vand.u32 4294901760, %v3815_v29 }
 0x318   :  { %v3434_v40 = vsub.f32 %v3432_v28, %v3433_v30  ;;  %v3884_v41 = vsub.f32 %v3815_v29, %v24523_v31  ;;  %v5231_v29 = vsel %vm1075_vm2, %v24380_v17, 0 }
 0x31a   :  { %v3435_v42 = vand.u32 4294901760, %v3434_v40  ;;  %v3885_v45 = vand.u32 4294901760, %v3884_v41 }
 0x31c   :  { %21368 = vmatmul.mubr.f32.vlgmr.msra.gmra.mrb[6].mxu1 %v3435_v42  ;;  %v3886_v47 = vsub.f32 %v3884_v41, %v3885_v45 }
 0x31d   :  { %21371 = vmatpush3.msra.mxu1 %v3446_v10  ;;  %21372 = vmatprep.mubr.msk.f32.mxu1 %vm23945_vm0, %v23946_v8 }
 0x31e   :  { %v3887_v50 = vand.u32 4294901760, %v3886_v47  ;;  %21375 = vmatprep.subr.mxu1 %v23946_v8 }
 0x320   :  { %21398 = vmatmul.mubr.f32.vlgmr.msra.gmra.mrb[8].mxu0 %v3887_v50 }
 0x321   :  { %21401 = vmatpush3.msra.mxu0 %v3898_v52  ;;  %21402 = vmatprep.mubr.msk.f32.mxu0 %vm23945_vm0, %v23946_v8 }
 0x322   :  { %21405 = vmatprep.subr.mxu0 %v23946_v8 }
 0x324   :  { %21373 = vmatmul.mubr.f32.vlgmr.msra.gmra.mrb[6].mxu1 %v24512_v21 }
 0x325   :  { %21376 = vmatpush3.msra.mxu1 %v3443_v15  ;;  %21377 = vmatprep.mubr.msk.f32.mxu1 %vm23945_vm0, %v23946_v8 }
 0x326   :  { %21380 = vmatprep.subr.mxu1 %v23946_v8 }
 0x328   :  { %21403 = vmatmul.mubr.f32.vlgmr.msra.gmra.mrb[8].mxu0 %v24523_v31 }
 0x329   :  { %21406 = vmatpush3.msra.mxu0 %v3895_v24  ;;  %21407 = vmatprep.mubr.msk.f32.mxu0 %vm23945_vm0, %v23946_v8 }
 0x32a   :  { %21410 = vmatprep.subr.mxu0 %v23946_v8 }
 0x32c   :  { %v2878_v54 = vpop.f32.mrb[4].mxu1  ;;  %21378 = vmatmul.mubr.f32.vlgmr.msra.gmra.mrb[6].mxu1 %v3432_v28  ;;  %v5229_v28 = vsel %vm1075_vm2, %v24451_v35, 0  ;;  %v5683_v35 = vsel %vm1075_vm2, %v24460_v43, 0 }
 0x32d   :  { %v20282_v55 = vclamps-f32 %v2878_v54, 5.0  ;;  %21381 = vmatpush3.msra.mxu1 %v24443_v33  ;;  %v21334_v57 = vpop.f32.mrb[5].mxu1  ;;  %21382 = vmatprep.mubr.msk.f32.mxu1 %vm23945_vm0, %v23946_v8 }
 0x32e   :  { %21385 = vmatprep.subr.mxu1 %v23946_v8 }
 0x32f   :  { %v2896_v58 = vmul.f32 1.442695, %v20282_v55 }
 0x330   :  { %21408 = vmatmul.mubr.f32.vlgmr.msra.gmra.mrb[8].mxu0 %v3884_v41  ;;  %v24652_v41 = vand.u32 4294901760, %v5683_v35 }
 0x331   :  { %23824 = vpow2.f32 %v2896_v58  ;;  %21411 = vmatpush3.msra.mxu0 %v24498_v1  ;;  %21412 = vmatprep.mubr.msk.f32.mxu0 %vm23945_vm0, %v23946_v8 }
 0x332   :  { %21415 = vmatprep.subr.mxu0 %v23946_v8 }
 0x334   :  { %21383 = vmatmul.mubr.f32.vlgmr.msra.gmra.mrb[6].mxu1 %v3433_v30  ;;  %v24636_v30 = vand.u32 4294901760, %v5229_v28 }
 0x335   :  { %21386 = vmatpush3.msra.mxu1 %v3444_v23  ;;  %21387 = vmatprep.mubr.msk.f32.mxu1 %vm23945_vm0, %v23946_v8  ;;  %v4861_v23 = vsub.f32 %v4859_v9, %v4860_v14 }
 0x336   :  { %21390 = vmatprep.subr.mxu1 %v23946_v8  ;;  %v5300_v17 = vsub.f32 %v5229_v28, %v24636_v30 }
 0x337   :  { %v4862_v24 = vand.u32 4294901760, %v4861_v23 }
 0x338   :  { %21413 = vmatmul.mubr.f32.vlgmr.msra.gmra.mrb[8].mxu0 %v3885_v45  ;;  %v5301_v36 = vand.u32 4294901760, %v5300_v17  ;;  %v5763_v45 = vsub.f32 %v5683_v35, %v24652_v41 }
 0x339   :  { %21416 = vmatpush3.msra.mxu0 %v3896_v39  ;;  %21417 = vmatprep.mubr.msk.f32.mxu0 %vm23945_vm0, %v23946_v8  ;;  %v24648_v39 = vand.u32 4294901760, %v5681_v38 }
 0x33a   :  { %21420 = vmatprep.subr.mxu0 %v23946_v8  ;;  %v5302_v10 = vsub.f32 %v5300_v17, %v5301_v36  ;;  %v5764_v50 = vand.u32 4294901760, %v5763_v45 }
 0x33b   :  { %v23825_v0 = vpop.eup %23824  ;;  %v5752_v43 = vsub.f32 %v5681_v38, %v24648_v39 }
 0x33c   :  { %v24571_v12 = vsel %vm24468_vm4, %v23825_v0, 0.0  ;;  %21388 = vmatmul.mubr.f32.vlgmr.msra.gmra.mrb[6].mxu1 %v24512_v21  ;;  %v5303_v52 = vand.u32 4294901760, %v5302_v10  ;;  %v5765_v55 = vsub.f32 %v5763_v45, %v5764_v50  ;;  %v6138_v0 = vand.u32 4294901760, %v6135_v62 }
 0x33d   :  { %21391 = vmatpush3.msra.mxu1 %v24443_v33  ;;  %21392 = vmatprep.mubr.msk.f32.mxu1 %vm23945_vm0, %v23946_v8  ;;  %v4267_v18 = vsel %vm1075_vm2, %v24571_v12, 0  ;;  %v5753_v46 = vand.u32 4294901760, %v5752_v43 }
 0x33e   :  { %21425 = vmatprep.subr.mxu1 %v23946_v8  ;;  %v24583_v34 = vand.u32 4294901760, %v4267_v18  ;;  %v6215_v37 = vsub.f32 %v6135_v62, %v6138_v0 }
 0x33f   :  { %v5754_v54 = vsub.f32 %v5752_v43, %v5753_v46 }
 0x340   :  { %21418 = vmatmul.mubr.f32.vlgmr.msra.gmra.mrb[8].mxu0 %v24523_v31  ;;  %v4336_v33 = vsub.f32 %v4267_v18, %v24583_v34 }
 0x341   :  { %21421 = vmatpush3.msra.mxu0 %v24498_v1  ;;  %21422 = vmatprep.mubr.msk.f32.mxu0 %vm23945_vm0, %v23946_v8  ;;  %v4850_v1 = vsub.f32 %v24580_v6, %v4849_v11  ;;  %v5755_v58 = vand.u32 4294901760, %v5754_v54 }
 0x342   :  { %21455 = vmatprep.subr.mxu0 %v23946_v8  ;;  %v4337_v20 = vand.u32 4294901760, %v4336_v33 }
 0x344   :  { %21393 = vmatmul.mubr.f32.vlgmr.msra.gmra.mrb[6].mxu1 %v24512_v21  ;;  %v4338_v15 = vsub.f32 %v4336_v33, %v4337_v20  ;;  %v4851_v21 = vand.u32 4294901760, %v4850_v1 }
 0x345   :  { %21426 = vmatpush3.msra.mxu1 %v24552_v59  ;;  %21427 = vmatprep.mubr.msk.f32.mxu1 %vm23945_vm0, %v23946_v8 }
 0x346   :  { %21430 = vmatprep.subr.mxu1 %v23946_v8  ;;  %v4339_v16 = vand.u32 4294901760, %v4338_v15 }
 0x348   :  { %21423 = vmatmul.mubr.f32.vlgmr.msra.gmra.mrb[8].mxu0 %v24523_v31  ;;  %21428 = vmatmul.mubr.f32.vlgmr.msra.gmra.mrb[8].mxu1 %v4339_v16  ;;  %v24639_v31 = vand.u32 4294901760, %v5231_v29 }
 0x349   :  { %21431 = vmatpush3.msra.mxu1 %v4350_v22  ;;  %21456 = vmatpush3.xpose.msra.mxu0 %v24567_v4 }
 0x34a   :  { %21457 = vmatprep.mubr.msk.f32.mxu0 %vm23945_vm0, %v23946_v8  ;;  %21460 = vmatprep.subr.mxu0 %v23946_v8  ;;  %v5311_v40 = vsub.f32 %v5231_v29, %v24639_v31 }
 0x34b   :  { %21432 = vmatprep.mubr.msk.f32.mxu1 %vm23945_vm0, %v23946_v8  ;;  %21435 = vmatprep.subr.mxu1 %v23946_v8 }
 0x34c   :  { %21458 = vmatmul.mubr.f32.vlgmr.msra.gmra.mrb[10].mxu0 %v4851_v21  ;;  %v5312_v42 = vand.u32 4294901760, %v5311_v40 }
 0x34d   :  { %21461 = vmatpush3.xpose.msra.mxu0 %v4862_v24  ;;  %21462 = vmatprep.mubr.msk.f32.mxu0 %vm23945_vm0, %v23946_v8 }
 0x34e   :  { %21465 = vmatprep.subr.mxu0 %v23946_v8  ;;  %v5313_v47 = vsub.f32 %v5311_v40, %v5312_v42 }
 0x350   :  { %21433 = vmatmul.mubr.f32.vlgmr.msra.gmra.mrb[8].mxu1 %v24583_v34  ;;  %v5314_v57 = vand.u32 4294901760, %v5313_v47 }
 0x351   :  { %21436 = vmatpush3.msra.mxu1 %v24565_v2  ;;  %21437 = vmatprep.mubr.msk.f32.mxu1 %vm23945_vm0, %v23946_v8 }
 0x352   :  { %21440 = vmatprep.subr.mxu1 %v23946_v8 }
 0x354   :  { %21463 = vmatmul.mubr.f32.vlgmr.msra.gmra.mrb[10].mxu0 %v24560_v63 }
 0x355   :  { %21466 = vmatpush3.xpose.msra.mxu0 %v4859_v9  ;;  %21467 = vmatprep.mubr.msk.f32.mxu0 %vm23945_vm0, %v23946_v8 }
 0x356   :  { %21470 = vmatprep.subr.mxu0 %v23946_v8 }
 0x358   :  { %21438 = vmatmul.mubr.f32.vlgmr.msra.gmra.mrb[8].mxu1 %v4336_v33 }
 0x359   :  { %21441 = vmatpush3.msra.mxu1 %v24552_v59  ;;  %21442 = vmatprep.mubr.msk.f32.mxu1 %vm23945_vm0, %v23946_v8 }
 0x35a   :  { %21445 = vmatprep.subr.mxu1 %v23946_v8 }
 0x35c   :  { %21468 = vmatmul.mubr.f32.vlgmr.msra.gmra.mrb[10].mxu0 %v24580_v6 }
 0x35d   :  { %21471 = vmatpush3.xpose.msra.mxu0 %v24567_v4  ;;  %21472 = vmatprep.mubr.msk.f32.mxu0 %vm23945_vm0, %v23946_v8 }
 0x35e   :  { %21475 = vmatprep.subr.mxu0 %v23946_v8 }
 0x360   :  { %21443 = vmatmul.mubr.f32.vlgmr.msra.gmra.mrb[8].mxu1 %v4337_v20 }
 0x361   :  { %21446 = vmatpush3.msra.mxu1 %v4348_v7  ;;  %21447 = vmatprep.mubr.msk.f32.mxu1 %vm23945_vm0, %v23946_v8 }
 0x362   :  { %21450 = vmatprep.subr.mxu1 %v23946_v8 }
 0x364   :  { %21473 = vmatmul.mubr.f32.vlgmr.msra.gmra.mrb[10].mxu0 %v4849_v11 }
 0x365   :  { %21476 = vmatpush3.xpose.msra.mxu0 %v4860_v14  ;;  %21477 = vmatprep.mubr.msk.f32.mxu0 %vm23945_vm0, %v23946_v8  ;;  %v24746_v14 = vand.u32 4294901760, %v7056_v27 }
 0x366   :  { %21480 = vmatprep.subr.mxu0 %v23946_v8 }
 0x367   :  { %v24783_v62 = vsub.f32 %v7056_v27, %v24746_v14 }
 0x368   :  { %21448 = vmatmul.mubr.f32.vlgmr.msra.gmra.mrb[8].mxu1 %v24583_v34 }
 0x369   :  { %21451 = vmatpush3.msra.mxu1 %v24552_v59  ;;  %21452 = vmatprep.mubr.msk.f32.mxu1 %vm23945_vm0, %v23946_v8  ;;  %v5766_v59 = vand.u32 4294901760, %v5765_v55 }
 0x36a   :  { %21485 = vmatprep.subr.mxu1 %v23946_v8 }
 0x36c   :  { %21478 = vmatmul.mubr.f32.vlgmr.msra.gmra.mrb[10].mxu0 %v24560_v63 }
 0x36d   :  { %21481 = vmatpush3.xpose.msra.mxu0 %v24567_v4  ;;  %21482 = vmatprep.mubr.msk.f32.mxu0 %vm23945_vm0, %v23946_v8  ;;  %v6216_v4 = vand.u32 4294901760, %v6215_v37 }
 0x36e   :  { %21515 = vmatprep.subr.mxu0 %v23946_v8 }
 0x36f   :  { %v6217_v6 = vsub.f32 %v6215_v37, %v6216_v4 }
 0x370   :  { %21453 = vmatmul.mubr.f32.vlgmr.msra.gmra.mrb[8].mxu1 %v24583_v34  ;;  %v6604_v34 = vpop.permute.xlu0 %6603 }
 0x371   :  { %21486 = vmatpush3.xpose.msra.mxu1 %v24639_v31  ;;  %21487 = vmatprep.mubr.msk.f32.mxu1 %vm23945_vm0, %v23946_v8  ;;  %v24722_v9 = vand.u32 4294901760, %v6604_v34  ;;  %v6218_v33 = vand.u32 4294901760, %v6217_v6 }
 0x372   :  { %21490 = vmatprep.subr.mxu1 %v23946_v8 }
 0x373   :  { %v6687_v38 = vsub.f32 %v6604_v34, %v24722_v9 }
 0x374   :  { %21483 = vmatmul.mubr.f32.vlgmr.msra.gmra.mrb[10].mxu0 %v24560_v63  ;;  %21488 = vmatmul.mubr.f32.vlgmr.msra.gmra.mrb[10].mxu1 %v5303_v52  ;;  %v6203_v63 = vand.u32 4294901760, %v6133_v60 }
 0x375   :  { %21491 = vmatpush3.xpose.msra.mxu1 %v5314_v57  ;;  %21516 = vmatpush3.xpose.msra.mxu0 %v24652_v41 }
 0x376   :  { %21517 = vmatprep.mubr.msk.f32.mxu0 %vm23945_vm0, %v23946_v8  ;;  %21520 = vmatprep.subr.mxu0 %v23946_v8  ;;  %v6204_v2 = vsub.f32 %v6133_v60, %v6203_v63 }
 0x377   :  { %21492 = vmatprep.mubr.msk.f32.mxu1 %vm23945_vm0, %v23946_v8  ;;  %21495 = vmatprep.subr.mxu1 %v23946_v8 }
 0x378   :  { %21518 = vmatmul.mubr.f32.vlgmr.msra.gmra.mrb[12].mxu0 %v5755_v58  ;;  %v6205_v44 = vand.u32 4294901760, %v6204_v2 }
 0x379   :  { %21521 = vmatpush3.xpose.msra.mxu0 %v5766_v59  ;;  %21522 = vmatprep.mubr.msk.f32.mxu0 %vm23945_vm0, %v23946_v8  ;;  %v7508_v59 = vpop.permute.xlu0 %7507 }
 0x37a   :  { %21525 = vmatprep.subr.mxu0 %v23946_v8  ;;  %v6206_v18 = vsub.f32 %v6204_v2, %v6205_v44 }
 0x37c   :  { %21493 = vmatmul.mubr.f32.vlgmr.msra.gmra.mrb[10].mxu1 %v24636_v30  ;;  %v6207_v7 = vand.u32 4294901760, %v6206_v18  ;;  %v7140_v18 = vand.u32 4294901760, %v24783_v62 }
 0x37d   :  { %21496 = vmatpush3.xpose.msra.mxu1 %v5311_v40  ;;  %21497 = vmatprep.mubr.msk.f32.mxu1 %vm23945_vm0, %v23946_v8  ;;  %v6688_v40 = vand.u32 4294901760, %v6687_v38 }
 0x37e   :  { %21500 = vmatprep.subr.mxu1 %v23946_v8 }
 0x380   :  { %21523 = vmatmul.mubr.f32.vlgmr.msra.gmra.mrb[12].mxu0 %v24648_v39 }
 0x381   :  { %21526 = vmatpush3.xpose.msra.mxu0 %v5763_v45  ;;  %21527 = vmatprep.mubr.msk.f32.mxu0 %vm23945_vm0, %v23946_v8 }
 0x382   :  { %21530 = vmatprep.subr.mxu0 %v23946_v8 }
 0x384   :  { %21498 = vmatmul.mubr.f32.vlgmr.msra.gmra.mrb[10].mxu1 %v5300_v17 }
 0x385   :  { %21501 = vmatpush3.xpose.msra.mxu1 %v24639_v31  ;;  %21502 = vmatprep.mubr.msk.f32.mxu1 %vm23945_vm0, %v23946_v8 }
 0x386   :  { %21505 = vmatprep.subr.mxu1 %v23946_v8 }
 0x388   :  { %21528 = vmatmul.mubr.f32.vlgmr.msra.gmra.mrb[12].mxu0 %v5752_v43  ;;  %v6689_v43 = vsub.f32 %v6687_v38, %v6688_v40 }
 0x389   :  { %21531 = vmatpush3.xpose.msra.mxu0 %v24652_v41  ;;  %21532 = vmatprep.mubr.msk.f32.mxu0 %vm23945_vm0, %v23946_v8 }
 0x38a   :  { %21535 = vmatprep.subr.mxu0 %v23946_v8  ;;  %v6690_v10 = vand.u32 4294901760, %v6689_v43 }
 0x38c   :  { %21503 = vmatmul.mubr.f32.vlgmr.msra.gmra.mrb[10].mxu1 %v5301_v36 }
 0x38d   :  { %21506 = vmatpush3.xpose.msra.mxu1 %v5312_v42  ;;  %21507 = vmatprep.mubr.msk.f32.mxu1 %vm23945_vm0, %v23946_v8 }
 0x38e   :  { %21510 = vmatprep.subr.mxu1 %v23946_v8 }
 0x390   :  { %21533 = vmatmul.mubr.f32.vlgmr.msra.gmra.mrb[12].mxu0 %v5753_v46 }
 0x391   :  { %21536 = vmatpush3.xpose.msra.mxu0 %v5764_v50  ;;  %21537 = vmatprep.mubr.msk.f32.mxu0 %vm23945_vm0, %v23946_v8 }
 0x392   :  { %21540 = vmatprep.subr.mxu0 %v23946_v8 }
 0x394   :  { %21508 = vmatmul.mubr.f32.vlgmr.msra.gmra.mrb[10].mxu1 %v24636_v30 }
 0x395   :  { %21511 = vmatpush3.xpose.msra.mxu1 %v24639_v31  ;;  %21512 = vmatprep.mubr.msk.f32.mxu1 %vm23945_vm0, %v23946_v8 }
 0x396   :  { %21545 = vmatprep.subr.mxu1 %v23946_v8 }
 0x398   :  { %21538 = vmatmul.mubr.f32.vlgmr.msra.gmra.mrb[12].mxu0 %v24648_v39 }
 0x399   :  { %21541 = vmatpush3.xpose.msra.mxu0 %v24652_v41  ;;  %21542 = vmatprep.mubr.msk.f32.mxu0 %vm23945_vm0, %v23946_v8 }
 0x39a   :  { %21575 = vmatprep.subr.mxu0 %v23946_v8 }
 0x39c   :  { %21513 = vmatmul.mubr.f32.vlgmr.msra.gmra.mrb[10].mxu1 %v24636_v30 }
 0x39d   :  { %21546 = vmatpush3.xpose.msra.mxu1 %v6138_v0  ;;  %21547 = vmatprep.mubr.msk.f32.mxu1 %vm23945_vm0, %v23946_v8 }
 0x39e   :  { %21550 = vmatprep.subr.mxu1 %v23946_v8 }
 0x3a0   :  { %21543 = vmatmul.mubr.f32.vlgmr.msra.gmra.mrb[12].mxu0 %v24648_v39  ;;  %21548 = vmatmul.mubr.f32.vlgmr.msra.gmra.mrb[12].mxu1 %v6207_v7 }
 0x3a1   :  { %21551 = vmatpush3.xpose.msra.mxu1 %v6218_v33  ;;  %21576 = vmatpush3.msra.mxu0 %v24722_v9 }
 0x3a2   :  { %21552 = vmatprep.mubr.msk.f32.mxu1 %vm23945_vm0, %v23946_v8  ;;  %21555 = vmatprep.subr.mxu1 %v23946_v8 }
 0x3a3   :  { %21577 = vmatprep.mubr.msk.f32.mxu0 %vm23945_vm0, %v23946_v8  ;;  %21580 = vmatprep.subr.mxu0 %v23946_v8 }
 0x3a8   :  { %v24732_v11 = vpop.f32.mrb[6].mxu0  ;;  %21553 = vmatmul.mubr.f32.vlgmr.msra.gmra.mrb[12].mxu1 %v6203_v63 }
 0x3a9   :  { %21556 = vmatpush3.xpose.msra.mxu1 %v6215_v37  ;;  %v21364_v20 = vpop.f32.mrb[7].mxu0  ;;  %21557 = vmatprep.mubr.msk.f32.mxu1 %vm23945_vm0, %v23946_v8 }
 0x3aa   :  { %21560 = vmatprep.subr.mxu1 %v23946_v8 }
 0x3b0   :  { %21558 = vmatmul.mubr.f32.vlgmr.msra.gmra.mrb[12].mxu1 %v6204_v2 }
 0x3b1   :  { %21561 = vmatpush3.xpose.msra.mxu1 %v6138_v0  ;;  %21562 = vmatprep.mubr.msk.f32.mxu1 %vm23945_vm0, %v23946_v8 }
 0x3b2   :  { %21565 = vmatprep.subr.mxu1 %v23946_v8 }
 0x3b8   :  { %21563 = vmatmul.mubr.f32.vlgmr.msra.gmra.mrb[12].mxu1 %v6205_v44 }
 0x3b9   :  { %21566 = vmatpush3.xpose.msra.mxu1 %v6216_v4  ;;  %21567 = vmatprep.mubr.msk.f32.mxu1 %vm23945_vm0, %v23946_v8 }
 0x3ba   :  { %21570 = vmatprep.subr.mxu1 %v23946_v8 }
 0x3c0   :  { %21568 = vmatmul.mubr.f32.vlgmr.msra.gmra.mrb[12].mxu1 %v6203_v63 }
 0x3c1   :  { %21571 = vmatpush3.xpose.msra.mxu1 %v6138_v0  ;;  %21572 = vmatprep.mubr.msk.f32.mxu1 %vm23945_vm0, %v23946_v8 }
 0x3c2   :  { %21605 = vmatprep.subr.mxu1 %v23946_v8 }
 0x3c8   :  { %21573 = vmatmul.mubr.f32.vlgmr.msra.gmra.mrb[12].mxu1 %v6203_v63  ;;  %v24785_v63 = vand.u32 4294901760, %v7508_v59 }
 0x3c9   :  { %21606 = vmatpush3.msra.mxu1 %v24746_v14  ;;  %21607 = vmatprep.mubr.msk.f32.mxu1 %vm23945_vm0, %v23946_v8 }
 0x3ca   :  { %21610 = vmatprep.subr.mxu1 %v23946_v8  ;;  %v24795_v6 = vsub.f32 %v7508_v59, %v24785_v63 }
 0x417   :  { %v24752_v15 = vpop.f32.mrb[6].mxu1 }
 0x418   :  { %v21394_v1 = vpop.f32.mrb[7].mxu1 }
 0x41b   :  { %v24754_v16 = vpop.f32.mrb[8].mxu0 }
 0x41c   :  { %v21424_v22 = vpop.f32.mrb[9].mxu0 }
 0x41d   :  { %v7141_v22 = vsub.f32 %v24783_v62, %v7140_v18 }
 0x443   :  { %v24756_v23 = vpop.f32.mrb[8].mxu1 }
 0x444   :  { %v21454_v21 = vpop.f32.mrb[9].mxu1 }
 0x445   :  { %v7592_v21 = vand.u32 4294901760, %v24795_v6 }
 0x447   :  { %v5223_v24 = vpop.f32.mrb[10].mxu0 }
 0x448   :  { %v20283_v28 = vclamps-f32 %v5223_v24, 5.0  ;;  %v21484_v29 = vpop.f32.mrb[11].mxu0 }
 0x44a   :  { %v6591_v30 = vmul.f32 1.442695, %v20283_v28 }
 0x44c   :  { %23826 = vpow2.f32 %v6591_v30 }
 0x456   :  { %v23827_v31 = vpop.eup %23826 }
 0x457   :  { %v24761_v35 = vsel %vm24468_vm4, %v23827_v31, 0.0  ;;  %v7142_v31 = vand.u32 4294901760, %v7141_v22 }
 0x458   :  { %v6607_v17 = vsel %vm1075_vm2, %v24761_v35, 0  ;;  %v8411_v28 = vsel %vm1075_vm2, %v24761_v35, 0.0 }
 0x459   :  { %v24765_v39 = vand.u32 4294901760, %v6607_v17 }
 0x45b   :  { %v6676_v41 = vsub.f32 %v6607_v17, %v24765_v39 }
 0x45d   :  { %v6677_v36 = vand.u32 4294901760, %v6676_v41 }
 0x45f   :  { %v6678_v42 = vsub.f32 %v6676_v41, %v6677_v36 }
 0x461   :  { %v6679_v45 = vand.u32 4294901760, %v6678_v42  ;;  %v7960_v42 = vpop.permute.xlu1 %7959 }
 0x463   :  { %21578 = vmatmul.mubr.f32.vlgmr.msra.gmra.mrb[14].mxu0 %v6679_v45  ;;  %v7966_v45 = vand.u32 4294901760, %v7960_v42 }
 0x464   :  { %21581 = vmatpush3.msra.mxu0 %v6690_v10  ;;  %21582 = vmatprep.mubr.msk.f32.mxu0 %vm23945_vm0, %v23946_v8 }
 0x465   :  { %21585 = vmatprep.subr.mxu0 %v23946_v8 }
 0x46b   :  { %21583 = vmatmul.mubr.f32.vlgmr.msra.gmra.mrb[14].mxu0 %v24765_v39 }
 0x46c   :  { %21586 = vmatpush3.msra.mxu0 %v6687_v38  ;;  %21587 = vmatprep.mubr.msk.f32.mxu0 %vm23945_vm0, %v23946_v8  ;;  %v7593_v38 = vsub.f32 %v24795_v6, %v7592_v21 }
 0x46d   :  { %21590 = vmatprep.subr.mxu0 %v23946_v8 }
 0x46f   :  { %v5675_v46 = vpop.f32.mrb[10].mxu1 }
 0x470   :  { %v20284_v47 = vclamps-f32 %v5675_v46, 5.0  ;;  %v21514_v50 = vpop.f32.mrb[11].mxu1  ;;  %v8043_v46 = vsub.f32 %v7960_v42, %v7966_v45 }
 0x472   :  { %v6593_v52 = vmul.f32 1.442695, %v20284_v47 }
 0x473   :  { %v6127_v54 = vpop.f32.mrb[12].mxu0  ;;  %21588 = vmatmul.mubr.f32.vlgmr.msra.gmra.mrb[14].mxu0 %v6676_v41  ;;  %v7594_v41 = vand.u32 4294901760, %v7593_v38 }
 0x474   :  { %23828 = vpow2.f32 %v6593_v52  ;;  %v20285_v55 = vclamps-f32 %v6127_v54, 5.0  ;;  %21591 = vmatpush3.msra.mxu0 %v24722_v9  ;;  %v21544_v57 = vpop.f32.mrb[13].mxu0  ;;  %21592 = vmatprep.mubr.msk.f32.mxu0 %vm23945_vm0, %v23946_v8 }
 0x475   :  { %21595 = vmatprep.subr.mxu0 %v23946_v8 }
 0x476   :  { %v6595_v58 = vmul.f32 1.442695, %v20285_v55  ;;  %v8044_v55 = vand.u32 4294901760, %v8043_v46 }
 0x478   :  { %23830 = vpow2.f32 %v6595_v58  ;;  %v8045_v59 = vsub.f32 %v8043_v46, %v8044_v55 }
 0x47b   :  { %21593 = vmatmul.mubr.f32.vlgmr.msra.gmra.mrb[14].mxu0 %v6677_v36 }
 0x47c   :  { %21596 = vmatpush3.msra.mxu0 %v6688_v40  ;;  %21597 = vmatprep.mubr.msk.f32.mxu0 %vm23945_vm0, %v23946_v8  ;;  %v4724_v40 = vsel %vm1075_vm2, %v24571_v12, 0.0 }
 0x47d   :  { %21600 = vmatprep.subr.mxu0 %v23946_v8 }
 0x47e   :  { %v23829_v60 = vpop.eup %23828 }
 0x47f   :  { %v6600_v0 = vsel %vm24468_vm4, %v23829_v60, 0.0 }
 0x480   :  { %v7059_v2 = vsel %vm1075_vm2, %v6600_v0, 0  ;;  %v8414_v37 = vsel %vm1075_vm2, %v6600_v0, 0.0 }
 0x481   :  { %v24791_v44 = vand.u32 4294901760, %v7059_v2  ;;  %8415 = vadd.xlane.f32.xlu0 %v8414_v37 }
 0x482   :  { %v23831_v4 = vpop.eup %23830 }
 0x483   :  { %v7128_v34 = vsub.f32 %v7059_v2, %v24791_v44  ;;  %21598 = vmatmul.mubr.f32.vlgmr.msra.gmra.mrb[14].mxu0 %v24765_v39  ;;  %v6601_v7 = vsel %vm24468_vm4, %v23831_v4, 0.0 }
 0x484   :  { %21601 = vmatpush3.msra.mxu0 %v24722_v9  ;;  %v8417_v33 = vsel %vm1075_vm2, %v6601_v7, 0.0  ;;  %v7511_v20 = vsel %vm1075_vm2, %v6601_v7, 0  ;;  %21602 = vmatprep.mubr.msk.f32.mxu0 %vm23945_vm0, %v23946_v8 }
 0x485   :  { %v7129_v27 = vand.u32 4294901760, %v7128_v34  ;;  %8418 = vadd.xlane.f32.xlu1 %v8417_v33  ;;  %v24806_v1 = vand.u32 4294901760, %v7511_v20  ;;  %21635 = vmatprep.subr.mxu0 %v23946_v8 }
 0x487   :  { %v7580_v24 = vsub.f32 %v7511_v20, %v24806_v1  ;;  %v7130_v9 = vsub.f32 %v7128_v34, %v7129_v27 }
 0x489   :  { %v7581_v29 = vand.u32 4294901760, %v7580_v24  ;;  %8412 = vadd.xlane.f32.xlu1 %v8411_v28  ;;  %v7131_v30 = vand.u32 4294901760, %v7130_v9 }
 0x48b   :  { %21603 = vmatmul.mubr.f32.vlgmr.msra.gmra.mrb[14].mxu0 %v24765_v39  ;;  %21608 = vmatmul.mubr.f32.vlgmr.msra.gmra.mrb[14].mxu1 %v7131_v30  ;;  %v7582_v17 = vsub.f32 %v7580_v24, %v7581_v29 }
 0x48c   :  { %21611 = vmatpush3.msra.mxu1 %v7142_v31  ;;  %21636 = vmatpush3.msra.mxu0 %v24785_v63 }
 0x48d   :  { %4725 = vadd.xlane.f32.xlu1 %v4724_v40  ;;  %21637 = vmatprep.mubr.msk.f32.mxu0 %vm23945_vm0, %v23946_v8  ;;  %v7583_v35 = vand.u32 4294901760, %v7582_v17 }
 0x48e   :  { %21640 = vmatprep.subr.mxu0 %v23946_v8  ;;  %21612 = vmatprep.mubr.msk.f32.mxu1 %vm23945_vm0, %v23946_v8 }
 0x48f   :  { %21638 = vmatmul.mubr.f32.vlgmr.msra.gmra.mrb[16].mxu0 %v7583_v35  ;;  %21615 = vmatprep.subr.mxu1 %v23946_v8 }
 0x490   :  { %21641 = vmatpush3.msra.mxu0 %v7594_v41  ;;  %21642 = vmatprep.mubr.msk.f32.mxu0 %vm23945_vm0, %v23946_v8 }
 0x491   :  { %21645 = vmatprep.subr.mxu0 %v23946_v8 }
 0x493   :  { %21613 = vmatmul.mubr.f32.vlgmr.msra.gmra.mrb[14].mxu1 %v24791_v44 }
 0x494   :  { %21616 = vmatpush3.msra.mxu1 %v24783_v62  ;;  %21617 = vmatprep.mubr.msk.f32.mxu1 %vm23945_vm0, %v23946_v8  ;;  %v4721_v62 = vsel %vm1075_vm2, %v24518_v26, 0.0 }
 0x495   :  { %21620 = vmatprep.subr.mxu1 %v23946_v8 }
 0x497   :  { %21643 = vmatmul.mubr.f32.vlgmr.msra.gmra.mrb[16].mxu0 %v24806_v1 }
 0x498   :  { %21646 = vmatpush3.msra.mxu0 %v24795_v6  ;;  %21647 = vmatprep.mubr.msk.f32.mxu0 %vm23945_vm0, %v23946_v8 }
 0x499   :  { %21650 = vmatprep.subr.mxu0 %v23946_v8 }
 0x49b   :  { %v6579_v12 = vpop.f32.mrb[12].mxu1  ;;  %21618 = vmatmul.mubr.f32.vlgmr.msra.gmra.mrb[14].mxu1 %v7128_v34 }
 0x49c   :  { %v20286_v39 = vclamps-f32 %v6579_v12, 5.0  ;;  %21621 = vmatpush3.msra.mxu1 %v24746_v14  ;;  %v21574_v36 = vpop.f32.mrb[13].mxu1  ;;  %21622 = vmatprep.mubr.msk.f32.mxu1 %vm23945_vm0, %v23946_v8 }
 0x49d   :  { %21625 = vmatprep.subr.mxu1 %v23946_v8 }
 0x49e   :  { %v6597_v43 = vmul.f32 1.442695, %v20286_v39 }
 0x49f   :  { %21648 = vmatmul.mubr.f32.vlgmr.msra.gmra.mrb[16].mxu0 %v7580_v24 }
 0x4a0   :  { %23832 = vpow2.f32 %v6597_v43  ;;  %21651 = vmatpush3.msra.mxu0 %v24785_v63  ;;  %21652 = vmatprep.mubr.msk.f32.mxu0 %vm23945_vm0, %v23946_v8 }
 0x4a1   :  { %21655 = vmatprep.subr.mxu0 %v23946_v8 }
 0x4a3   :  { %21623 = vmatmul.mubr.f32.vlgmr.msra.gmra.mrb[14].mxu1 %v7129_v27 }
 0x4a4   :  { %21626 = vmatpush3.msra.mxu1 %v7140_v18  ;;  %21627 = vmatprep.mubr.msk.f32.mxu1 %vm23945_vm0, %v23946_v8 }
 0x4a5   :  { %21630 = vmatprep.subr.mxu1 %v23946_v8 }
 0x4a7   :  { %21653 = vmatmul.mubr.f32.vlgmr.msra.gmra.mrb[16].mxu0 %v7581_v29 }
 0x4a8   :  { %21656 = vmatpush3.msra.mxu0 %v7592_v21  ;;  %21657 = vmatprep.mubr.msk.f32.mxu0 %vm23945_vm0, %v23946_v8 }
 0x4a9   :  { %21660 = vmatprep.subr.mxu0 %v23946_v8 }
 0x4aa   :  { %v23833_v10 = vpop.eup %23832 }
 0x4ab   :  { %21628 = vmatmul.mubr.f32.vlgmr.msra.gmra.mrb[14].mxu1 %v24791_v44  ;;  %v6602_v47 = vsel %vm24468_vm4, %v23833_v10, 0.0 }
 0x4ac   :  { %21631 = vmatpush3.msra.mxu1 %v24746_v14  ;;  %v7963_v50 = vsel %vm1075_vm2, %v6602_v47, 0  ;;  %v8420_v52 = vsel %vm1075_vm2, %v6602_v47, 0.0  ;;  %21632 = vmatprep.mubr.msk.f32.mxu1 %vm23945_vm0, %v23946_v8  ;;  %v4718_v14 = vsel %vm1075_vm2, %v24508_v13, 0.0 }
 0x4ad   :  { %v8031_v54 = vand.u32 4294901760, %v7963_v50  ;;  %8421 = vadd.xlane.f32.xlu0 %v8420_v52  ;;  %21665 = vmatprep.subr.mxu1 %v23946_v8 }
 0x4af   :  { %v8032_v57 = vsub.f32 %v7963_v50, %v8031_v54  ;;  %21658 = vmatmul.mubr.f32.vlgmr.msra.gmra.mrb[16].mxu0 %v24806_v1  ;;  %v4715_v50 = vsel %vm1075_vm2, %v24476_v53, 0.0 }
 0x4b0   :  { %21661 = vmatpush3.msra.mxu0 %v24785_v63  ;;  %21662 = vmatprep.mubr.msk.f32.mxu0 %vm23945_vm0, %v23946_v8  ;;  %v8046_v63 = vand.u32 4294901760, %v8045_v59 }
 0x4b1   :  { %v8033_v58 = vand.u32 4294901760, %v8032_v57  ;;  %4719 = vadd.xlane.f32.xlu0 %v4718_v14  ;;  %23015 = vmatprep.subr.bf16.mxu0 %v23944_v3 }
 0x4b3   :  { %21633 = vmatmul.mubr.f32.vlgmr.msra.gmra.mrb[14].mxu1 %v24791_v44  ;;  %v8034_v60 = vsub.f32 %v8032_v57, %v8033_v58 }
 0x4b4   :  { %21666 = vmatpush3.msra.mxu1 %v7966_v45  ;;  %21667 = vmatprep.mubr.msk.f32.mxu1 %vm23945_vm0, %v23946_v8 }
 0x4b5   :  { %4722 = vadd.xlane.f32.xlu0 %v4721_v62  ;;  %21670 = vmatprep.subr.mxu1 %v23946_v8  ;;  %v8035_v13 = vand.u32 4294901760, %v8034_v60 }
 0x4b7   :  { %21663 = vmatmul.mubr.f32.vlgmr.msra.gmra.mrb[16].mxu0 %v24806_v1  ;;  %21668 = vmatmul.mubr.f32.vlgmr.msra.gmra.mrb[16].mxu1 %v8035_v13 }
 0x4b8   :  { %21671 = vmatpush3.msra.mxu1 %v8046_v63  ;;  %21672 = vmatprep.mubr.msk.f32.mxu1 %vm23945_vm0, %v23946_v8 }
 0x4b9   :  { %21675 = vmatprep.subr.mxu1 %v23946_v8  ;;  %21787 = vmatprep.mubr.msk.f32.mxu0 %vm23945_vm0, %v23946_v8 }
 0x4bf   :  { %21673 = vmatmul.mubr.f32.vlgmr.msra.gmra.mrb[16].mxu1 %v8031_v54 }
 0x4c0   :  { %21676 = vmatpush3.msra.mxu1 %v8043_v46  ;;  %21677 = vmatprep.mubr.msk.f32.mxu1 %vm23945_vm0, %v23946_v8 }
 0x4c1   :  { %21680 = vmatprep.subr.mxu1 %v23946_v8 }
 0x4c7   :  { %21678 = vmatmul.mubr.f32.vlgmr.msra.gmra.mrb[16].mxu1 %v8032_v57 }
 0x4c8   :  { %21681 = vmatpush3.msra.mxu1 %v7966_v45  ;;  %21682 = vmatprep.mubr.msk.f32.mxu1 %vm23945_vm0, %v23946_v8 }
 0x4c9   :  { %21685 = vmatprep.subr.mxu1 %v23946_v8 }
 0x4cf   :  { %21683 = vmatmul.mubr.f32.vlgmr.msra.gmra.mrb[16].mxu1 %v8033_v58 }
 0x4d0   :  { %21686 = vmatpush3.msra.mxu1 %v8044_v55  ;;  %21687 = vmatprep.mubr.msk.f32.mxu1 %vm23945_vm0, %v23946_v8 }
 0x4d1   :  { %21690 = vmatprep.subr.mxu1 %v23946_v8 }
 0x4d7   :  { %21688 = vmatmul.mubr.f32.vlgmr.msra.gmra.mrb[16].mxu1 %v8031_v54 }
 0x4d8   :  { %21691 = vmatpush3.msra.mxu1 %v7966_v45  ;;  %21692 = vmatprep.mubr.msk.f32.mxu1 %vm23945_vm0, %v23946_v8 }
 0x4d9   :  { %22967 = vmatprep.subr.bf16.mxu1 %v23944_v3 }
 0x4df   :  { %21693 = vmatmul.mubr.f32.vlgmr.msra.gmra.mrb[16].mxu1 %v8031_v54 }
 0x4e0   :  { %21711 = vmatprep.mubr.msk.f32.mxu1 %vm23945_vm0, %v23946_v8 }
 0x50e   :  { %v8416_v33 = vpop.xlane.xlu0 %8415 }
 0x50f   :  { %v8424_v20 = vmax.f32 %v8416_v33, 1e-30  ;;  %v8467_v33 = vld [vmem:[%s26449_s8] sm:$0xff] }
 0x512   :  { %v8419_v26 = vpop.xlane.xlu1 %8418 }
 0x513   :  { %v8425_v27 = vmax.f32 %v8419_v26, 1e-30 }
 0x516   :  { %v8413_v0 = vpop.xlane.xlu1 %8412 }
 0x517   :  { %v8423_v2 = vmax.f32 %v8413_v0, 1e-30 }
 0x519   :  { %23834 = vrcp.f32 %v8423_v2 }
 0x51a   :  { %23836 = vrcp.f32 %v8424_v20  ;;  %v4726_v10 = vpop.xlane.xlu1 %4725 }
 0x51b   :  { %23838 = vrcp.f32 %v8425_v27  ;;  %v4730_v46 = vmax.f32 %v4726_v10, 1e-30 }
 0x523   :  { %v23835_v37 = vpop.eup %23834 }
 0x524   :  { %v8431_v44 = vmul.f32 %v23835_v37, %v8423_v2  ;;  %v23837_v1 = vpop.eup %23836 }
 0x525   :  { %v8432_v22 = vmul.f32 %v23837_v1, %v8424_v20  ;;  %v23839_v21 = vpop.eup %23838  ;;  %v8468_v20 = vld [vmem:[%s26449_s8 + $0x8] sm:$0xff] }
 0x526   :  { %v8435_v4 = vsub.f32 2.0, %v8431_v44  ;;  %v8433_v9 = vmul.f32 %v23839_v21, %v8425_v27  ;;  %v8487_v27 = vand.u32 4294901760, %v8467_v33 }
 0x527   :  { %v8436_v24 = vsub.f32 2.0, %v8432_v22  ;;  %v8471_v22 = vld [vmem:[%s26449_s8 + $0x20] sm:$0xff] }
 0x528   :  { %v8439_v18 = vmul.f32 %v23835_v37, %v8435_v4  ;;  %v8437_v28 = vsub.f32 2.0, %v8433_v9  ;;  %v8499_v9 = vand.u32 4294901760, %v8471_v22 }
 0x529   :  { %v8440_v29 = vmul.f32 %v23837_v1, %v8436_v24 }
 0x52a   :  { %v8441_v17 = vmul.f32 %v23839_v21, %v8437_v28  ;;  %v8472_v21 = vld [vmem:[%s26449_s8 + $0x28] sm:$0xff] }
 0x52b   :  { %v8502_v28 = vand.u32 4294901760, %v8472_v21 }
 0x53a   :  { %v8422_v12 = vpop.xlane.xlu0 %8421 }
 0x53b   :  { %v8426_v36 = vmax.f32 %v8422_v12, 1e-30 }
 0x53d   :  { %23840 = vrcp.f32 %v8426_v36 }
 0x53e   :  { %v4720_v39 = vpop.xlane.xlu0 %4719 }
 0x53f   :  { %v4728_v43 = vmax.f32 %v4720_v39, 1e-30  ;;  %v24941_v39 = vsub.f32 %v8472_v21, %v8502_v28 }
 0x541   :  { %23842 = vrcp.f32 %v4728_v43  ;;  %v8607_v10 = vand.u32 4294901760, %v24941_v39 }
 0x542   :  { %v4723_v42 = vpop.xlane.xlu0 %4722 }
 0x543   :  { %v4729_v45 = vmax.f32 %v4723_v42, 1e-30 }
 0x545   :  { %23844 = vrcp.f32 %v4729_v45 }
 0x546   :  { %23846 = vrcp.f32 %v4730_v46 }
 0x547   :  { %v23841_v47 = vpop.eup %23840 }
 0x548   :  { %v8434_v54 = vmul.f32 %v23841_v47, %v8426_v36 }
 0x54a   :  { %v8438_v14 = vsub.f32 2.0, %v8434_v54 }
 0x54b   :  { %v23843_v52 = vpop.eup %23842 }
 0x54c   :  { %v4736_v55 = vmul.f32 %v23843_v52, %v4728_v43  ;;  %v8442_v62 = vmul.f32 %v23841_v47, %v8438_v14  ;;  %v8473_v47 = vld [vmem:[%s26449_s8 + $0x30] sm:$0xff] }
 0x54e   :  { %v4740_v58 = vsub.f32 2.0, %v4736_v55 }
 0x54f   :  { %v23845_v57 = vpop.eup %23844 }
 0x550   :  { %v4737_v59 = vmul.f32 %v23845_v57, %v4729_v45  ;;  %v23847_v60 = vpop.eup %23846  ;;  %v4744_v26 = vmul.f32 %v23843_v52, %v4740_v58  ;;  %v8505_v52 = vand.u32 4294901760, %v8473_v47 }
 0x551   :  { %v4738_v63 = vmul.f32 %v23847_v60, %v4730_v46 }
 0x552   :  { %v4741_v0 = vsub.f32 2.0, %v4737_v59  ;;  %v4748_v4 = vmul.f32 %v4744_v26, %v24752_v15  ;;  %v8469_v15 = vld [vmem:[%s26449_s8 + $0x10] sm:$0xff]  ;;  %v24968_v55 = vsub.f32 %v8473_v47, %v8505_v52 }
 0x553   :  { %v4742_v53 = vsub.f32 2.0, %v4738_v63  ;;  %v8493_v1 = vand.u32 4294901760, %v8469_v15 }
 0x554   :  { %v4745_v44 = vmul.f32 %v23845_v57, %v4741_v0  ;;  %v8614_v14 = vand.u32 4294901760, %v24968_v55 }
 0x55e   :  { %v7051_v6 = vpop.f32.mrb[14].mxu0 }
 0x55f   :  { %v24894_v34 = vmul.f32 %v8439_v18, %v7051_v6  ;;  %v21604_v7 = vpop.f32.mrb[15].mxu0  ;;  %v4746_v18 = vmul.f32 %v23847_v60, %v4742_v53  ;;  %v4749_v6 = vmul.f32 %v4745_v44, %v24754_v16  ;;  %v8490_v16 = vand.u32 4294901760, %v8468_v20 }
 0x560   :  { %v8615_v44 = vsub.f32 %v24968_v55, %v8614_v14 }
 0x561   :  { %v4750_v7 = vmul.f32 %v4746_v18, %v24756_v23  ;;  %v8470_v23 = vld [vmem:[%s26449_s8 + $0x18] sm:$0xff] }
 0x562   :  { %v8496_v24 = vand.u32 4294901760, %v8470_v23  ;;  %v8616_v18 = vand.u32 4294901760, %v8615_v44 }
 0x564   :  { %v24974_v59 = vpack.c.bf16 %v8496_v24, %v8493_v1 }
 0x586   :  { %v7503_v30 = vpop.f32.mrb[14].mxu1 }
 0x587   :  { %v8444_v31 = vmul.f32 %v8440_v29, %v7503_v30  ;;  %v21634_v38 = vpop.f32.mrb[15].mxu1  ;;  %v24925_v29 = vsub.f32 %v8467_v33, %v8487_v27  ;;  %v24927_v30 = vsub.f32 %v8468_v20, %v8490_v16 }
 0x588   :  { %v24931_v38 = vpack.c.bf16 %v8490_v16, %v8487_v27 }
 0x589   :  { %8448 = vrot.lane.b32.xlu0 %v8444_v31, %s26475_s5  ;;  %v24929_v31 = vsub.f32 %v8469_v15, %v8493_v1 }
 0x58a   :  { %v7955_v40 = vpop.f32.mrb[16].mxu0  ;;  %22969 = vmatpush3.bf16.msra.mxu1 %v24931_v38 }
 0x58b   :  { %v8445_v35 = vmul.f32 %v8441_v17, %v7955_v40  ;;  %v21664_v41 = vpop.f32.mrb[17].mxu0  ;;  %v24933_v17 = vsub.f32 %v8470_v23, %v8496_v24  ;;  %v24935_v40 = vsub.f32 %v8471_v22, %v8499_v9  ;;  %v8586_v12 = vand.u32 4294901760, %v24929_v31  ;;  %22970 = vmatprep.subr.bf16.mxu1 %v23944_v3 }
 0x58c   :  { %v8579_v41 = vand.u32 4294901760, %v24927_v30 }
 0x58d   :  { %8452 = vrot.lane.b32.xlu1 %v8445_v35, %s26477_s1  ;;  %v8572_v35 = vand.u32 4294901760, %v24925_v29  ;;  %v8593_v36 = vand.u32 4294901760, %v24933_v17  ;;  %v8600_v45 = vand.u32 4294901760, %v24935_v40 }
 0x58e   :  { %22972 = vmatpush3.bf16.msra.mxu1 %v24974_v59 }
 0x58f   :  { %v23016_v43 = vpack.c.bf16 %v8579_v41, %v8572_v35  ;;  %v23019_v42 = vpack.c.bf16 %v8593_v36, %v8586_v12  ;;  %v23022_v46 = vpack.c.bf16 %v8607_v10, %v8600_v45  ;;  %22973 = vmatprep.subr.bf16.mxu1 %v23944_v3  ;;  %v8573_v47 = vsub.f32 %v24925_v29, %v8572_v35 }
 0x591   :  { %23017 = vmatpush3.bf16.msra.mxu0 %v23016_v43 }
 0x592   :  { %23018 = vmatprep.subr.bf16.mxu0 %v23944_v3 }
 0x595   :  { %23020 = vmatpush3.bf16.msra.mxu0 %v23019_v42 }
 0x596   :  { %23021 = vmatprep.subr.bf16.mxu0 %v23944_v3 }
 0x599   :  { %23023 = vmatpush3.bf16.msra.mxu0 %v23022_v46 }
 0x59a   :  { %23024 = vmatprep.subr.bf16.mxu0 %v23944_v3 }
 0x5a8   :  { %4716 = vadd.xlane.f32.xlu0 %v4715_v50  ;;  %v8474_v50 = vld [vmem:[%s26449_s8 + $0x38] sm:$0xff] }
 0x5a9   :  { %v8508_v54 = vand.u32 4294901760, %v8474_v50 }
 0x5ab   :  { %v24970_v57 = vsub.f32 %v8474_v50, %v8508_v54  ;;  %v8580_v50 = vsub.f32 %v24927_v30, %v8579_v41 }
 0x5ad   :  { %v8621_v58 = vand.u32 4294901760, %v24970_v57 }
 0x5af   :  { %v23025_v60 = vpack.c.bf16 %v8621_v58, %v8614_v14  ;;  %v8587_v14 = vsub.f32 %v24929_v31, %v8586_v12  ;;  %v8608_v12 = vsub.f32 %v24941_v39, %v8607_v10  ;;  %v22995_v10 = vpack.c.bf16 %v24933_v17, %v24929_v31  ;;  %v9057_v31 = vld [vmem:[%s26451_s10] sm:$0xff] }
 0x5b1   :  { %23026 = vmatpush3.bf16.msra.mxu0 %v23025_v60 }
 0x5b2   :  { %v8407_v13 = vpop.f32.mrb[16].mxu1  ;;  %23039 = vmatprep.subr.bf16.mxu0 %v23944_v3 }
 0x5b3   :  { %v8446_v2 = vmul.f32 %v8442_v62, %v8407_v13  ;;  %v21694_v37 = vpop.f32.mrb[17].mxu1  ;;  %v24978_v62 = vpack.c.bf16 %v8502_v28, %v8499_v9  ;;  %v24982_v13 = vpack.c.bf16 %v8508_v54, %v8505_v52 }
 0x5b5   :  { %8456 = vrot.lane.b32.xlu1 %v8446_v2, %s26479_s26  ;;  %22975 = vmatpush3.bf16.msra.mxu1 %v24978_v62 }
 0x5b6   :  { %22976 = vmatprep.subr.bf16.mxu1 %v23944_v3 }
 0x5b9   :  { %4752 = vrot.lane.b32.xlu1 %v4748_v4, %s26475_s5  ;;  %22978 = vmatpush3.bf16.msra.mxu1 %v24982_v13  ;;  %v8622_v4 = vsub.f32 %v24970_v57, %v8621_v58  ;;  %v8594_v58 = vsub.f32 %v24933_v17, %v8593_v36  ;;  %v9072_v17 = vand.u32 4294901760, %v9057_v31  ;;  %s26499_s5 = sld [smem:[#allocation13_spill]] }
 0x5ba   :  { %22979 = vmatprep.subr.bf16.mxu1 %v23944_v3 }
 0x5bd   :  { %4756 = vrot.lane.b32.xlu1 %v4749_v6, %s26477_s1  ;;  %v8623_v6 = vand.u32 4294901760, %v8622_v4  ;;  %v22998_v4 = vpack.c.bf16 %v24941_v39, %v24935_v40  ;;  %v9059_v39 = vld [vmem:[%s26451_s10 + $0x10] sm:$0xff] }
 0x5c1   :  { %4760 = vrot.lane.b32.xlu1 %v4750_v7, %s26479_s26  ;;  %v22989_v7 = vpack.c.bf16 %v8623_v6, %v8616_v18  ;;  %v25076_v6 = vsub.f32 %v9057_v31, %v9072_v17 }
 0x5fb   :  { %v8449_v63 = vpop.permute.xlu0 %8448 }
 0x5fc   :  { %v8459_v0 = vsel %vm1075_vm2, %v24894_v34, %v8449_v63  ;;  %v23001_v34 = vpack.c.bf16 %v24970_v57, %v24968_v55  ;;  %v8574_v55 = vand.u32 4294901760, %v8573_v47  ;;  %v8581_v57 = vand.u32 4294901760, %v8580_v50 }
 0x5fd   :  { %v8588_v63 = vand.u32 4294901760, %v8587_v14 }
 0x5fe   :  { %v22980_v60 = vpack.c.bf16 %v8581_v57, %v8574_v55 }
 0x5ff   :  { %v8453_v26 = vpop.permute.xlu1 %8452 }
 0x600   :  { %v8460_v2 = vsel %vm4764_vm5, %v8459_v0, %v8453_v26  ;;  %v8595_v26 = vand.u32 4294901760, %v8594_v58  ;;  %v8601_v0 = vsub.f32 %v24935_v40, %v8600_v45  ;;  %v22992_v45 = vpack.c.bf16 %v24927_v30, %v24925_v29 }
 0x602   :  { %v22983_v36 = vpack.c.bf16 %v8595_v26, %v8588_v63 }
 0x627   :  { %v8457_v37 = vpop.permute.xlu1 %8456 }
 0x628   :  { %v8461_v53 = vsel %vm4766_vm6, %v8460_v2, %v8457_v37  ;;  %v8602_v37 = vand.u32 4294901760, %v8601_v0 }
 0x629   :  { %8463 = vrot.lane.b32.xlu1 %v8461_v53, %s23951_s0  ;;  %v8609_v53 = vand.u32 4294901760, %v8608_v12  ;;  %v9557_v12 = vld [vmem:[%s26453_s12] sm:$0xff] }
 0x62b   :  { %v4753_v23 = vpop.permute.xlu1 %4752  ;;  %v22986_v44 = vpack.c.bf16 %v8609_v53, %v8602_v37 }
 0x62f   :  { %v4757_v22 = vpop.permute.xlu1 %4756 }
 0x633   :  { %v4761_v9 = vpop.permute.xlu1 %4760 }
 0x635   :  { %v4717_v33 = vpop.xlane.xlu0 %4716 }
 0x636   :  { %v4727_v20 = vmax.f32 %v4717_v33, 1e-30 }
 0x638   :  { %23848 = vrcp.f32 %v4727_v20 }
 0x642   :  { %v23849_v15 = vpop.eup %23848 }
 0x643   :  { %v4735_v27 = vmul.f32 %v23849_v15, %v4727_v20 }
 0x645   :  { %v4739_v16 = vsub.f32 2.0, %v4735_v27 }
 0x647   :  { %v4743_v1 = vmul.f32 %v23849_v15, %v4739_v16  ;;  %v9153_v15 = vand.u32 4294901760, %v25076_v6 }
 0x649   :  { %v4747_v21 = vmul.f32 %v4743_v1, %v24732_v11  ;;  %v9154_v1 = vsub.f32 %v25076_v6, %v9153_v15 }
 0x64b   :  { %v4763_v24 = vsel %vm1075_vm2, %v4747_v21, %v4753_v23  ;;  %v9155_v21 = vand.u32 4294901760, %v9154_v1 }
 0x64c   :  { %v4765_v28 = vsel %vm4764_vm5, %v4763_v24, %v4757_v22 }
 0x64d   :  { %v4767_v43 = vsel %vm4766_vm6, %v4765_v28, %v4761_v9 }
 0x69b   :  { %v8464_v42 = vpop.permute.xlu1 %8463 }
 0x69c   :  { %v8466_v46 = vsel %vm85_vm1, %v4767_v43, %v8464_v42 }
 0x69d   :  { %v8484_v11 = vsel %vm8482_vm7, %v8466_v46, 0 }
 0x69e   :  { %v8559_v52 = vand.u32 4294901760, %v8484_v11 }
 0x6a0   :  { %v8560_v54 = vsub.f32 %v8484_v11, %v8559_v52  ;;  %21788 = vmatmul.mubr.f32.vlgmr.msra.gmra.mrb[18].mxu0 %v8559_v52 }
 0x6a1   :  { %21817 = vmatprep.mubr.msk.f32.mxu0 %vm23945_vm0, %v23946_v8 }
 0x6a2   :  { %v8561_v35 = vand.u32 4294901760, %v8560_v54 }
 0x6a4   :  { %v8562_v41 = vsub.f32 %v8560_v54, %v8561_v35 }
 0x6a6   :  { %v8563_v2 = vand.u32 4294901760, %v8562_v41 }
 0x6a8   :  { %21712 = vmatmul.mubr.f32.vlgmr.msra.gmra.mrb[18].mxu1 %v8563_v2  ;;  %v9558_v2 = vld [vmem:[%s26453_s12 + $0x8] sm:$0xff] }
 0x6a9   :  { %22981 = vmatpush3.bf16.msra.mxu1 %v22980_v60  ;;  %21730 = vmatprep.mubr.msk.f32.mxu1 %vm23945_vm0, %v23946_v8  ;;  %v9579_v37 = vand.u32 4294901760, %v9558_v2 }
 0x6aa   :  { %22982 = vmatprep.subr.bf16.mxu1 %v23944_v3 }
 0x6ad   :  { %22984 = vmatpush3.bf16.msra.mxu1 %v22983_v36  ;;  %v9576_v36 = vand.u32 4294901760, %v9557_v12 }
 0x6ae   :  { %22985 = vmatprep.subr.bf16.mxu1 %v23944_v3 }
 0x6b1   :  { %22987 = vmatpush3.bf16.msra.mxu1 %v22986_v44  ;;  %v25119_v44 = vpack.c.bf16 %v9579_v37, %v9576_v36 }
 0x6b2   :  { %22988 = vmatprep.subr.bf16.mxu1 %v23944_v3 }
 0x6b5   :  { %22990 = vmatpush3.bf16.msra.mxu1 %v22989_v7 }
 0x6b6   :  { %22991 = vmatprep.subr.bf16.mxu1 %v23944_v3 }
 0x6b8   :  { %21731 = vmatmul.mubr.f32.vlgmr.msra.gmra.mrb[20].mxu1 %v8559_v52 }
 0x6b9   :  { %22993 = vmatpush3.bf16.msra.mxu1 %v22992_v45  ;;  %21749 = vmatprep.mubr.msk.f32.mxu1 %vm23945_vm0, %v23946_v8  ;;  %v25121_v45 = vsub.f32 %v9557_v12, %v9576_v36 }
 0x6ba   :  { %22994 = vmatprep.subr.bf16.mxu1 %v23944_v3 }
 0x6bd   :  { %22996 = vmatpush3.bf16.msra.mxu1 %v22995_v10  ;;  %v25123_v10 = vsub.f32 %v9558_v2, %v9579_v37 }
 0x6be   :  { %22997 = vmatprep.subr.bf16.mxu1 %v23944_v3 }
 0x6c1   :  { %22999 = vmatpush3.bf16.msra.mxu1 %v22998_v4 }
 0x6c2   :  { %23000 = vmatprep.subr.bf16.mxu1 %v23944_v3 }
 0x6c5   :  { %23002 = vmatpush3.bf16.msra.mxu1 %v23001_v34 }
 0x6c6   :  { %23003 = vmatprep.subr.bf16.mxu1 %v23944_v3 }
 0x6c8   :  { %21750 = vmatmul.mubr.f32.vlgmr.msra.gmra.mrb[22].mxu1 %v8560_v54 }
 0x6c9   :  { %23005 = vmatpush3.bf16.msra.mxu1 %v24931_v38  ;;  %21768 = vmatprep.mubr.msk.f32.mxu1 %vm23945_vm0, %v23946_v8 }
 0x6ca   :  { %23006 = vmatprep.subr.bf16.mxu1 %v23944_v3 }
 0x6cd   :  { %23008 = vmatpush3.bf16.msra.mxu1 %v24974_v59 }
 0x6ce   :  { %23009 = vmatprep.subr.bf16.mxu1 %v23944_v3 }
 0x6d1   :  { %23011 = vmatpush3.bf16.msra.mxu1 %v24978_v62 }
 0x6d2   :  { %23012 = vmatprep.subr.bf16.mxu1 %v23944_v3 }
 0x6d5   :  { %23014 = vmatpush3.bf16.msra.mxu1 %v24982_v13 }
 0x6d6   :  { %23027 = vmatprep.subr.bf16.mxu1 %v23944_v3 }
 0x6d8   :  { %21769 = vmatmul.mubr.f32.vlgmr.msra.gmra.mrb[24].mxu1 %v8561_v35 }
 0x6d9   :  { %23029 = vmatpush3.bf16.msra.mxu1 %v24931_v38  ;;  %21806 = vmatprep.mubr.msk.f32.mxu1 %vm23945_vm0, %v23946_v8  ;;  %v9058_v38 = vld [vmem:[%s26451_s10 + $0x8] sm:$0xff] }
 0x6da   :  { %23030 = vmatprep.subr.bf16.mxu1 %v23944_v3  ;;  %v9075_v40 = vand.u32 4294901760, %v9058_v38 }
 0x6dc   :  { %v25074_v18 = vpack.c.bf16 %v9075_v40, %v9072_v17  ;;  %v25078_v7 = vsub.f32 %v9058_v38, %v9075_v40 }
 0x6dd   :  { %23032 = vmatpush3.bf16.msra.mxu1 %v24974_v59  ;;  %v9060_v59 = vld [vmem:[%s26451_s10 + $0x18] sm:$0xff] }
 0x6de   :  { %23033 = vmatprep.subr.bf16.mxu1 %v23944_v3  ;;  %23041 = vmatpush3.bf16.msra.mxu0 %v25074_v18  ;;  %v9160_v27 = vand.u32 4294901760, %v25078_v7  ;;  %v23052_v54 = vpack.c.bf16 %v25078_v7, %v25076_v6  ;;  %v9560_v6 = vld [vmem:[%s26453_s12 + $0x18] sm:$0xff] }
 0x6df   :  { %23042 = vmatprep.subr.bf16.mxu0 %v23944_v3 }
 0x6e0   :  { %v9161_v22 = vsub.f32 %v25078_v7, %v9160_v27  ;;  %v25109_v41 = vpack.c.bf16 %v9160_v27, %v9153_v15 }
 0x6e1   :  { %23035 = vmatpush3.bf16.msra.mxu1 %v24978_v62  ;;  %v9078_v62 = vand.u32 4294901760, %v9059_v39 }
 0x6e2   :  { %23036 = vmatprep.subr.bf16.mxu1 %v23944_v3  ;;  %v9162_v24 = vand.u32 4294901760, %v9161_v22 }
 0x6e3   :  { %v25080_v34 = vsub.f32 %v9059_v39, %v9078_v62  ;;  %v23894_v39 = vld [vmem:[%s26492_s28] sm:$0xff] }
 0x6e4   :  { %v25096_v43 = vpack.c.bf16 %v9162_v24, %v9155_v21 }
 0x6e5   :  { %23038 = vmatpush3.bf16.msra.mxu1 %v24982_v13  ;;  %v9081_v13 = vand.u32 4294901760, %v9060_v59  ;;  %v9167_v9 = vand.u32 4294901760, %v25080_v34 }
 0x6e6   :  { %23075 = vmatprep.subr.bf16.mxu1 %v23944_v3 }
 0x6e7   :  { %v25082_v33 = vsub.f32 %v9060_v59, %v9081_v13  ;;  %v25085_v20 = vpack.c.bf16 %v9081_v13, %v9078_v62  ;;  %v9168_v42 = vsub.f32 %v25080_v34, %v9167_v9 }
 0x6e8   :  { %21807 = vmatmul.mubr.f32.vlgmr.msra.gmra.mrb[26].mxu1 %v8559_v52  ;;  %v20287_v52 = vld [vmem:[%s26450_s9] ss:$0 sm:$0xff] }
 0x6e9   :  { %21891 = vmatprep.mubr.msk.f32.mxu1 %vm23945_vm0, %v23946_v8  ;;  %23044 = vmatpush3.bf16.msra.mxu0 %v25085_v20  ;;  %v9174_v28 = vand.u32 4294901760, %v25082_v33  ;;  %v9169_v47 = vand.u32 4294901760, %v9168_v42  ;;  %v23055_v57 = vpack.c.bf16 %v25082_v33, %v25080_v34  ;;  %v9585_v34 = vand.u32 4294901760, %v9560_v6 }
 0x6ea   :  { %23045 = vmatprep.subr.bf16.mxu0 %v23944_v3  ;;  %23077 = vmatpush3.bf16.msra.mxu1 %v25119_v44 }
 0x6eb   :  { %v9175_v46 = vsub.f32 %v25082_v33, %v9174_v28  ;;  %v25111_v60 = vpack.c.bf16 %v9174_v28, %v9167_v9  ;;  %23078 = vmatprep.subr.bf16.mxu1 %v23944_v3 }
 0x6ed   :  { %v9176_v50 = vand.u32 4294901760, %v9175_v46 }
 0x6ef   :  { %v25100_v11 = vpack.c.bf16 %v9176_v50, %v9169_v47 }
 0x773   :  { %v8940_v29 = vpop.f32.mrb[18].mxu0 }
 0x774   :  { %v21789_v30 = vpop.f32.mrb[19].mxu0 }
 0x77b   :  { %v8565_v16 = vpop.f32.mrb[18].mxu1 }
 0x77c   :  { %v21713_v23 = vpop.f32.mrb[19].mxu1  ;;  %v8566_v55 = vadd.f32 %v20287_v52, %v8565_v16 }
 0x78b   :  { %v8676_v14 = vpop.f32.mrb[20].mxu1 }
 0x78c   :  { %v8677_v58 = vadd.f32 %v8676_v14, %v8566_v55  ;;  %v21732_v35 = vpop.f32.mrb[21].mxu1  ;;  %v9047_v55 = vlaneseq }
 0x79b   :  { %v8764_v63 = vpop.f32.mrb[22].mxu1 }
 0x79c   :  { %v8765_v26 = vadd.f32 %v8764_v63, %v8677_v58  ;;  %v21751_v0 = vpop.f32.mrb[23].mxu1  ;;  %v25132_v58 = vshrl.u32 %v9047_v55, 7  ;;  %v25138_v63 = vld [vmem:[%s26461_s20] sm:$0xf]  ;;  %s26498_s20 = sld [smem:[#allocation14_spill]] }
 0x79e   :  { %v9049_v35 = vsub.s32 0, %v25132_v58 }
 0x7a0   :  { %v9050_v0 = vrot.slane %v25138_v63, %v9049_v35 }
 0x7ab   :  { %v8845_v53 = vpop.f32.mrb[24].mxu1 }
 0x7ac   :  { %v8846_v4 = vadd.f32 %v8845_v53, %v8765_v26  ;;  %v21770_v30 = vpop.f32.mrb[25].mxu1  ;;  %v9054_v26 = vsub.s32 1, %v25132_v58 }
 0x7ae   :  { %v8941_v31 = vadd.f32 %v8940_v29, %v8846_v4  ;;  %v9055_v36 = vrot.slane %v25138_v63, %v9054_v26 }
 0x7bb   :  { %v9019_v38 = vpop.f32.mrb[26].mxu1 }
 0x7bc   :  { %v9020_v17 = vadd.f32 %v9019_v38, %v8941_v31  ;;  %v21808_v40 = vpop.f32.mrb[27].mxu1 }
 0x7be   :  { %v9024_v59 = vadd.f32 %v23894_v39, %v9020_v17 }
 0x7c0   :  { %v9025_v62 = vsel %vm85_vm1, %v9024_v59, 0.0 }
 0x7c1   :  { %v9026_v13 = vrot.slane %v9025_v62, 4 }
 0x7c3   :  { %v9027_v15 = vadd.f32 %v9026_v13, %v9025_v62 }
 0x7c5   :  { %v9028_v27 = vrot.slane %v9027_v15, 2 }
 0x7c7   :  { %v9029_v16 = vadd.f32 %v9028_v27, %v9027_v15  ;;  %v25223_v15 = vsub.f32 %v9560_v6, %v9585_v34 }
 0x7c9   :  { %v9030_v23 = vrot.slane %v9029_v16, 1 }
 0x7cb   :  { %v9031_v1 = vadd.f32 %v9030_v23, %v9029_v16 }
 0x7cd   :  { %v9033_v22 = vmul.f32 0.125, %v9031_v1 }
 0x7cf   :  { %v9034_v29 = vsub.f32 %v9024_v59, %v9033_v22  ;;  %v9661_v22 = vand.u32 4294901760, %v25121_v45 }
 0x7d1   :  { %v9035_v21 = vmul.f32 %v9034_v29, %v9034_v29 }
 0x7d3   :  { %v9036_v24 = vsel %vm85_vm1, %v9035_v21, 0.0  ;;  %v9662_v21 = vsub.f32 %v25121_v45, %v9661_v22 }
 0x7d4   :  { %v9037_v9 = vrot.slane %v9036_v24, 4 }
 0x7d6   :  { %v9038_v28 = vadd.f32 %v9037_v9, %v9036_v24  ;;  %v9663_v9 = vand.u32 4294901760, %v9662_v21  ;;  %v20288_v21 = vld [vmem:[%s26452_s11] ss:$0 sm:$0xff]  ;;  %s26505_s11 = smov 24  }
 0x7d8   :  { %v9039_v42 = vrot.slane %v9038_v28, 2 }
 0x7da   :  { %v9040_v46 = vadd.f32 %v9039_v42, %v9038_v28 }
 0x7dc   :  { %v9041_v47 = vrot.slane %v9040_v46, 1 }
 0x7de   :  { %v9042_v50 = vadd.f32 %v9041_v47, %v9040_v46  ;;  %v9682_v46 = vand.u32 4294901760, %v25223_v15 }
 0x7e0   :  { %v9043_v52 = vmul.f32 0.125, %v9042_v50 }
 0x7e2   :  { %v9044_v14 = vadd.f32 1e-05, %v9043_v52  ;;  %v9683_v52 = vsub.f32 %v25223_v15, %v9682_v46 }
 0x7e4   :  { %23850 = vrsqrt.f32 %v9044_v14  ;;  %v9684_v14 = vand.u32 4294901760, %v9683_v52 }
 0x7ee   :  { %v23851_v12 = vpop.eup %23850 }
 0x7ef   :  { %v9046_v2 = vmul.f32 %v23851_v12, %v9034_v29  ;;  %v9668_v29 = vand.u32 4294901760, %v25123_v10 }
 0x7f1   :  { %v9051_v37 = vmul.f32 %v9050_v0, %v9046_v2  ;;  %v9669_v24 = vsub.f32 %v25123_v10, %v9668_v29 }
 0x7f3   :  { %v25147_v53 = vadd.f32 %v9055_v36, %v9051_v37  ;;  %v9670_v28 = vand.u32 4294901760, %v9669_v24 }
 0x7f5   :  { %v9069_v4 = vsel %vm85_vm1, %v25147_v53, 0  ;;  %v23088_v47 = vpack.c.bf16 %v9670_v28, %v9663_v9 }
 0x7f6   :  { %v9140_v30 = vand.u32 4294901760, %v9069_v4 }
 0x7f8   :  { %v9141_v31 = vsub.f32 %v9069_v4, %v9140_v30 }
 0x7fa   :  { %v9142_v38 = vand.u32 4294901760, %v9141_v31 }
 0x7fc   :  { %v9143_v17 = vsub.f32 %v9141_v31, %v9142_v38 }
 0x7fe   :  { %v9144_v40 = vand.u32 4294901760, %v9143_v17 }
 0x800   :  { %21818 = vmatmul.mubr.f32.vlgmr.msra.gmra.mrb[20].mxu0 %v9144_v40 }
 0x801   :  { %23047 = vmatpush3.bf16.msra.mxu0 %v25096_v43  ;;  %21828 = vmatprep.mubr.msk.f32.mxu0 %vm23945_vm0, %v23946_v8  ;;  %v9562_v43 = vld [vmem:[%s26453_s12 + $0x28] sm:$0xff] }
 0x802   :  { %23048 = vmatprep.subr.bf16.mxu0 %v23944_v3 }
 0x805   :  { %23050 = vmatpush3.bf16.msra.mxu0 %v25100_v11 }
 0x806   :  { %23051 = vmatprep.subr.bf16.mxu0 %v23944_v3 }
 0x808   :  { %21829 = vmatmul.mubr.f32.vlgmr.msra.gmra.mrb[20].mxu0 %v9140_v30 }
 0x809   :  { %23053 = vmatpush3.bf16.msra.mxu0 %v23052_v54  ;;  %21839 = vmatprep.mubr.msk.f32.mxu0 %vm23945_vm0, %v23946_v8  ;;  %v9591_v54 = vand.u32 4294901760, %v9562_v43 }
 0x80a   :  { %23054 = vmatprep.subr.bf16.mxu0 %v23944_v3 }
 0x80b   :  { %v25227_v16 = vsub.f32 %v9562_v43, %v9591_v54 }
 0x80d   :  { %23056 = vmatpush3.bf16.msra.mxu0 %v23055_v57  ;;  %v9696_v12 = vand.u32 4294901760, %v25227_v16 }
 0x80e   :  { %23057 = vmatprep.subr.bf16.mxu0 %v23944_v3 }
 0x80f   :  { %v9697_v37 = vsub.f32 %v25227_v16, %v9696_v12 }
 0x810   :  { %21840 = vmatmul.mubr.f32.vlgmr.msra.gmra.mrb[20].mxu0 %v9141_v31 }
 0x811   :  { %23059 = vmatpush3.bf16.msra.mxu0 %v25074_v18  ;;  %21850 = vmatprep.mubr.msk.f32.mxu0 %vm23945_vm0, %v23946_v8 }
 0x812   :  { %23060 = vmatprep.subr.bf16.mxu0 %v23944_v3 }
 0x815   :  { %23062 = vmatpush3.bf16.msra.mxu0 %v25085_v20 }
 0x816   :  { %23063 = vmatprep.subr.bf16.mxu0 %v23944_v3 }
 0x818   :  { %21851 = vmatmul.mubr.f32.vlgmr.msra.gmra.mrb[20].mxu0 %v9142_v38 }
 0x819   :  { %23065 = vmatpush3.bf16.msra.mxu0 %v25109_v41  ;;  %21861 = vmatprep.mubr.msk.f32.mxu0 %vm23945_vm0, %v23946_v8  ;;  %v9563_v41 = vld [vmem:[%s26453_s12 + $0x30] sm:$0xff] }
 0x81a   :  { %23066 = vmatprep.subr.bf16.mxu0 %v23944_v3  ;;  %v9594_v39 = vand.u32 4294901760, %v9563_v41 }
 0x81c   :  { %v25229_v23 = vsub.f32 %v9563_v41, %v9594_v39  ;;  %v25261_v41 = vpack.c.bf16 %v9668_v29, %v9661_v22 }
 0x81d   :  { %23068 = vmatpush3.bf16.msra.mxu0 %v25111_v60  ;;  %v9564_v60 = vld [vmem:[%s26453_s12 + $0x38] sm:$0xff] }
 0x81e   :  { %23069 = vmatprep.subr.bf16.mxu0 %v23944_v3  ;;  %v9597_v59 = vand.u32 4294901760, %v9564_v60  ;;  %v9703_v31 = vand.u32 4294901760, %v25229_v23 }
 0x820   :  { %21862 = vmatmul.mubr.f32.vlgmr.msra.gmra.mrb[20].mxu0 %v9140_v30  ;;  %v25219_v62 = vpack.c.bf16 %v9597_v59, %v9594_v39  ;;  %v25231_v1 = vsub.f32 %v9564_v60, %v9597_v59  ;;  %v9704_v40 = vsub.f32 %v25229_v23, %v9703_v31 }
 0x821   :  { %23071 = vmatpush3.bf16.msra.mxu0 %v25074_v18  ;;  %21872 = vmatprep.mubr.msk.f32.mxu0 %vm23945_vm0, %v23946_v8  ;;  %v9559_v18 = vld [vmem:[%s26453_s12 + $0x10] sm:$0xff] }
 0x822   :  { %23072 = vmatprep.subr.bf16.mxu0 %v23944_v3  ;;  %v9582_v7 = vand.u32 4294901760, %v9559_v18  ;;  %v9710_v38 = vand.u32 4294901760, %v25231_v1  ;;  %v9705_v6 = vand.u32 4294901760, %v9704_v40 }
 0x824   :  { %v25195_v33 = vpack.c.bf16 %v9585_v34, %v9582_v7  ;;  %v25221_v13 = vsub.f32 %v9559_v18, %v9582_v7  ;;  %v9711_v18 = vsub.f32 %v25231_v1, %v9710_v38  ;;  %v25267_v59 = vpack.c.bf16 %v9710_v38, %v9703_v31 }
 0x825   :  { %23074 = vmatpush3.bf16.msra.mxu0 %v25085_v20  ;;  %v9561_v20 = vld [vmem:[%s26453_s12 + $0x20] sm:$0xff] }
 0x826   :  { %23111 = vmatprep.subr.bf16.mxu0 %v23944_v3  ;;  %23080 = vmatpush3.bf16.msra.mxu1 %v25195_v33  ;;  %v9588_v11 = vand.u32 4294901760, %v9561_v20  ;;  %v9675_v42 = vand.u32 4294901760, %v25221_v13  ;;  %v9712_v7 = vand.u32 4294901760, %v9711_v18  ;;  %v23103_v43 = vpack.c.bf16 %v25223_v15, %v25221_v13 }
 0x827   :  { %23081 = vmatprep.subr.bf16.mxu1 %v23944_v3 }
 0x828   :  { %21873 = vmatmul.mubr.f32.vlgmr.msra.gmra.mrb[20].mxu0 %v9140_v30  ;;  %v25207_v57 = vpack.c.bf16 %v9591_v54, %v9588_v11  ;;  %v25225_v27 = vsub.f32 %v9561_v20, %v9588_v11  ;;  %v9676_v50 = vsub.f32 %v25221_v13, %v9675_v42  ;;  %v9698_v30 = vand.u32 4294901760, %v9697_v37  ;;  %v10636_v37 = vld [vmem:[%s26498_s20 + $0x10] sm:$0xff]  ;;  %v10146_v13 = vld [vmem:[%s26499_s5 + $0x8] sm:$0xff] }
 0x829   :  { %23113 = vmatpush3.bf16.msra.mxu0 %v25119_v44  ;;  %21948 = vmatprep.mubr.msk.f32.mxu0 %vm23945_vm0, %v23946_v8  ;;  %v23097_v34 = vpack.c.bf16 %v9712_v7, %v9705_v6  ;;  %v23100_v20 = vpack.c.bf16 %v25123_v10, %v25121_v45  ;;  %v23109_v54 = vpack.c.bf16 %v25231_v1, %v25229_v23  ;;  %v10645_v31 = vand.u32 4294901760, %v10636_v37  ;;  %v10147_v23 = vld [vmem:[%s26499_s5 + $0x10] sm:$0xff]  ;;  %v10148_v1 = vld [vmem:[%s26499_s5 + $0x18] sm:$0xff] }
 0x82a   :  { %23114 = vmatprep.subr.bf16.mxu0 %v23944_v3  ;;  %23083 = vmatpush3.bf16.msra.mxu1 %v25207_v57  ;;  %v9677_v55 = vand.u32 4294901760, %v9676_v50  ;;  %v9689_v0 = vand.u32 4294901760, %v25225_v27  ;;  %v23106_v11 = vpack.c.bf16 %v25227_v16, %v25225_v27  ;;  %v25263_v60 = vpack.c.bf16 %v9682_v46, %v9675_v42  ;;  %v10634_v42 = vld [vmem:[%s26498_s20] sm:$0xff]  ;;  %v10635_v46 = vld [vmem:[%s26498_s20 + $0x8] sm:$0xff] }
 0x82b   :  { %23084 = vmatprep.subr.bf16.mxu1 %v23944_v3  ;;  %v10153_v16 = vand.u32 4294901760, %v10146_v13 }
 0x82c   :  { %v23091_v2 = vpack.c.bf16 %v9684_v14, %v9677_v55  ;;  %v9690_v36 = vsub.f32 %v25225_v27, %v9689_v0  ;;  %v25265_v39 = vpack.c.bf16 %v9696_v12, %v9689_v0  ;;  %v10639_v12 = vand.u32 4294901760, %v10634_v42 }
 0x82d   :  { %23116 = vmatpush3.bf16.msra.mxu0 %v25195_v33 }
 0x82e   :  { %23117 = vmatprep.subr.bf16.mxu0 %v23944_v3  ;;  %23086 = vmatpush3.bf16.msra.mxu1 %v25219_v62  ;;  %v9691_v4 = vand.u32 4294901760, %v9690_v36  ;;  %v10642_v36 = vand.u32 4294901760, %v10635_v46 }
 0x82f   :  { %23087 = vmatprep.subr.bf16.mxu1 %v23944_v3 }
 0x830   :  { %v23094_v17 = vpack.c.bf16 %v9698_v30, %v9691_v4  ;;  %v10637_v4 = vld [vmem:[%s26498_s20 + $0x18] sm:$0xff]  ;;  %v25301_v30 = vsub.f32 %v10635_v46, %v10642_v36  ;;  %v25315_v6 = vpack.c.bf16 %v10642_v36, %v10639_v12 }
 0x831   :  { %23119 = vmatpush3.bf16.msra.mxu0 %v25207_v57  ;;  %v10648_v38 = vand.u32 4294901760, %v10637_v4 }
 0x832   :  { %23120 = vmatprep.subr.bf16.mxu0 %v23944_v3  ;;  %v10727_v18 = vand.u32 4294901760, %v25301_v30 }
 0x835   :  { %23122 = vmatpush3.bf16.msra.mxu0 %v25219_v62 }
 0x836   :  { %23135 = vmatprep.subr.bf16.mxu0 %v23944_v3 }
 0x8fb   :  { %v9552_v24 = vpop.f32.mrb[20].mxu0 }
 0x8fc   :  { %v23399_v9 = vadd.f32 %v20288_v21, %v9552_v24  ;;  %v21874_v28 = vpop.f32.mrb[21].mxu0 }
 0x8fe   :  { %v9556_v50 = vmax.f32 %v23399_v9, 0.0 }
 0x900   :  { %v9573_v52 = vsel %vm8482_vm7, %v9556_v50, 0 }
 0x901   :  { %v25273_v55 = vand.u32 4294901760, %v9573_v52 }
 0x903   :  { %v25276_v22 = vsub.f32 %v9573_v52, %v25273_v55 }
 0x905   :  { %v9650_v29 = vand.u32 4294901760, %v25276_v22 }
 0x907   :  { %21949 = vmatmul.mubr.f32.vlgmr.msra.gmra.mrb[22].mxu0 %v9650_v29  ;;  %v9651_v14 = vsub.f32 %v25276_v22, %v9650_v29 }
 0x908   :  { %23137 = vmatpush3.bf16.msra.mxu0 %v25119_v44  ;;  %21986 = vmatprep.mubr.msk.f32.mxu0 %vm23945_vm0, %v23946_v8  ;;  %v25299_v44 = vsub.f32 %v10634_v42, %v10639_v12 }
 0x909   :  { %23138 = vmatprep.subr.bf16.mxu0 %v23944_v3  ;;  %v9652_v0 = vand.u32 4294901760, %v9651_v14 }
 0x90a   :  { %v10720_v40 = vand.u32 4294901760, %v25299_v44  ;;  %v23196_v10 = vpack.c.bf16 %v25301_v30, %v25299_v44 }
 0x90b   :  { %21892 = vmatmul.mubr.f32.vlgmr.msra.gmra.mrb[28].mxu1 %v9652_v0 }
 0x90c   :  { %23089 = vmatpush3.bf16.msra.mxu1 %v23088_v47  ;;  %23140 = vmatpush3.bf16.msra.mxu0 %v25195_v33  ;;  %v25308_v33 = vsub.f32 %v10636_v37, %v10645_v31  ;;  %v25310_v47 = vsub.f32 %v10637_v4, %v10648_v38 }
 0x90d   :  { %23090 = vmatprep.subr.bf16.mxu1 %v23944_v3  ;;  %23141 = vmatprep.subr.bf16.mxu0 %v23944_v3 }
 0x90e   :  { %21910 = vmatprep.mubr.msk.f32.mxu1 %vm23945_vm0, %v23946_v8  ;;  %v10734_v7 = vand.u32 4294901760, %v25308_v33  ;;  %v23199_v15 = vpack.c.bf16 %v25310_v47, %v25308_v33 }
 0x910   :  { %23092 = vmatpush3.bf16.msra.mxu1 %v23091_v2  ;;  %23143 = vmatpush3.bf16.msra.mxu0 %v25207_v57  ;;  %v10721_v57 = vsub.f32 %v25299_v44, %v10720_v40  ;;  %v10728_v2 = vsub.f32 %v25301_v30, %v10727_v18  ;;  %v10735_v9 = vsub.f32 %v25308_v33, %v10734_v7 }
 0x911   :  { %23093 = vmatprep.subr.bf16.mxu1 %v23944_v3  ;;  %23144 = vmatprep.subr.bf16.mxu0 %v23944_v3 }
 0x912   :  { %v10722_v21 = vand.u32 4294901760, %v10721_v57  ;;  %v10729_v24 = vand.u32 4294901760, %v10728_v2  ;;  %v10736_v50 = vand.u32 4294901760, %v10735_v9 }
 0x914   :  { %23095 = vmatpush3.bf16.msra.mxu1 %v23094_v17  ;;  %23146 = vmatpush3.bf16.msra.mxu0 %v25219_v62  ;;  %v10741_v17 = vand.u32 4294901760, %v25310_v47  ;;  %v25329_v62 = vpack.c.bf16 %v10648_v38, %v10645_v31 }
 0x915   :  { %23096 = vmatprep.subr.bf16.mxu1 %v23944_v3  ;;  %23183 = vmatprep.subr.bf16.mxu0 %v23944_v3 }
 0x916   :  { %v10742_v28 = vsub.f32 %v25310_v47, %v10741_v17 }
 0x917   :  { %21987 = vmatmul.mubr.f32.vlgmr.msra.gmra.mrb[24].mxu0 %v25273_v55 }
 0x918   :  { %23098 = vmatpush3.bf16.msra.mxu1 %v23097_v34  ;;  %23185 = vmatpush3.bf16.msra.mxu0 %v25315_v6  ;;  %v23190_v34 = vpack.c.bf16 %v10729_v24, %v10722_v21  ;;  %v10743_v52 = vand.u32 4294901760, %v10742_v28 }
 0x919   :  { %23099 = vmatprep.subr.bf16.mxu1 %v23944_v3  ;;  %23186 = vmatprep.subr.bf16.mxu0 %v23944_v3 }
 0x91a   :  { %22063 = vmatprep.mubr.msk.f32.mxu0 %vm23945_vm0, %v23946_v8  ;;  %v23193_v45 = vpack.c.bf16 %v10743_v52, %v10736_v50 }
 0x91b   :  { %21911 = vmatmul.mubr.f32.vlgmr.msra.gmra.mrb[30].mxu1 %v25273_v55 }
 0x91c   :  { %23101 = vmatpush3.bf16.msra.mxu1 %v23100_v20  ;;  %21929 = vmatprep.mubr.msk.f32.mxu1 %vm23945_vm0, %v23946_v8 }
 0x91d   :  { %23102 = vmatprep.subr.bf16.mxu1 %v23944_v3  ;;  %23188 = vmatpush3.bf16.msra.mxu0 %v25329_v62 }
 0x91e   :  { %23189 = vmatprep.subr.bf16.mxu0 %v23944_v3 }
 0x920   :  { %23104 = vmatpush3.bf16.msra.mxu1 %v23103_v43  ;;  %22064 = vmatmul.mubr.f32.vlgmr.msra.gmra.mrb[26].mxu0 %v24168_v49  ;;  %v10145_v49 = vld [vmem:[%s26499_s5] sm:$0xff]  ;;  %v25396_v43 = vsub.f32 %v10146_v13, %v10153_v16 }
 0x921   :  { %23105 = vmatprep.subr.bf16.mxu1 %v23944_v3  ;;  %23191 = vmatpush3.bf16.msra.mxu0 %v23190_v34  ;;  %v10150_v27 = vand.u32 4294901760, %v10145_v49 }
 0x922   :  { %23192 = vmatprep.subr.bf16.mxu0 %v23944_v3  ;;  %22074 = vmatprep.mubr.msk.f32.mxu0 %vm23945_vm0, %v23946_v8  ;;  %v10238_v29 = vand.u32 4294901760, %v25396_v43 }
 0x923   :  { %v25394_v20 = vsub.f32 %v10145_v49, %v10150_v27  ;;  %v23148_v42 = vpack.c.bf16 %v10153_v16, %v10150_v27 }
 0x924   :  { %23107 = vmatpush3.bf16.msra.mxu1 %v23106_v11  ;;  %v10156_v11 = vand.u32 4294901760, %v10147_v23  ;;  %v10239_v46 = vsub.f32 %v25396_v43, %v10238_v29 }
 0x925   :  { %23108 = vmatprep.subr.bf16.mxu1 %v23944_v3  ;;  %23194 = vmatpush3.bf16.msra.mxu0 %v23193_v45  ;;  %v23160_v31 = vpack.c.bf16 %v25396_v43, %v25394_v20 }
 0x926   :  { %23195 = vmatprep.subr.bf16.mxu0 %v23944_v3  ;;  %v10240_v36 = vand.u32 4294901760, %v10239_v46 }
 0x928   :  { %23110 = vmatpush3.bf16.msra.mxu1 %v23109_v54  ;;  %22075 = vmatmul.mubr.f32.vlgmr.msra.gmra.mrb[26].mxu0 %v24117_v19  ;;  %v10159_v54 = vand.u32 4294901760, %v10148_v1 }
 0x929   :  { %23123 = vmatprep.subr.bf16.mxu1 %v23944_v3  ;;  %23197 = vmatpush3.bf16.msra.mxu0 %v23196_v10 }
 0x92a   :  { %23198 = vmatprep.subr.bf16.mxu0 %v23944_v3  ;;  %22085 = vmatprep.mubr.msk.f32.mxu0 %vm23945_vm0, %v23946_v8  ;;  %v23151_v12 = vpack.c.bf16 %v10159_v54, %v10156_v11 }
 0x92b   :  { %21930 = vmatmul.mubr.f32.vlgmr.msra.gmra.mrb[32].mxu1 %v25276_v22  ;;  %v10231_v22 = vand.u32 4294901760, %v25394_v20 }
 0x92c   :  { %23125 = vmatpush3.bf16.msra.mxu1 %v25261_v41  ;;  %21967 = vmatprep.mubr.msk.f32.mxu1 %vm23945_vm0, %v23946_v8  ;;  %v10244_v41 = vsub.f32 %v10147_v23, %v10156_v11 }
 0x92d   :  { %23126 = vmatprep.subr.bf16.mxu1 %v23944_v3  ;;  %23200 = vmatpush3.bf16.msra.mxu0 %v23199_v15 }
 0x92e   :  { %23201 = vmatprep.subr.bf16.mxu0 %v23944_v3  ;;  %v10245_v14 = vand.u32 4294901760, %v10244_v41 }
 0x930   :  { %23128 = vmatpush3.bf16.msra.mxu1 %v25263_v60  ;;  %22086 = vmatmul.mubr.f32.vlgmr.msra.gmra.mrb[26].mxu0 %v24127_v25  ;;  %v10251_v60 = vsub.f32 %v10148_v1, %v10159_v54  ;;  %v23208_v25 = vpack.c.bf16 %v10727_v18, %v10720_v40  ;;  %v10246_v37 = vsub.f32 %v10244_v41, %v10245_v14 }
 0x931   :  { %23129 = vmatprep.subr.bf16.mxu1 %v23944_v3  ;;  %23203 = vmatpush3.bf16.msra.mxu0 %v25315_v6  ;;  %v23211_v40 = vpack.c.bf16 %v10741_v17, %v10734_v7 }
 0x932   :  { %23204 = vmatprep.subr.bf16.mxu0 %v23944_v3  ;;  %22096 = vmatprep.mubr.msk.f32.mxu0 %vm23945_vm0, %v23946_v8  ;;  %v10252_v0 = vand.u32 4294901760, %v10251_v60  ;;  %v10247_v44 = vand.u32 4294901760, %v10246_v37  ;;  %v23163_v38 = vpack.c.bf16 %v10251_v60, %v10244_v41 }
 0x934   :  { %23131 = vmatpush3.bf16.msra.mxu1 %v25265_v39  ;;  %v10232_v39 = vsub.f32 %v25394_v20, %v10231_v22  ;;  %v10253_v4 = vsub.f32 %v10251_v60, %v10252_v0 }
 0x935   :  { %23132 = vmatprep.subr.bf16.mxu1 %v23944_v3  ;;  %23206 = vmatpush3.bf16.msra.mxu0 %v25329_v62 }
 0x936   :  { %23207 = vmatprep.subr.bf16.mxu0 %v23944_v3  ;;  %v10254_v30 = vand.u32 4294901760, %v10253_v4 }
 0x938   :  { %23134 = vmatpush3.bf16.msra.mxu1 %v25267_v59  ;;  %22097 = vmatmul.mubr.f32.vlgmr.msra.gmra.mrb[26].mxu0 %v24143_v32  ;;  %v10233_v59 = vand.u32 4294901760, %v10232_v39 }
 0x939   :  { %23147 = vmatprep.subr.bf16.mxu1 %v23944_v3  ;;  %23209 = vmatpush3.bf16.msra.mxu0 %v23208_v25 }
 0x93a   :  { %23210 = vmatprep.subr.bf16.mxu0 %v23944_v3  ;;  %22107 = vmatprep.mubr.msk.f32.mxu0 %vm23945_vm0, %v23946_v8  ;;  %v23154_v32 = vpack.c.bf16 %v10240_v36, %v10233_v59  ;;  %v10141_v59 = vsub.s32 3, %v25132_v58 }
 0x93b   :  { %21968 = vmatmul.mubr.f32.vlgmr.msra.gmra.mrb[34].mxu1 %v25273_v55  ;;  %v23157_v55 = vpack.c.bf16 %v10254_v30, %v10247_v44 }
 0x93c   :  { %23149 = vmatpush3.bf16.msra.mxu1 %v23148_v42  ;;  %21997 = vmatprep.mubr.msk.f32.mxu1 %vm23945_vm0, %v23946_v8 }
 0x93d   :  { %23150 = vmatprep.subr.bf16.mxu1 %v23944_v3  ;;  %23212 = vmatpush3.bf16.msra.mxu0 %v23211_v40 }
 0x93e   :  { %23213 = vmatprep.subr.bf16.mxu0 %v23944_v3 }
 0x940   :  { %23152 = vmatpush3.bf16.msra.mxu1 %v23151_v12  ;;  %22108 = vmatmul.mubr.f32.vlgmr.msra.gmra.mrb[26].mxu0 %v24117_v19 }
 0x941   :  { %23153 = vmatprep.subr.bf16.mxu1 %v23944_v3  ;;  %23215 = vmatpush3.bf16.msra.mxu0 %v25315_v6  ;;  %v20289_v6 = vld [vmem:[%s26454_s13] ss:$0 sm:$0xff]  ;;  %s26500_s13 = smov 104  }
 0x942   :  { %22118 = vmatprep.mubr.msk.f32.mxu0 %vm23945_vm0, %v23946_v8  ;;  %23216 = vmatprep.subr.bf16.mxu0 %v23944_v3 }
 0x943   :  { %21998 = vmatmul.mubr.f32.vlgmr.msra.gmra.mrb[36].mxu1 %v24210_v5  ;;  %v23172_v5 = vpack.c.bf16 %v10238_v29, %v10231_v22 }
 0x944   :  { %23155 = vmatpush3.bf16.msra.mxu1 %v23154_v32  ;;  %22008 = vmatprep.mubr.msk.f32.mxu1 %vm23945_vm0, %v23946_v8  ;;  %v10142_v32 = vrot.slane %v25138_v63, %v10141_v59 }
 0x945   :  { %23156 = vmatprep.subr.bf16.mxu1 %v23944_v3  ;;  %23218 = vmatpush3.bf16.msra.mxu0 %v25329_v62 }
 0x946   :  { %22151 = vmatprep.subr.mxu0 %v23946_v8 }
 0x948   :  { %23158 = vmatpush3.bf16.msra.mxu1 %v23157_v55  ;;  %22119 = vmatmul.mubr.f32.vlgmr.msra.gmra.mrb[26].mxu0 %v24117_v19 }
 0x949   :  { %23159 = vmatprep.subr.bf16.mxu1 %v23944_v3  ;;  %22153 = vmatprep.mubr.msk.f32.mxu0 %vm23945_vm0, %v23946_v8 }
 0x94b   :  { %22009 = vmatmul.mubr.f32.vlgmr.msra.gmra.mrb[36].mxu1 %v24172_v51 }
 0x94c   :  { %23161 = vmatpush3.bf16.msra.mxu1 %v23160_v31  ;;  %22019 = vmatprep.mubr.msk.f32.mxu1 %vm23945_vm0, %v23946_v8 }
 0x94d   :  { %23162 = vmatprep.subr.bf16.mxu1 %v23944_v3 }
 0x950   :  { %23164 = vmatpush3.bf16.msra.mxu1 %v23163_v38 }
 0x951   :  { %23165 = vmatprep.subr.bf16.mxu1 %v23944_v3 }
 0x953   :  { %22020 = vmatmul.mubr.f32.vlgmr.msra.gmra.mrb[36].mxu1 %v24184_v56  ;;  %v23175_v56 = vpack.c.bf16 %v10252_v0, %v10245_v14  ;;  %v10136_v0 = vsub.s32 2, %v25132_v58 }
 0x954   :  { %23167 = vmatpush3.bf16.msra.mxu1 %v23148_v42  ;;  %22030 = vmatprep.mubr.msk.f32.mxu1 %vm23945_vm0, %v23946_v8 }
 0x955   :  { %23168 = vmatprep.subr.bf16.mxu1 %v23944_v3  ;;  %v10137_v36 = vrot.slane %v25138_v63, %v10136_v0 }
 0x958   :  { %23170 = vmatpush3.bf16.msra.mxu1 %v23151_v12 }
 0x959   :  { %23171 = vmatprep.subr.bf16.mxu1 %v23944_v3 }
 0x95b   :  { %22031 = vmatmul.mubr.f32.vlgmr.msra.gmra.mrb[36].mxu1 %v24196_v61 }
 0x95c   :  { %23173 = vmatpush3.bf16.msra.mxu1 %v23172_v5  ;;  %22041 = vmatprep.mubr.msk.f32.mxu1 %vm23945_vm0, %v23946_v8 }
 0x95d   :  { %23174 = vmatprep.subr.bf16.mxu1 %v23944_v3 }
 0x960   :  { %23176 = vmatpush3.bf16.msra.mxu1 %v23175_v56 }
 0x961   :  { %23177 = vmatprep.subr.bf16.mxu1 %v23944_v3 }
 0x963   :  { %22042 = vmatmul.mubr.f32.vlgmr.msra.gmra.mrb[36].mxu1 %v24172_v51 }
 0x964   :  { %23179 = vmatpush3.bf16.msra.mxu1 %v23148_v42  ;;  %22052 = vmatprep.mubr.msk.f32.mxu1 %vm23945_vm0, %v23946_v8 }
 0x965   :  { %23180 = vmatprep.subr.bf16.mxu1 %v23944_v3 }
 0x968   :  { %23182 = vmatpush3.bf16.msra.mxu1 %v23151_v12 }
 0x969   :  { %22121 = vmatprep.subr.mxu1 %v23946_v8 }
 0x96b   :  { %22053 = vmatmul.mubr.f32.vlgmr.msra.gmra.mrb[36].mxu1 %v24172_v51 }
 0x96c   :  { %22123 = vmatprep.mubr.msk.f32.mxu1 %vm23945_vm0, %v23946_v8 }
 0x9da   :  { %v9934_v61 = vpop.f32.mrb[22].mxu0 }
 0x9db   :  { %v21950_v33 = vpop.f32.mrb[23].mxu0 }
 0x9de   :  { %v9654_v47 = vpop.f32.mrb[28].mxu1 }
 0x9df   :  { %v21893_v18 = vpop.f32.mrb[29].mxu1  ;;  %v9655_v2 = vadd.f32 %v20289_v6, %v9654_v47 }
 0x9ea   :  { %v10108_v19 = vpop.f32.mrb[24].mxu0 }
 0x9eb   :  { %v21988_v57 = vpop.f32.mrb[25].mxu0 }
 0x9ee   :  { %v9765_v7 = vpop.f32.mrb[30].mxu1 }
 0x9ef   :  { %v9766_v17 = vadd.f32 %v9765_v7, %v9655_v2  ;;  %v21912_v62 = vpop.f32.mrb[31].mxu1 }
 0x9fe   :  { %v9853_v21 = vpop.f32.mrb[32].mxu1 }
 0x9ff   :  { %v9854_v24 = vadd.f32 %v9853_v21, %v9766_v17  ;;  %v21931_v51 = vpop.f32.mrb[33].mxu1 }
 0xa01   :  { %v9935_v9 = vadd.f32 %v9934_v61, %v9854_v24 }
 0xa0e   :  { %v10029_v28 = vpop.f32.mrb[34].mxu1 }
 0xa0f   :  { %v10030_v34 = vadd.f32 %v10029_v28, %v9935_v9  ;;  %v21969_v50 = vpop.f32.mrb[35].mxu1 }
 0xa11   :  { %v10109_v52 = vadd.f32 %v10108_v19, %v10030_v34 }
 0xa13   :  { %v10112_v45 = vadd.f32 %v10109_v52, %v25147_v53 }
 0xa15   :  { %v10113_v10 = vsel %vm85_vm1, %v10112_v45, 0.0 }
 0xa16   :  { %v10114_v49 = vrot.slane %v10113_v10, 4 }
 0xa18   :  { %v10115_v13 = vadd.f32 %v10114_v49, %v10113_v10 }
 0xa1a   :  { %v10116_v15 = vrot.slane %v10115_v13, 2 }
 0xa1b   :  { %v25478_v39 = vpop.f32.mrb[26].mxu0 }
 0xa1c   :  { %v10117_v27 = vadd.f32 %v10116_v15, %v10115_v13  ;;  %v22120_v46 = vpop.f32.mrb[27].mxu0 }
 0xa1e   :  { %v10118_v16 = vrot.slane %v10117_v27, 1 }
 0xa20   :  { %v10119_v23 = vadd.f32 %v10118_v16, %v10117_v27 }
 0xa22   :  { %v10120_v1 = vmul.f32 0.125, %v10119_v23 }
 0xa24   :  { %v10121_v20 = vsub.f32 %v10112_v45, %v10120_v1 }
 0xa26   :  { %v10122_v43 = vmul.f32 %v10121_v20, %v10121_v20 }
 0xa28   :  { %v10123_v11 = vsel %vm85_vm1, %v10122_v43, 0.0 }
 0xa29   :  { %v10124_v54 = vrot.slane %v10123_v11, 4 }
 0xa2b   :  { %v10125_v41 = vadd.f32 %v10124_v54, %v10123_v11 }
 0xa2d   :  { %v10126_v60 = vrot.slane %v10125_v41, 2 }
 0xa2f   :  { %v10127_v22 = vadd.f32 %v10126_v60, %v10125_v41 }
 0xa31   :  { %v10128_v29 = vrot.slane %v10127_v22, 1 }
 0xa33   :  { %v10129_v25 = vadd.f32 %v10128_v29, %v10127_v22 }
 0xa35   :  { %v10130_v53 = vmul.f32 0.125, %v10129_v25 }
 0xa37   :  { %v10131_v42 = vadd.f32 1e-05, %v10130_v53 }
 0xa39   :  { %23852 = vrsqrt.f32 %v10131_v42 }
 0xa3e   :  { %v10630_v14 = vpop.f32.mrb[36].mxu1 }
 0xa3f   :  { %11124 = vrot.lane.b32.xlu1 %v10630_v14, %s23948_s7  ;;  %v22054_v12 = vpop.f32.mrb[37].mxu1  ;;  %v11132_v55 = vsel %vm1075_vm2, %v10630_v14, 0 }
 0xa40   :  { %v11202_v38 = vand.u32 4294901760, %v11132_v55 }
 0xa42   :  { %v11203_v63 = vsub.f32 %v11132_v55, %v11202_v38 }
 0xa43   :  { %v23853_v37 = vpop.eup %23852  ;;  %11126 = vrot.lane.b32.xlu1 %v10630_v14, %s23950_s3 }
 0xa44   :  { %v10133_v4 = vmul.f32 %v23853_v37, %v10121_v20  ;;  %v11204_v56 = vand.u32 4294901760, %v11203_v63 }
 0xa46   :  { %v10138_v44 = vmul.f32 %v10137_v36, %v10133_v4  ;;  %v11205_v47 = vsub.f32 %v11203_v63, %v11204_v56 }
 0xa47   :  { %11128 = vrot.lane.b32.xlu1 %v10630_v14, %s26500_s13 }
 0xa48   :  { %v10143_v30 = vadd.f32 %v10142_v32, %v10138_v44  ;;  %v11206_v19 = vand.u32 4294901760, %v11205_v47 }
 0xa4a   :  { %10144 = vst.msk [vmem:[#allocation2] sm:$0xff] %vm85_vm1, %v10143_v30 }
 0xa4b   :  { %11130 = vrot.lane.b32.xlu1 %v10630_v14, %s26501_s25 }
 0xab1   :  { %v11125_v31 = vpop.permute.xlu1 %11124 }
 0xab2   :  { %11582 = vrot.lane.b32.xlu0 %v11125_v31, %s26501_s25  ;;  %v11584_v17 = vsel %vm1075_vm2, %v11125_v31, 0 }
 0xab3   :  { %v25538_v62 = vand.u32 4294901760, %v11584_v17 }
 0xab5   :  { %v11127_v5 = vpop.permute.xlu1 %11126  ;;  %v11655_v24 = vsub.f32 %v11584_v17, %v25538_v62 }
 0xab6   :  { %14824 = vrot.lane.b32.xlu0 %v10630_v14, %s26502_s2  ;;  %12034 = vrot.lane.b32.xlu1 %v11127_v5, %s26501_s25  ;;  %v12036_v21 = vsel %vm1075_vm2, %v11127_v5, 0 }
 0xab7   :  { %v25542_v51 = vand.u32 4294901760, %v12036_v21  ;;  %v11656_v28 = vand.u32 4294901760, %v11655_v24 }
 0xab9   :  { %v25497_v40 = vpop.permute.xlu1 %11128  ;;  %v12107_v9 = vsub.f32 %v12036_v21, %v25542_v51  ;;  %v11657_v52 = vsub.f32 %v11655_v24, %v11656_v28 }
 0xaba   :  { %12486 = vrot.lane.b32.xlu1 %v25497_v40, %s26501_s25  ;;  %14818 = vrot.lane.b32.xlu0 %v25478_v39, %s23948_s7  ;;  %v12488_v42 = vsel %vm1075_vm2, %v25497_v40, 0  ;;  %s26503_s7 = smov 8  }
 0xabb   :  { %v12108_v45 = vand.u32 4294901760, %v12107_v9  ;;  %v11658_v16 = vand.u32 4294901760, %v11657_v52 }
 0xabd   :  { %v11131_v61 = vpop.permute.xlu1 %11130  ;;  %v12109_v23 = vsub.f32 %v12107_v9, %v12108_v45 }
 0xabe   :  { %v11134_v33 = vsel %vm1075_vm2, %v11131_v61, 0  ;;  %12958 = vrot.lane.b32.xlu1 %v10630_v14, %s23951_s0  ;;  %16180 = vrot.lane.b32.xlu0 %v25497_v40, %s26502_s2  ;;  %v12558_v14 = vand.u32 4294901760, %v12488_v42 }
 0xabf   :  { %v11137_v18 = vand.u32 4294901760, %v11134_v33  ;;  %v12110_v41 = vand.u32 4294901760, %v12109_v23 }
 0xac0   :  { %v12559_v36 = vsub.f32 %v12488_v42, %v12558_v14 }
 0xac1   :  { %v11214_v6 = vsub.f32 %v11134_v33, %v11137_v18  ;;  %22122 = vmatpush3.xpose.msra.mxu1 %v11137_v18 }
 0xac2   :  { %13410 = vrot.lane.b32.xlu1 %v11125_v31, %s23951_s0  ;;  %22126 = vmatprep.subr.mxu1 %v23946_v8  ;;  %v12560_v4 = vand.u32 4294901760, %v12559_v36 }
 0xac3   :  { %v11215_v57 = vand.u32 4294901760, %v11214_v6  ;;  %14822 = vrot.lane.b32.xlu0 %v25478_v39, %s26500_s13 }
 0xac4   :  { %22124 = vmatmul.mubr.f32.vlgmr.msra.gmra.mrb[38].mxu1 %v11206_v19  ;;  %v12561_v44 = vsub.f32 %v12559_v36, %v12560_v4 }
 0xac5   :  { %v11216_v2 = vsub.f32 %v11214_v6, %v11215_v57  ;;  %22128 = vmatprep.mubr.msk.f32.mxu1 %vm23945_vm0, %v23946_v8 }
 0xac6   :  { %13862 = vrot.lane.b32.xlu1 %v11127_v5, %s23951_s0 }
 0xac7   :  { %v11217_v7 = vand.u32 4294901760, %v11216_v2 }
 0xac9   :  { %22127 = vmatpush3.xpose.msra.mxu1 %v11217_v7 }
 0xaca   :  { %14314 = vrot.lane.b32.xlu1 %v25497_v40, %s23951_s0  ;;  %22131 = vmatprep.subr.mxu1 %v23946_v8 }
 0xacc   :  { %22129 = vmatmul.mubr.f32.vlgmr.msra.gmra.mrb[38].mxu1 %v11202_v38 }
 0xacd   :  { %22132 = vmatpush3.xpose.msra.mxu1 %v11214_v6  ;;  %22133 = vmatprep.mubr.msk.f32.mxu1 %vm23945_vm0, %v23946_v8 }
 0xace   :  { %15276 = vrot.lane.b32.xlu1 %v11125_v31, %s26502_s2  ;;  %22136 = vmatprep.subr.mxu1 %v23946_v8  ;;  %v12562_v31 = vand.u32 4294901760, %v12561_v44 }
 0xad2   :  { %15728 = vrot.lane.b32.xlu1 %v11127_v5, %s26502_s2 }
 0xad4   :  { %22134 = vmatmul.mubr.f32.vlgmr.msra.gmra.mrb[38].mxu1 %v11203_v63 }
 0xad5   :  { %22137 = vmatpush3.xpose.msra.mxu1 %v11137_v18  ;;  %22138 = vmatprep.mubr.msk.f32.mxu1 %vm23945_vm0, %v23946_v8 }
 0xad6   :  { %22141 = vmatprep.subr.mxu1 %v23946_v8  ;;  %14820 = vrot.lane.b32.xlu1 %v25478_v39, %s23950_s3  ;;  %s26504_s3 = smov 16  }
 0xada   :  { %16652 = vrot.lane.b32.xlu1 %v25478_v39, %s26502_s2 }
 0xadc   :  { %22139 = vmatmul.mubr.f32.vlgmr.msra.gmra.mrb[38].mxu1 %v11204_v56 }
 0xadd   :  { %22142 = vmatpush3.xpose.msra.mxu1 %v11215_v57  ;;  %22143 = vmatprep.mubr.msk.f32.mxu1 %vm23945_vm0, %v23946_v8 }
 0xade   :  { %22146 = vmatprep.subr.mxu1 %v23946_v8 }
 0xae4   :  { %22144 = vmatmul.mubr.f32.vlgmr.msra.gmra.mrb[38].mxu1 %v11202_v38 }
 0xae5   :  { %22147 = vmatpush3.xpose.msra.mxu1 %v11137_v18  ;;  %22148 = vmatprep.mubr.msk.f32.mxu1 %vm23945_vm0, %v23946_v8 }
 0xae6   :  { %22181 = vmatprep.subr.mxu1 %v23946_v8 }
 0xaec   :  { %22149 = vmatmul.mubr.f32.vlgmr.msra.gmra.mrb[38].mxu1 %v11202_v38 }
 0xaed   :  { %22183 = vmatprep.mubr.msk.f32.mxu1 %vm23945_vm0, %v23946_v8 }
 0xb24   :  { %v11583_v34 = vpop.permute.xlu0 %11582 }
 0xb25   :  { %v11586_v50 = vsel %vm1075_vm2, %v11583_v34, 0 }
 0xb26   :  { %v11589_v10 = vand.u32 4294901760, %v11586_v50 }
 0xb28   :  { %v11666_v49 = vsub.f32 %v11586_v50, %v11589_v10  ;;  %22152 = vmatpush3.xpose.msra.mxu0 %v11589_v10  ;;  %v25546_v13 = vpop.permute.xlu0 %14824  ;;  %v12035_v15 = vpop.permute.xlu1 %12034 }
 0xb29   :  { %v12038_v27 = vsel %vm1075_vm2, %v12035_v15, 0  ;;  %22156 = vmatprep.subr.mxu0 %v23946_v8 }
 0xb2a   :  { %v11667_v1 = vand.u32 4294901760, %v11666_v49  ;;  %v12041_v20 = vand.u32 4294901760, %v12038_v27 }
 0xb2b   :  { %22154 = vmatmul.mubr.f32.vlgmr.msra.gmra.mrb[28].mxu0 %v11658_v16 }
 0xb2c   :  { %v11668_v43 = vsub.f32 %v11666_v49, %v11667_v1  ;;  %v12118_v11 = vsub.f32 %v12038_v27, %v12041_v20  ;;  %22182 = vmatpush3.xpose.msra.mxu1 %v12041_v20  ;;  %v25550_v54 = vpop.permute.xlu0 %14818  ;;  %22158 = vmatprep.mubr.msk.f32.mxu0 %vm23945_vm0, %v23946_v8  ;;  %v12487_v53 = vpop.permute.xlu1 %12486 }
 0xb2d   :  { %22186 = vmatprep.subr.mxu1 %v23946_v8  ;;  %17104 = vrot.lane.b32.xlu0 %v25550_v54, %s26502_s2  ;;  %v12490_v46 = vsel %vm1075_vm2, %v12487_v53, 0 }
 0xb2e   :  { %v11669_v60 = vand.u32 4294901760, %v11668_v43  ;;  %v12119_v22 = vand.u32 4294901760, %v12118_v11  ;;  %v12493_v12 = vand.u32 4294901760, %v12490_v46 }
 0xb2f   :  { %22184 = vmatmul.mubr.f32.vlgmr.msra.gmra.mrb[40].mxu1 %v12110_v41 }
 0xb30   :  { %v12120_v29 = vsub.f32 %v12118_v11, %v12119_v22  ;;  %22157 = vmatpush3.xpose.msra.mxu0 %v11669_v60  ;;  %22188 = vmatprep.mubr.msk.f32.mxu1 %vm23945_vm0, %v23946_v8  ;;  %v12570_v37 = vsub.f32 %v12490_v46, %v12493_v12  ;;  %v12959_v55 = vpop.permute.xlu1 %12958  ;;  %v25633_v47 = vpop.permute.xlu0 %16180 }
 0xb31   :  { %22161 = vmatprep.subr.mxu0 %v23946_v8  ;;  %v25596_v5 = vand.u32 4294901760, %v12959_v55 }
 0xb32   :  { %v12121_v25 = vand.u32 4294901760, %v12120_v29  ;;  %v12571_v32 = vand.u32 4294901760, %v12570_v37 }
 0xb33   :  { %22159 = vmatmul.mubr.f32.vlgmr.msra.gmra.mrb[28].mxu0 %v25538_v62  ;;  %v13042_v21 = vsub.f32 %v12959_v55, %v25596_v5 }
 0xb34   :  { %22162 = vmatpush3.xpose.msra.mxu0 %v11666_v49  ;;  %22187 = vmatpush3.xpose.msra.mxu1 %v12121_v25  ;;  %v12572_v30 = vsub.f32 %v12570_v37, %v12571_v32  ;;  %v25618_v63 = vpop.permute.xlu1 %13410 }
 0xb35   :  { %22191 = vmatprep.subr.mxu1 %v23946_v8  ;;  %22163 = vmatprep.mubr.msk.f32.mxu0 %vm23945_vm0, %v23946_v8  ;;  %v25621_v40 = vand.u32 4294901760, %v25618_v63  ;;  %v25639_v19 = vpop.permute.xlu0 %14822 }
 0xb36   :  { %22166 = vmatprep.subr.mxu0 %v23946_v8  ;;  %v12573_v38 = vand.u32 4294901760, %v12572_v30  ;;  %18008 = vrot.lane.b32.xlu0 %v25639_v19, %s26502_s2 }
 0xb37   :  { %22189 = vmatmul.mubr.f32.vlgmr.msra.gmra.mrb[40].mxu1 %v25542_v51 }
 0xb38   :  { %22192 = vmatpush3.xpose.msra.mxu1 %v12118_v11  ;;  %22193 = vmatprep.mubr.msk.f32.mxu1 %vm23945_vm0, %v23946_v8  ;;  %v25627_v56 = vpop.permute.xlu1 %13862 }
 0xb39   :  { %22196 = vmatprep.subr.mxu1 %v23946_v8  ;;  %v25670_v15 = vand.u32 4294901760, %v25627_v56 }
 0xb3b   :  { %22164 = vmatmul.mubr.f32.vlgmr.msra.gmra.mrb[28].mxu0 %v11655_v24 }
 0xb3c   :  { %22167 = vmatpush3.xpose.msra.mxu0 %v11589_v10  ;;  %22168 = vmatprep.mubr.msk.f32.mxu0 %vm23945_vm0, %v23946_v8  ;;  %v25629_v61 = vpop.permute.xlu1 %14314 }
 0xb3d   :  { %22171 = vmatprep.subr.mxu0 %v23946_v8 }
 0xb3f   :  { %22194 = vmatmul.mubr.f32.vlgmr.msra.gmra.mrb[40].mxu1 %v12107_v9 }
 0xb40   :  { %22197 = vmatpush3.xpose.msra.mxu1 %v12041_v20  ;;  %22198 = vmatprep.mubr.msk.f32.mxu1 %vm23945_vm0, %v23946_v8  ;;  %v25631_v33 = vpop.permute.xlu1 %15276 }
 0xb41   :  { %22201 = vmatprep.subr.mxu1 %v23946_v8 }
 0xb43   :  { %22169 = vmatmul.mubr.f32.vlgmr.msra.gmra.mrb[28].mxu0 %v11656_v28  ;;  %v13043_v28 = vand.u32 4294901760, %v13042_v21 }
 0xb44   :  { %22172 = vmatpush3.xpose.msra.mxu0 %v11667_v1  ;;  %22173 = vmatprep.mubr.msk.f32.mxu0 %vm23945_vm0, %v23946_v8  ;;  %v25635_v18 = vpop.permute.xlu1 %15728 }
 0xb45   :  { %22176 = vmatprep.subr.mxu0 %v23946_v8  ;;  %v13044_v52 = vsub.f32 %v13042_v21, %v13043_v28 }
 0xb47   :  { %22199 = vmatmul.mubr.f32.vlgmr.msra.gmra.mrb[40].mxu1 %v12108_v45  ;;  %v13045_v49 = vand.u32 4294901760, %v13044_v52 }
 0xb48   :  { %22202 = vmatpush3.xpose.msra.mxu1 %v12119_v22  ;;  %22203 = vmatprep.mubr.msk.f32.mxu1 %vm23945_vm0, %v23946_v8  ;;  %v25637_v6 = vpop.permute.xlu1 %14820  ;;  %v13494_v22 = vsub.f32 %v25618_v63, %v25621_v40 }
 0xb49   :  { %22206 = vmatprep.subr.mxu1 %v23946_v8  ;;  %17556 = vrot.lane.b32.xlu1 %v25637_v6, %s26502_s2 }
 0xb4a   :  { %v13495_v46 = vand.u32 4294901760, %v13494_v22 }
 0xb4b   :  { %22174 = vmatmul.mubr.f32.vlgmr.msra.gmra.mrb[28].mxu0 %v25538_v62 }
 0xb4c   :  { %22177 = vmatpush3.xpose.msra.mxu0 %v11589_v10  ;;  %22178 = vmatprep.mubr.msk.f32.mxu0 %vm23945_vm0, %v23946_v8  ;;  %v13496_v44 = vsub.f32 %v13494_v22, %v13495_v46 }
 0xb4d   :  { %22211 = vmatprep.subr.mxu0 %v23946_v8 }
 0xb4e   :  { %v13497_v63 = vand.u32 4294901760, %v13496_v44 }
 0xb4f   :  { %22204 = vmatmul.mubr.f32.vlgmr.msra.gmra.mrb[40].mxu1 %v25542_v51 }
 0xb50   :  { %22207 = vmatpush3.xpose.msra.mxu1 %v12041_v20  ;;  %22208 = vmatprep.mubr.msk.f32.mxu1 %vm23945_vm0, %v23946_v8 }
 0xb51   :  { %22241 = vmatprep.subr.mxu1 %v23946_v8 }
 0xb53   :  { %22179 = vmatmul.mubr.f32.vlgmr.msra.gmra.mrb[28].mxu0 %v25538_v62 }
 0xb54   :  { %22212 = vmatpush3.xpose.msra.mxu0 %v12493_v12  ;;  %22213 = vmatprep.mubr.msk.f32.mxu0 %vm23945_vm0, %v23946_v8 }
 0xb55   :  { %22216 = vmatprep.subr.mxu0 %v23946_v8 }
 0xb57   :  { %22209 = vmatmul.mubr.f32.vlgmr.msra.gmra.mrb[40].mxu1 %v25542_v51  ;;  %22214 = vmatmul.mubr.f32.vlgmr.msra.gmra.mrb[30].mxu0 %v12562_v31 }
 0xb58   :  { %22217 = vmatpush3.xpose.msra.mxu0 %v12573_v38  ;;  %22242 = vmatpush3.msra.mxu1 %v25596_v5 }
 0xb59   :  { %22218 = vmatprep.mubr.msk.f32.mxu0 %vm23945_vm0, %v23946_v8  ;;  %22221 = vmatprep.subr.mxu0 %v23946_v8 }
 0xb5a   :  { %22243 = vmatprep.mubr.msk.f32.mxu1 %vm23945_vm0, %v23946_v8  ;;  %22246 = vmatprep.subr.mxu1 %v23946_v8 }
 0xb5f   :  { %22219 = vmatmul.mubr.f32.vlgmr.msra.gmra.mrb[30].mxu0 %v12558_v14 }
 0xb60   :  { %22222 = vmatpush3.xpose.msra.mxu0 %v12570_v37  ;;  %22223 = vmatprep.mubr.msk.f32.mxu0 %vm23945_vm0, %v23946_v8 }
 0xb61   :  { %22226 = vmatprep.subr.mxu0 %v23946_v8 }
 0xb67   :  { %22224 = vmatmul.mubr.f32.vlgmr.msra.gmra.mrb[30].mxu0 %v12559_v36 }
 0xb68   :  { %22227 = vmatpush3.xpose.msra.mxu0 %v12493_v12  ;;  %22228 = vmatprep.mubr.msk.f32.mxu0 %vm23945_vm0, %v23946_v8 }
 0xb69   :  { %22231 = vmatprep.subr.mxu0 %v23946_v8 }
 0xb6f   :  { %22229 = vmatmul.mubr.f32.vlgmr.msra.gmra.mrb[30].mxu0 %v12560_v4 }
 0xb70   :  { %22232 = vmatpush3.xpose.msra.mxu0 %v12571_v32  ;;  %22233 = vmatprep.mubr.msk.f32.mxu0 %vm23945_vm0, %v23946_v8 }
 0xb71   :  { %22236 = vmatprep.subr.mxu0 %v23946_v8 }
 0xb77   :  { %22234 = vmatmul.mubr.f32.vlgmr.msra.gmra.mrb[30].mxu0 %v12558_v14 }
 0xb78   :  { %22237 = vmatpush3.xpose.msra.mxu0 %v12493_v12  ;;  %22238 = vmatprep.mubr.msk.f32.mxu0 %vm23945_vm0, %v23946_v8 }
 0xb79   :  { %22271 = vmatprep.subr.mxu0 %v23946_v8 }
 0xb7f   :  { %22239 = vmatmul.mubr.f32.vlgmr.msra.gmra.mrb[30].mxu0 %v12558_v14  ;;  %v13946_v14 = vsub.f32 %v25627_v56, %v25670_v15 }
 0xb80   :  { %22272 = vmatpush3.msra.mxu0 %v25621_v40  ;;  %22273 = vmatprep.mubr.msk.f32.mxu0 %vm23945_vm0, %v23946_v8 }
 0xb81   :  { %22276 = vmatprep.subr.mxu0 %v23946_v8  ;;  %v13947_v30 = vand.u32 4294901760, %v13946_v14 }
 0xb83   :  { %v13948_v56 = vsub.f32 %v13946_v14, %v13947_v30 }
 0xbbf   :  { %v11578_v57 = vpop.f32.mrb[38].mxu1 }
 0xbc0   :  { %v20290_v2 = vclamps-f32 %v11578_v57, 5.0  ;;  %v22150_v7 = vpop.f32.mrb[39].mxu1 }
 0xbc1   :  { %v13949_v7 = vand.u32 4294901760, %v13948_v56 }
 0xbc2   :  { %v12946_v17 = vmul.f32 1.442695, %v20290_v2 }
 0xbc4   :  { %23854 = vpow2.f32 %v12946_v17 }
 0xbce   :  { %v23855_v62 = vpop.eup %23854 }
 0xbcf   :  { %v25648_v24 = vsel %vm24468_vm4, %v23855_v62, 0.0 }
 0xbd0   :  { %v12962_v51 = vsel %vm1075_vm2, %v25648_v24, 0 }
 0xbd1   :  { %v13030_v9 = vand.u32 4294901760, %v12962_v51 }
 0xbd3   :  { %v13031_v34 = vsub.f32 %v12962_v51, %v13030_v9 }
 0xbd5   :  { %v13032_v50 = vand.u32 4294901760, %v13031_v34 }
 0xbd7   :  { %v13033_v45 = vsub.f32 %v13031_v34, %v13032_v50 }
 0xbd9   :  { %v13034_v10 = vand.u32 4294901760, %v13033_v45 }
 0xbdb   :  { %22244 = vmatmul.mubr.f32.vlgmr.msra.gmra.mrb[42].mxu1 %v13034_v10 }
 0xbdc   :  { %22247 = vmatpush3.msra.mxu1 %v13045_v49  ;;  %22248 = vmatprep.mubr.msk.f32.mxu1 %vm23945_vm0, %v23946_v8 }
 0xbdd   :  { %22251 = vmatprep.subr.mxu1 %v23946_v8 }
 0xbe3   :  { %22249 = vmatmul.mubr.f32.vlgmr.msra.gmra.mrb[42].mxu1 %v13030_v9 }
 0xbe4   :  { %22252 = vmatpush3.msra.mxu1 %v13042_v21  ;;  %22253 = vmatprep.mubr.msk.f32.mxu1 %vm23945_vm0, %v23946_v8 }
 0xbe5   :  { %22256 = vmatprep.subr.mxu1 %v23946_v8 }
 0xbeb   :  { %22254 = vmatmul.mubr.f32.vlgmr.msra.gmra.mrb[42].mxu1 %v13031_v34  ;;  %v14828_v34 = vsel %vm1075_vm2, %v25478_v39, 0 }
 0xbec   :  { %22257 = vmatpush3.msra.mxu1 %v25596_v5  ;;  %22258 = vmatprep.mubr.msk.f32.mxu1 %vm23945_vm0, %v23946_v8 }
 0xbed   :  { %22261 = vmatprep.subr.mxu1 %v23946_v8 }
 0xbf3   :  { %22259 = vmatmul.mubr.f32.vlgmr.msra.gmra.mrb[42].mxu1 %v13032_v50 }
 0xbf4   :  { %22262 = vmatpush3.msra.mxu1 %v13043_v28  ;;  %22263 = vmatprep.mubr.msk.f32.mxu1 %vm23945_vm0, %v23946_v8  ;;  %v25726_v28 = vand.u32 4294901760, %v25629_v61 }
 0xbf5   :  { %22266 = vmatprep.subr.mxu1 %v23946_v8 }
 0xbf6   :  { %v25737_v45 = vsub.f32 %v25629_v61, %v25726_v28 }
 0xbfb   :  { %22264 = vmatmul.mubr.f32.vlgmr.msra.gmra.mrb[42].mxu1 %v13030_v9 }
 0xbfc   :  { %22267 = vmatpush3.msra.mxu1 %v25596_v5  ;;  %22268 = vmatprep.mubr.msk.f32.mxu1 %vm23945_vm0, %v23946_v8 }
 0xbfd   :  { %22301 = vmatprep.subr.mxu1 %v23946_v8 }
 0xc03   :  { %22269 = vmatmul.mubr.f32.vlgmr.msra.gmra.mrb[42].mxu1 %v13030_v9  ;;  %v14826_v9 = vsel %vm1075_vm2, %v25546_v13, 0  ;;  %v25739_v13 = vand.u32 4294901760, %v14828_v34 }
 0xc04   :  { %22302 = vmatpush3.msra.mxu1 %v25670_v15  ;;  %22303 = vmatprep.mubr.msk.f32.mxu1 %vm23945_vm0, %v23946_v8  ;;  %v25732_v50 = vand.u32 4294901760, %v14826_v9 }
 0xc05   :  { %22306 = vmatprep.subr.mxu1 %v23946_v8 }
 0xc26   :  { %v12030_v27 = vpop.f32.mrb[28].mxu0 }
 0xc27   :  { %v20291_v16 = vclamps-f32 %v12030_v27, 5.0  ;;  %v22180_v23 = vpop.f32.mrb[29].mxu0  ;;  %v25752_v27 = vsub.f32 %v14826_v9, %v25732_v50  ;;  %v16184_v9 = vsel %vm1075_vm2, %v25639_v19, 0 }
 0xc28   :  { %v14908_v23 = vsub.f32 %v14828_v34, %v25739_v13  ;;  %v16187_v34 = vand.u32 4294901760, %v16184_v9 }
 0xc29   :  { %v12948_v1 = vmul.f32 1.442695, %v20291_v16  ;;  %v14399_v16 = vand.u32 4294901760, %v25737_v45 }
 0xc2a   :  { %v12482_v20 = vpop.f32.mrb[40].mxu1 }
 0xc2b   :  { %23856 = vpow2.f32 %v12948_v1  ;;  %v20292_v43 = vclamps-f32 %v12482_v20, 5.0  ;;  %v22210_v11 = vpop.f32.mrb[41].mxu1  ;;  %v14898_v1 = vand.u32 4294901760, %v25752_v27 }
 0xc2c   :  { %v14909_v11 = vand.u32 4294901760, %v14908_v23 }
 0xc2d   :  { %v12950_v41 = vmul.f32 1.442695, %v20292_v43  ;;  %v14400_v43 = vsub.f32 %v25737_v45, %v14399_v16 }
 0xc2f   :  { %23858 = vpow2.f32 %v12950_v41 }
 0xc35   :  { %v23857_v60 = vpop.eup %23856 }
 0xc36   :  { %v25680_v29 = vsel %vm24468_vm4, %v23857_v60, 0.0 }
 0xc37   :  { %v13414_v25 = vsel %vm1075_vm2, %v25680_v29, 0  ;;  %v14769_v48 = vsel %vm1075_vm2, %v25680_v29, 0.0 }
 0xc38   :  { %v25684_v53 = vand.u32 4294901760, %v13414_v25 }
 0xc39   :  { %v23859_v42 = vpop.eup %23858 }
 0xc3a   :  { %v25690_v12 = vsel %vm24468_vm4, %v23859_v42, 0.0  ;;  %v13483_v36 = vsub.f32 %v13414_v25, %v25684_v53  ;;  %v14910_v25 = vsub.f32 %v14908_v23, %v14909_v11 }
 0xc3b   :  { %v13866_v37 = vsel %vm1075_vm2, %v25690_v12, 0 }
 0xc3c   :  { %v13484_v4 = vand.u32 4294901760, %v13483_v36  ;;  %v25695_v32 = vand.u32 4294901760, %v13866_v37  ;;  %v14911_v42 = vand.u32 4294901760, %v14910_v25 }
 0xc3e   :  { %v13485_v55 = vsub.f32 %v13483_v36, %v13484_v4  ;;  %v13935_v31 = vsub.f32 %v13866_v37, %v25695_v32 }
 0xc40   :  { %v13486_v38 = vand.u32 4294901760, %v13485_v55  ;;  %v13936_v5 = vand.u32 4294901760, %v13935_v31 }
 0xc42   :  { %22274 = vmatmul.mubr.f32.vlgmr.msra.gmra.mrb[32].mxu0 %v13486_v38  ;;  %v13937_v57 = vsub.f32 %v13935_v31, %v13936_v5 }
 0xc43   :  { %22277 = vmatpush3.msra.mxu0 %v13497_v63  ;;  %22278 = vmatprep.mubr.msk.f32.mxu0 %vm23945_vm0, %v23946_v8 }
 0xc44   :  { %v13938_v2 = vand.u32 4294901760, %v13937_v57  ;;  %22281 = vmatprep.subr.mxu0 %v23946_v8 }
 0xc46   :  { %22304 = vmatmul.mubr.f32.vlgmr.msra.gmra.mrb[44].mxu1 %v13938_v2 }
 0xc47   :  { %22307 = vmatpush3.msra.mxu1 %v13949_v7  ;;  %22308 = vmatprep.mubr.msk.f32.mxu1 %vm23945_vm0, %v23946_v8 }
 0xc48   :  { %22311 = vmatprep.subr.mxu1 %v23946_v8 }
 0xc4a   :  { %22279 = vmatmul.mubr.f32.vlgmr.msra.gmra.mrb[32].mxu0 %v25684_v53 }
 0xc4b   :  { %22282 = vmatpush3.msra.mxu0 %v13494_v22  ;;  %22283 = vmatprep.mubr.msk.f32.mxu0 %vm23945_vm0, %v23946_v8  ;;  %v14401_v22 = vand.u32 4294901760, %v14400_v43 }
 0xc4c   :  { %22286 = vmatprep.subr.mxu0 %v23946_v8 }
 0xc4e   :  { %22309 = vmatmul.mubr.f32.vlgmr.msra.gmra.mrb[44].mxu1 %v25695_v32 }
 0xc4f   :  { %22312 = vmatpush3.msra.mxu1 %v13946_v14  ;;  %22313 = vmatprep.mubr.msk.f32.mxu1 %vm23945_vm0, %v23946_v8  ;;  %v15280_v14 = vsel %vm1075_vm2, %v25550_v54, 0 }
 0xc50   :  { %22316 = vmatprep.subr.mxu1 %v23946_v8  ;;  %v25811_v37 = vand.u32 4294901760, %v15280_v14 }
 0xc52   :  { %v12934_v17 = vpop.f32.mrb[30].mxu0  ;;  %22284 = vmatmul.mubr.f32.vlgmr.msra.gmra.mrb[32].mxu0 %v13483_v36  ;;  %v15360_v44 = vsub.f32 %v15280_v14, %v25811_v37 }
 0xc53   :  { %v20293_v62 = vclamps-f32 %v12934_v17, 5.0  ;;  %22287 = vmatpush3.msra.mxu0 %v25621_v40  ;;  %v22240_v21 = vpop.f32.mrb[31].mxu0  ;;  %22288 = vmatprep.mubr.msk.f32.mxu0 %vm23945_vm0, %v23946_v8 }
 0xc54   :  { %22291 = vmatprep.subr.mxu0 %v23946_v8  ;;  %v15361_v55 = vand.u32 4294901760, %v15360_v44 }
 0xc55   :  { %v12952_v51 = vmul.f32 1.442695, %v20293_v62 }
 0xc56   :  { %22314 = vmatmul.mubr.f32.vlgmr.msra.gmra.mrb[44].mxu1 %v13935_v31  ;;  %v15362_v63 = vsub.f32 %v15360_v44, %v15361_v55 }
 0xc57   :  { %23860 = vpow2.f32 %v12952_v51  ;;  %22317 = vmatpush3.msra.mxu1 %v25670_v15  ;;  %22318 = vmatprep.mubr.msk.f32.mxu1 %vm23945_vm0, %v23946_v8  ;;  %v16182_v51 = vsel %vm1075_vm2, %v25633_v47, 0  ;;  %v16264_v47 = vsub.f32 %v16184_v9, %v16187_v34 }
 0xc58   :  { %22321 = vmatprep.subr.mxu1 %v23946_v8  ;;  %v15363_v17 = vand.u32 4294901760, %v15362_v63 }
 0xc5a   :  { %22289 = vmatmul.mubr.f32.vlgmr.msra.gmra.mrb[32].mxu0 %v13484_v4  ;;  %v15730_v4 = vsel %vm1075_vm2, %v25635_v18, 0 }
 0xc5b   :  { %22292 = vmatpush3.msra.mxu0 %v13495_v46  ;;  %22293 = vmatprep.mubr.msk.f32.mxu0 %vm23945_vm0, %v23946_v8  ;;  %v15278_v46 = vsel %vm1075_vm2, %v25631_v33, 0  ;;  %v15732_v33 = vsel %vm1075_vm2, %v25637_v6, 0 }
 0xc5c   :  { %22296 = vmatprep.subr.mxu0 %v23946_v8  ;;  %v25808_v36 = vand.u32 4294901760, %v15278_v46 }
 0xc5e   :  { %22319 = vmatmul.mubr.f32.vlgmr.msra.gmra.mrb[44].mxu1 %v13936_v5  ;;  %v15349_v54 = vsub.f32 %v15278_v46, %v25808_v36 }
 0xc5f   :  { %22322 = vmatpush3.msra.mxu1 %v13947_v30  ;;  %22323 = vmatprep.mubr.msk.f32.mxu1 %vm23945_vm0, %v23946_v8  ;;  %v25824_v30 = vand.u32 4294901760, %v15732_v33 }
 0xc60   :  { %22326 = vmatprep.subr.mxu1 %v23946_v8  ;;  %v15350_v18 = vand.u32 4294901760, %v15349_v54 }
 0xc61   :  { %v23861_v52 = vpop.eup %23860  ;;  %v15812_v31 = vsub.f32 %v15732_v33, %v25824_v30 }
 0xc62   :  { %v25743_v10 = vsel %vm24468_vm4, %v23861_v52, 0.0  ;;  %22294 = vmatmul.mubr.f32.vlgmr.msra.gmra.mrb[32].mxu0 %v25684_v53  ;;  %v15351_v38 = vsub.f32 %v15349_v54, %v15350_v18  ;;  %v16265_v52 = vand.u32 4294901760, %v16264_v47 }
 0xc63   :  { %22297 = vmatpush3.msra.mxu0 %v25621_v40  ;;  %22298 = vmatprep.mubr.msk.f32.mxu0 %vm23945_vm0, %v23946_v8  ;;  %v14318_v49 = vsel %vm1075_vm2, %v25743_v10, 0  ;;  %v15813_v56 = vand.u32 4294901760, %v15812_v31 }
 0xc64   :  { %22331 = vmatprep.subr.mxu0 %v23946_v8  ;;  %v25755_v61 = vand.u32 4294901760, %v14318_v49  ;;  %v15352_v57 = vand.u32 4294901760, %v15351_v38 }
 0xc65   :  { %v15814_v7 = vsub.f32 %v15812_v31, %v15813_v56 }
 0xc66   :  { %22324 = vmatmul.mubr.f32.vlgmr.msra.gmra.mrb[44].mxu1 %v25695_v32  ;;  %v14387_v40 = vsub.f32 %v14318_v49, %v25755_v61  ;;  %v16653_v49 = vpop.permute.xlu1 %16652 }
 0xc67   :  { %22327 = vmatpush3.msra.mxu1 %v25670_v15  ;;  %22328 = vmatprep.mubr.msk.f32.mxu1 %vm23945_vm0, %v23946_v8  ;;  %v14899_v15 = vsub.f32 %v25752_v27, %v14898_v1  ;;  %v15815_v21 = vand.u32 4294901760, %v15814_v7 }
 0xc68   :  { %22361 = vmatprep.subr.mxu1 %v23946_v8  ;;  %v14388_v20 = vand.u32 4294901760, %v14387_v40 }
 0xc6a   :  { %22299 = vmatmul.mubr.f32.vlgmr.msra.gmra.mrb[32].mxu0 %v25684_v53  ;;  %v14389_v41 = vsub.f32 %v14387_v40, %v14388_v20  ;;  %v14900_v53 = vand.u32 4294901760, %v14899_v15 }
 0xc6b   :  { %22332 = vmatpush3.msra.mxu0 %v25726_v28  ;;  %22333 = vmatprep.mubr.msk.f32.mxu0 %vm23945_vm0, %v23946_v8 }
 0xc6c   :  { %22336 = vmatprep.subr.mxu0 %v23946_v8  ;;  %v14390_v60 = vand.u32 4294901760, %v14389_v41 }
 0xc6e   :  { %22329 = vmatmul.mubr.f32.vlgmr.msra.gmra.mrb[44].mxu1 %v25695_v32  ;;  %22334 = vmatmul.mubr.f32.vlgmr.msra.gmra.mrb[34].mxu0 %v14390_v60  ;;  %v25820_v32 = vand.u32 4294901760, %v15730_v4 }
 0xc6f   :  { %22337 = vmatpush3.msra.mxu0 %v14401_v22  ;;  %22362 = vmatpush3.xpose.msra.mxu1 %v25739_v13 }
 0xc70   :  { %22363 = vmatprep.mubr.msk.f32.mxu1 %vm23945_vm0, %v23946_v8  ;;  %22366 = vmatprep.subr.mxu1 %v23946_v8  ;;  %v15801_v6 = vsub.f32 %v15730_v4, %v25820_v32 }
 0xc71   :  { %22338 = vmatprep.mubr.msk.f32.mxu0 %vm23945_vm0, %v23946_v8  ;;  %22341 = vmatprep.subr.mxu0 %v23946_v8 }
 0xc72   :  { %22364 = vmatmul.mubr.f32.vlgmr.msra.gmra.mrb[46].mxu1 %v14900_v53  ;;  %v15802_v5 = vand.u32 4294901760, %v15801_v6 }
 0xc73   :  { %22367 = vmatpush3.xpose.msra.mxu1 %v14911_v42  ;;  %22368 = vmatprep.mubr.msk.f32.mxu1 %vm23945_vm0, %v23946_v8 }
 0xc74   :  { %22371 = vmatprep.subr.mxu1 %v23946_v8  ;;  %v15803_v2 = vsub.f32 %v15801_v6, %v15802_v5 }
 0xc76   :  { %22339 = vmatmul.mubr.f32.vlgmr.msra.gmra.mrb[34].mxu0 %v25755_v61  ;;  %v15804_v62 = vand.u32 4294901760, %v15803_v2 }
 0xc77   :  { %22342 = vmatpush3.msra.mxu0 %v25737_v45  ;;  %22343 = vmatprep.mubr.msk.f32.mxu0 %vm23945_vm0, %v23946_v8 }
 0xc78   :  { %22346 = vmatprep.subr.mxu0 %v23946_v8 }
 0xc7a   :  { %22369 = vmatmul.mubr.f32.vlgmr.msra.gmra.mrb[46].mxu1 %v25732_v50 }
 0xc7b   :  { %22372 = vmatpush3.xpose.msra.mxu1 %v14908_v23  ;;  %22373 = vmatprep.mubr.msk.f32.mxu1 %vm23945_vm0, %v23946_v8 }
 0xc7c   :  { %22376 = vmatprep.subr.mxu1 %v23946_v8 }
 0xc7e   :  { %22344 = vmatmul.mubr.f32.vlgmr.msra.gmra.mrb[34].mxu0 %v14387_v40 }
 0xc7f   :  { %22347 = vmatpush3.msra.mxu0 %v25726_v28  ;;  %22348 = vmatprep.mubr.msk.f32.mxu0 %vm23945_vm0, %v23946_v8 }
 0xc80   :  { %22351 = vmatprep.subr.mxu0 %v23946_v8 }
 0xc82   :  { %22374 = vmatmul.mubr.f32.vlgmr.msra.gmra.mrb[46].mxu1 %v25752_v27 }
 0xc83   :  { %22377 = vmatpush3.xpose.msra.mxu1 %v25739_v13  ;;  %22378 = vmatprep.mubr.msk.f32.mxu1 %vm23945_vm0, %v23946_v8 }
 0xc84   :  { %22381 = vmatprep.subr.mxu1 %v23946_v8 }
 0xc86   :  { %22349 = vmatmul.mubr.f32.vlgmr.msra.gmra.mrb[34].mxu0 %v14388_v20 }
 0xc87   :  { %22352 = vmatpush3.msra.mxu0 %v14399_v16  ;;  %22353 = vmatprep.mubr.msk.f32.mxu0 %vm23945_vm0, %v23946_v8 }
 0xc88   :  { %22356 = vmatprep.subr.mxu0 %v23946_v8 }
 0xc8a   :  { %22379 = vmatmul.mubr.f32.vlgmr.msra.gmra.mrb[46].mxu1 %v14898_v1  ;;  %v17105_v1 = vpop.permute.xlu0 %17104 }
 0xc8b   :  { %22382 = vmatpush3.xpose.msra.mxu1 %v14909_v11  ;;  %22383 = vmatprep.mubr.msk.f32.mxu1 %vm23945_vm0, %v23946_v8  ;;  %v25918_v20 = vand.u32 4294901760, %v17105_v1 }
 0xc8c   :  { %22386 = vmatprep.subr.mxu1 %v23946_v8 }
 0xc8e   :  { %22354 = vmatmul.mubr.f32.vlgmr.msra.gmra.mrb[34].mxu0 %v25755_v61 }
 0xc8f   :  { %22357 = vmatpush3.msra.mxu0 %v25726_v28  ;;  %22358 = vmatprep.mubr.msk.f32.mxu0 %vm23945_vm0, %v23946_v8  ;;  %v16252_v28 = vand.u32 4294901760, %v16182_v51 }
 0xc90   :  { %22391 = vmatprep.subr.mxu0 %v23946_v8 }
 0xc92   :  { %22384 = vmatmul.mubr.f32.vlgmr.msra.gmra.mrb[46].mxu1 %v25732_v50 }
 0xc93   :  { %22387 = vmatpush3.xpose.msra.mxu1 %v25739_v13  ;;  %22388 = vmatprep.mubr.msk.f32.mxu1 %vm23945_vm0, %v23946_v8  ;;  %v16266_v13 = vsub.f32 %v16264_v47, %v16265_v52 }
 0xc94   :  { %22421 = vmatprep.subr.mxu1 %v23946_v8 }
 0xc95   :  { %v16267_v16 = vand.u32 4294901760, %v16266_v13 }
 0xc96   :  { %22359 = vmatmul.mubr.f32.vlgmr.msra.gmra.mrb[34].mxu0 %v25755_v61  ;;  %v25894_v61 = vand.u32 4294901760, %v16653_v49 }
 0xc97   :  { %22392 = vmatpush3.xpose.msra.mxu0 %v25811_v37  ;;  %22393 = vmatprep.mubr.msk.f32.mxu0 %vm23945_vm0, %v23946_v8 }
 0xc98   :  { %22396 = vmatprep.subr.mxu0 %v23946_v8 }
 0xc9a   :  { %22389 = vmatmul.mubr.f32.vlgmr.msra.gmra.mrb[46].mxu1 %v25732_v50  ;;  %22394 = vmatmul.mubr.f32.vlgmr.msra.gmra.mrb[36].mxu0 %v15352_v57  ;;  %v16253_v50 = vsub.f32 %v16182_v51, %v16252_v28 }
 0xc9b   :  { %22397 = vmatpush3.xpose.msra.mxu0 %v15363_v17  ;;  %22422 = vmatpush3.xpose.msra.mxu1 %v25824_v30  ;;  %v17557_v17 = vpop.permute.xlu1 %17556 }
 0xc9c   :  { %22423 = vmatprep.mubr.msk.f32.mxu1 %vm23945_vm0, %v23946_v8  ;;  %22426 = vmatprep.subr.mxu1 %v23946_v8  ;;  %v16254_v19 = vand.u32 4294901760, %v16253_v50  ;;  %v25954_v51 = vand.u32 4294901760, %v17557_v17 }
 0xc9d   :  { %22398 = vmatprep.mubr.msk.f32.mxu0 %vm23945_vm0, %v23946_v8  ;;  %22401 = vmatprep.subr.mxu0 %v23946_v8 }
 0xc9e   :  { %22424 = vmatmul.mubr.f32.vlgmr.msra.gmra.mrb[48].mxu1 %v15804_v62  ;;  %v16255_v45 = vsub.f32 %v16253_v50, %v16254_v19 }
 0xc9f   :  { %22427 = vmatpush3.xpose.msra.mxu1 %v15815_v21  ;;  %22428 = vmatprep.mubr.msk.f32.mxu1 %vm23945_vm0, %v23946_v8  ;;  %v25952_v21 = vsub.f32 %v17105_v1, %v25918_v20 }
 0xca0   :  { %22431 = vmatprep.subr.mxu1 %v23946_v8  ;;  %v16256_v27 = vand.u32 4294901760, %v16255_v45 }
 0xca2   :  { %22399 = vmatmul.mubr.f32.vlgmr.msra.gmra.mrb[36].mxu0 %v25808_v36 }
 0xca3   :  { %22402 = vmatpush3.xpose.msra.mxu0 %v15360_v44  ;;  %22403 = vmatprep.mubr.msk.f32.mxu0 %vm23945_vm0, %v23946_v8 }
 0xca4   :  { %22406 = vmatprep.subr.mxu0 %v23946_v8 }
 0xca6   :  { %22429 = vmatmul.mubr.f32.vlgmr.msra.gmra.mrb[48].mxu1 %v25820_v32 }
 0xca7   :  { %22432 = vmatpush3.xpose.msra.mxu1 %v15812_v31  ;;  %22433 = vmatprep.mubr.msk.f32.mxu1 %vm23945_vm0, %v23946_v8 }
 0xca8   :  { %22436 = vmatprep.subr.mxu1 %v23946_v8 }
 0xcaa   :  { %22404 = vmatmul.mubr.f32.vlgmr.msra.gmra.mrb[36].mxu0 %v15349_v54 }
 0xcab   :  { %22407 = vmatpush3.xpose.msra.mxu0 %v25811_v37  ;;  %22408 = vmatprep.mubr.msk.f32.mxu0 %vm23945_vm0, %v23946_v8 }
 0xcac   :  { %22411 = vmatprep.subr.mxu0 %v23946_v8 }
 0xcae   :  { %22434 = vmatmul.mubr.f32.vlgmr.msra.gmra.mrb[48].mxu1 %v15801_v6 }
 0xcaf   :  { %22437 = vmatpush3.xpose.msra.mxu1 %v25824_v30  ;;  %22438 = vmatprep.mubr.msk.f32.mxu1 %vm23945_vm0, %v23946_v8 }
 0xcb0   :  { %22441 = vmatprep.subr.mxu1 %v23946_v8 }
 0xcb2   :  { %22409 = vmatmul.mubr.f32.vlgmr.msra.gmra.mrb[36].mxu0 %v15350_v18 }
 0xcb3   :  { %22412 = vmatpush3.xpose.msra.mxu0 %v15361_v55  ;;  %22413 = vmatprep.mubr.msk.f32.mxu0 %vm23945_vm0, %v23946_v8 }
 0xcb4   :  { %22416 = vmatprep.subr.mxu0 %v23946_v8 }
 0xcb6   :  { %22439 = vmatmul.mubr.f32.vlgmr.msra.gmra.mrb[48].mxu1 %v15802_v5 }
 0xcb7   :  { %22442 = vmatpush3.xpose.msra.mxu1 %v15813_v56  ;;  %22443 = vmatprep.mubr.msk.f32.mxu1 %vm23945_vm0, %v23946_v8 }
 0xcb8   :  { %22446 = vmatprep.subr.mxu1 %v23946_v8 }
 0xcba   :  { %22414 = vmatmul.mubr.f32.vlgmr.msra.gmra.mrb[36].mxu0 %v25808_v36 }
 0xcbb   :  { %22417 = vmatpush3.xpose.msra.mxu0 %v25811_v37  ;;  %22418 = vmatprep.mubr.msk.f32.mxu0 %vm23945_vm0, %v23946_v8 }
 0xcbc   :  { %22451 = vmatprep.subr.mxu0 %v23946_v8 }
 0xcbe   :  { %22444 = vmatmul.mubr.f32.vlgmr.msra.gmra.mrb[48].mxu1 %v25820_v32 }
 0xcbf   :  { %22447 = vmatpush3.xpose.msra.mxu1 %v25824_v30  ;;  %22448 = vmatprep.mubr.msk.f32.mxu1 %vm23945_vm0, %v23946_v8 }
 0xcc0   :  { %22481 = vmatprep.subr.mxu1 %v23946_v8 }
 0xcc2   :  { %22419 = vmatmul.mubr.f32.vlgmr.msra.gmra.mrb[36].mxu0 %v25808_v36  ;;  %v16736_v36 = vsub.f32 %v16653_v49, %v25894_v61 }
 0xcc3   :  { %22452 = vmatpush3.xpose.msra.mxu0 %v16187_v34  ;;  %22453 = vmatprep.mubr.msk.f32.mxu0 %vm23945_vm0, %v23946_v8 }
 0xcc4   :  { %22456 = vmatprep.subr.mxu0 %v23946_v8  ;;  %v16737_v54 = vand.u32 4294901760, %v16736_v36 }
 0xcc6   :  { %22449 = vmatmul.mubr.f32.vlgmr.msra.gmra.mrb[48].mxu1 %v25820_v32  ;;  %22454 = vmatmul.mubr.f32.vlgmr.msra.gmra.mrb[38].mxu0 %v16256_v27  ;;  %v16738_v30 = vsub.f32 %v16736_v36, %v16737_v54 }
 0xcc7   :  { %22457 = vmatpush3.xpose.msra.mxu0 %v16267_v16  ;;  %22482 = vmatpush3.msra.mxu1 %v25894_v61 }
 0xcc8   :  { %22458 = vmatprep.mubr.msk.f32.mxu0 %vm23945_vm0, %v23946_v8  ;;  %22461 = vmatprep.subr.mxu0 %v23946_v8  ;;  %v16739_v55 = vand.u32 4294901760, %v16738_v30 }
 0xcc9   :  { %22483 = vmatprep.mubr.msk.f32.mxu1 %vm23945_vm0, %v23946_v8  ;;  %22486 = vmatprep.subr.mxu1 %v23946_v8 }
 0xcce   :  { %22459 = vmatmul.mubr.f32.vlgmr.msra.gmra.mrb[38].mxu0 %v16252_v28 }
 0xccf   :  { %22462 = vmatpush3.xpose.msra.mxu0 %v16264_v47  ;;  %22463 = vmatprep.mubr.msk.f32.mxu0 %vm23945_vm0, %v23946_v8 }
 0xcd0   :  { %22466 = vmatprep.subr.mxu0 %v23946_v8 }
 0xcd6   :  { %v25907_v23 = vpop.f32.mrb[42].mxu1  ;;  %22464 = vmatmul.mubr.f32.vlgmr.msra.gmra.mrb[38].mxu0 %v16253_v50 }
 0xcd7   :  { %22467 = vmatpush3.xpose.msra.mxu0 %v16187_v34  ;;  %v22270_v40 = vpop.f32.mrb[43].mxu1  ;;  %22468 = vmatprep.mubr.msk.f32.mxu0 %vm23945_vm0, %v23946_v8 }
 0xcd8   :  { %22471 = vmatprep.subr.mxu0 %v23946_v8 }
 0xcde   :  { %22469 = vmatmul.mubr.f32.vlgmr.msra.gmra.mrb[38].mxu0 %v16254_v19  ;;  %v17189_v19 = vand.u32 4294901760, %v25952_v21 }
 0xcdf   :  { %22472 = vmatpush3.xpose.msra.mxu0 %v16265_v52  ;;  %22473 = vmatprep.mubr.msk.f32.mxu0 %vm23945_vm0, %v23946_v8  ;;  %v25964_v52 = vsub.f32 %v17557_v17, %v25954_v51 }
 0xce0   :  { %22476 = vmatprep.subr.mxu0 %v23946_v8 }
 0xce6   :  { %22474 = vmatmul.mubr.f32.vlgmr.msra.gmra.mrb[38].mxu0 %v16252_v28 }
 0xce7   :  { %22477 = vmatpush3.xpose.msra.mxu0 %v16187_v34  ;;  %22478 = vmatprep.mubr.msk.f32.mxu0 %vm23945_vm0, %v23946_v8 }
 0xce8   :  { %22511 = vmatprep.subr.mxu0 %v23946_v8 }
 0xcee   :  { %22479 = vmatmul.mubr.f32.vlgmr.msra.gmra.mrb[38].mxu0 %v16252_v28 }
 0xcef   :  { %22512 = vmatpush3.msra.mxu0 %v25918_v20  ;;  %22513 = vmatprep.mubr.msk.f32.mxu0 %vm23945_vm0, %v23946_v8 }
 0xcf0   :  { %22516 = vmatprep.subr.mxu0 %v23946_v8 }
 0xd3d   :  { %v25924_v43 = vpop.f32.mrb[32].mxu0 }
 0xd3e   :  { %v22300_v11 = vpop.f32.mrb[33].mxu0 }
 0xd3f   :  { %v17190_v11 = vsub.f32 %v25952_v21, %v17189_v19 }
 0xd41   :  { %v25926_v41 = vpop.f32.mrb[44].mxu1 }
 0xd42   :  { %v22330_v15 = vpop.f32.mrb[45].mxu1 }
 0xd43   :  { %v17641_v15 = vand.u32 4294901760, %v25964_v52 }
 0xd69   :  { %v25928_v60 = vpop.f32.mrb[34].mxu0 }
 0xd6a   :  { %v22360_v22 = vpop.f32.mrb[35].mxu0 }
 0xd6d   :  { %v15272_v25 = vpop.f32.mrb[46].mxu1 }
 0xd6e   :  { %v20294_v53 = vclamps-f32 %v15272_v25, 5.0  ;;  %v22390_v42 = vpop.f32.mrb[47].mxu1  ;;  %v14775_v25 = vsel %vm1075_vm2, %v25743_v10, 0.0 }
 0xd70   :  { %v16640_v46 = vmul.f32 1.442695, %v20294_v53 }
 0xd72   :  { %23862 = vpow2.f32 %v16640_v46  ;;  %v17191_v46 = vand.u32 4294901760, %v17190_v11 }
 0xd7c   :  { %v23863_v14 = vpop.eup %23862 }
 0xd7d   :  { %v16648_v37 = vsel %vm24468_vm4, %v23863_v14, 0.0  ;;  %v17642_v14 = vsub.f32 %v25964_v52, %v17641_v15 }
 0xd7e   :  { %v16656_v4 = vsel %vm1075_vm2, %v16648_v37, 0  ;;  %v18460_v16 = vsel %vm1075_vm2, %v16648_v37, 0.0 }
 0xd7f   :  { %v25934_v33 = vand.u32 4294901760, %v16656_v4  ;;  %v17643_v10 = vand.u32 4294901760, %v17642_v14 }
 0xd81   :  { %v16725_v32 = vsub.f32 %v16656_v4, %v25934_v33 }
 0xd83   :  { %v16726_v44 = vand.u32 4294901760, %v16725_v32 }
 0xd85   :  { %v16727_v18 = vsub.f32 %v16725_v32, %v16726_v44 }
 0xd87   :  { %v16728_v6 = vand.u32 4294901760, %v16727_v18 }
 0xd89   :  { %22484 = vmatmul.mubr.f32.vlgmr.msra.gmra.mrb[50].mxu1 %v16728_v6 }
 0xd8a   :  { %22487 = vmatpush3.msra.mxu1 %v16739_v55  ;;  %22488 = vmatprep.mubr.msk.f32.mxu1 %vm23945_vm0, %v23946_v8 }
 0xd8b   :  { %22491 = vmatprep.subr.mxu1 %v23946_v8 }
 0xd91   :  { %22489 = vmatmul.mubr.f32.vlgmr.msra.gmra.mrb[50].mxu1 %v25934_v33 }
 0xd92   :  { %22492 = vmatpush3.msra.mxu1 %v16736_v36  ;;  %22493 = vmatprep.mubr.msk.f32.mxu1 %vm23945_vm0, %v23946_v8 }
 0xd93   :  { %22496 = vmatprep.subr.mxu1 %v23946_v8 }
 0xd95   :  { %v15724_v31 = vpop.f32.mrb[36].mxu0 }
 0xd96   :  { %v20295_v38 = vclamps-f32 %v15724_v31, 5.0  ;;  %v22420_v5 = vpop.f32.mrb[37].mxu0 }
 0xd98   :  { %v16642_v63 = vmul.f32 1.442695, %v20295_v38 }
 0xd99   :  { %v16176_v56 = vpop.f32.mrb[48].mxu1  ;;  %22494 = vmatmul.mubr.f32.vlgmr.msra.gmra.mrb[50].mxu1 %v16725_v32 }
 0xd9a   :  { %23864 = vpow2.f32 %v16642_v63  ;;  %v20296_v57 = vclamps-f32 %v16176_v56, 5.0  ;;  %22497 = vmatpush3.msra.mxu1 %v25894_v61  ;;  %v22450_v2 = vpop.f32.mrb[49].mxu1  ;;  %22498 = vmatprep.mubr.msk.f32.mxu1 %vm23945_vm0, %v23946_v8 }
 0xd9b   :  { %22501 = vmatprep.subr.mxu1 %v23946_v8 }
 0xd9c   :  { %v16644_v7 = vmul.f32 1.442695, %v20296_v57 }
 0xd9e   :  { %23866 = vpow2.f32 %v16644_v7  ;;  %v14772_v7 = vsel %vm1075_vm2, %v25690_v12, 0.0 }
 0xda1   :  { %22499 = vmatmul.mubr.f32.vlgmr.msra.gmra.mrb[50].mxu1 %v16726_v44  ;;  %v18009_v44 = vpop.permute.xlu0 %18008 }
 0xda2   :  { %22502 = vmatpush3.msra.mxu1 %v16737_v54  ;;  %22503 = vmatprep.mubr.msk.f32.mxu1 %vm23945_vm0, %v23946_v8  ;;  %v18015_v30 = vand.u32 4294901760, %v18009_v44 }
 0xda3   :  { %22506 = vmatprep.subr.mxu1 %v23946_v8 }
 0xda4   :  { %v23865_v62 = vpop.eup %23864  ;;  %v18092_v6 = vsub.f32 %v18009_v44, %v18015_v30 }
 0xda5   :  { %v16649_v9 = vsel %vm24468_vm4, %v23865_v62, 0.0 }
 0xda6   :  { %v18463_v28 = vsel %vm1075_vm2, %v16649_v9, 0.0  ;;  %v17108_v34 = vsel %vm1075_vm2, %v16649_v9, 0  ;;  %v18093_v63 = vand.u32 4294901760, %v18092_v6 }
 0xda7   :  { %18464 = vadd.xlane.f32.xlu1 %v18463_v28  ;;  %v25960_v50 = vand.u32 4294901760, %v17108_v34 }
 0xda8   :  { %v23867_v47 = vpop.eup %23866  ;;  %v18094_v57 = vsub.f32 %v18092_v6, %v18093_v63 }
 0xda9   :  { %v17177_v45 = vsub.f32 %v17108_v34, %v25960_v50  ;;  %22504 = vmatmul.mubr.f32.vlgmr.msra.gmra.mrb[50].mxu1 %v25934_v33  ;;  %v16650_v13 = vsel %vm24468_vm4, %v23867_v47, 0.0 }
 0xdaa   :  { %22507 = vmatpush3.msra.mxu1 %v25894_v61  ;;  %v18466_v49 = vsel %vm1075_vm2, %v16650_v13, 0.0  ;;  %v17560_v27 = vsel %vm1075_vm2, %v16650_v13, 0  ;;  %22508 = vmatprep.mubr.msk.f32.mxu1 %vm23945_vm0, %v23946_v8  ;;  %v18095_v17 = vand.u32 4294901760, %v18094_v57 }
 0xdab   :  { %v17178_v40 = vand.u32 4294901760, %v17177_v45  ;;  %18467 = vadd.xlane.f32.xlu0 %v18466_v49  ;;  %v25976_v1 = vand.u32 4294901760, %v17560_v27  ;;  %18461 = vadd.xlane.f32.xlu1 %v18460_v16 }
 0xdac   :  { %22541 = vmatprep.subr.mxu1 %v23946_v8 }
 0xdad   :  { %v17629_v61 = vsub.f32 %v17560_v27, %v25976_v1  ;;  %v17179_v22 = vsub.f32 %v17177_v45, %v17178_v40 }
 0xdaf   :  { %v17630_v53 = vand.u32 4294901760, %v17629_v61  ;;  %14776 = vadd.xlane.f32.xlu1 %v14775_v25  ;;  %v17180_v42 = vand.u32 4294901760, %v17179_v22 }
 0xdb1   :  { %22509 = vmatmul.mubr.f32.vlgmr.msra.gmra.mrb[50].mxu1 %v25934_v33  ;;  %22514 = vmatmul.mubr.f32.vlgmr.msra.gmra.mrb[40].mxu0 %v17180_v42  ;;  %v17631_v36 = vsub.f32 %v17629_v61, %v17630_v53 }
 0xdb2   :  { %22517 = vmatpush3.msra.mxu0 %v17191_v46  ;;  %22542 = vmatpush3.msra.mxu1 %v25954_v51 }
 0xdb3   :  { %22543 = vmatprep.mubr.msk.f32.mxu1 %vm23945_vm0, %v23946_v8  ;;  %22546 = vmatprep.subr.mxu1 %v23946_v8  ;;  %v17632_v37 = vand.u32 4294901760, %v17631_v36 }
 0xdb4   :  { %22518 = vmatprep.mubr.msk.f32.mxu0 %vm23945_vm0, %v23946_v8  ;;  %22521 = vmatprep.subr.mxu0 %v23946_v8 }
 0xdb5   :  { %22544 = vmatmul.mubr.f32.vlgmr.msra.gmra.mrb[52].mxu1 %v17632_v37 }
 0xdb6   :  { %22547 = vmatpush3.msra.mxu1 %v17643_v10  ;;  %22548 = vmatprep.mubr.msk.f32.mxu1 %vm23945_vm0, %v23946_v8 }
 0xdb7   :  { %22551 = vmatprep.subr.mxu1 %v23946_v8 }
 0xdb9   :  { %22519 = vmatmul.mubr.f32.vlgmr.msra.gmra.mrb[40].mxu0 %v25960_v50 }
 0xdba   :  { %22522 = vmatpush3.msra.mxu0 %v25952_v21  ;;  %22523 = vmatprep.mubr.msk.f32.mxu0 %vm23945_vm0, %v23946_v8 }
 0xdbb   :  { %22526 = vmatprep.subr.mxu0 %v23946_v8 }
 0xdbd   :  { %22549 = vmatmul.mubr.f32.vlgmr.msra.gmra.mrb[52].mxu1 %v25976_v1 }
 0xdbe   :  { %22552 = vmatpush3.msra.mxu1 %v25964_v52  ;;  %22553 = vmatprep.mubr.msk.f32.mxu1 %vm23945_vm0, %v23946_v8 }
 0xdbf   :  { %22556 = vmatprep.subr.mxu1 %v23946_v8 }
 0xdc1   :  { %v16628_v4 = vpop.f32.mrb[38].mxu0  ;;  %22524 = vmatmul.mubr.f32.vlgmr.msra.gmra.mrb[40].mxu0 %v17177_v45 }
 0xdc2   :  { %v20297_v33 = vclamps-f32 %v16628_v4, 5.0  ;;  %22527 = vmatpush3.msra.mxu0 %v25918_v20  ;;  %v22480_v54 = vpop.f32.mrb[39].mxu0  ;;  %22528 = vmatprep.mubr.msk.f32.mxu0 %vm23945_vm0, %v23946_v8 }
 0xdc3   :  { %22531 = vmatprep.subr.mxu0 %v23946_v8 }
 0xdc4   :  { %v16646_v32 = vmul.f32 1.442695, %v20297_v33 }
 0xdc5   :  { %22554 = vmatmul.mubr.f32.vlgmr.msra.gmra.mrb[52].mxu1 %v17629_v61 }
 0xdc6   :  { %23868 = vpow2.f32 %v16646_v32  ;;  %22557 = vmatpush3.msra.mxu1 %v25954_v51  ;;  %22558 = vmatprep.mubr.msk.f32.mxu1 %vm23945_vm0, %v23946_v8 }
 0xdc7   :  { %22561 = vmatprep.subr.mxu1 %v23946_v8 }
 0xdc9   :  { %22529 = vmatmul.mubr.f32.vlgmr.msra.gmra.mrb[40].mxu0 %v17178_v40 }
 0xdca   :  { %22532 = vmatpush3.msra.mxu0 %v17189_v19  ;;  %22533 = vmatprep.mubr.msk.f32.mxu0 %vm23945_vm0, %v23946_v8 }
 0xdcb   :  { %22536 = vmatprep.subr.mxu0 %v23946_v8 }
 0xdcd   :  { %22559 = vmatmul.mubr.f32.vlgmr.msra.gmra.mrb[52].mxu1 %v17630_v53 }
 0xdce   :  { %22562 = vmatpush3.msra.mxu1 %v17641_v15  ;;  %22563 = vmatprep.mubr.msk.f32.mxu1 %vm23945_vm0, %v23946_v8 }
 0xdcf   :  { %22566 = vmatprep.subr.mxu1 %v23946_v8 }
 0xdd0   :  { %v23869_v18 = vpop.eup %23868 }
 0xdd1   :  { %22534 = vmatmul.mubr.f32.vlgmr.msra.gmra.mrb[40].mxu0 %v25960_v50  ;;  %v16651_v55 = vsel %vm24468_vm4, %v23869_v18, 0.0 }
 0xdd2   :  { %22537 = vmatpush3.msra.mxu0 %v25918_v20  ;;  %v18469_v31 = vsel %vm1075_vm2, %v16651_v55, 0.0  ;;  %v18012_v38 = vsel %vm1075_vm2, %v16651_v55, 0  ;;  %22538 = vmatprep.mubr.msk.f32.mxu0 %vm23945_vm0, %v23946_v8 }
 0xdd3   :  { %18470 = vadd.xlane.f32.xlu0 %v18469_v31  ;;  %v18080_v5 = vand.u32 4294901760, %v18012_v38  ;;  %22571 = vmatprep.subr.mxu0 %v23946_v8 }
 0xdd5   :  { %v18081_v56 = vsub.f32 %v18012_v38, %v18080_v5  ;;  %22564 = vmatmul.mubr.f32.vlgmr.msra.gmra.mrb[52].mxu1 %v25976_v1 }
 0xdd6   :  { %22567 = vmatpush3.msra.mxu1 %v25954_v51  ;;  %22568 = vmatprep.mubr.msk.f32.mxu1 %vm23945_vm0, %v23946_v8 }
 0xdd7   :  { %v18082_v20 = vand.u32 4294901760, %v18081_v56  ;;  %14770 = vadd.xlane.f32.xlu0 %v14769_v48  ;;  %23219 = vmatprep.subr.bf16.mxu1 %v23944_v3 }
 0xdd9   :  { %22539 = vmatmul.mubr.f32.vlgmr.msra.gmra.mrb[40].mxu0 %v25960_v50  ;;  %v18083_v2 = vsub.f32 %v18081_v56, %v18082_v20 }
 0xdda   :  { %22572 = vmatpush3.msra.mxu0 %v18015_v30  ;;  %22573 = vmatprep.mubr.msk.f32.mxu0 %vm23945_vm0, %v23946_v8 }
 0xddb   :  { %14773 = vadd.xlane.f32.xlu0 %v14772_v7  ;;  %22576 = vmatprep.subr.mxu0 %v23946_v8  ;;  %v18084_v29 = vand.u32 4294901760, %v18083_v2 }
 0xddd   :  { %22569 = vmatmul.mubr.f32.vlgmr.msra.gmra.mrb[52].mxu1 %v25976_v1  ;;  %22574 = vmatmul.mubr.f32.vlgmr.msra.gmra.mrb[42].mxu0 %v18084_v29 }
 0xdde   :  { %22577 = vmatpush3.msra.mxu0 %v18095_v17  ;;  %22578 = vmatprep.mubr.msk.f32.mxu0 %vm23945_vm0, %v23946_v8 }
 0xddf   :  { %22581 = vmatprep.subr.mxu0 %v23946_v8  ;;  %22617 = vmatprep.mubr.msk.f32.mxu1 %vm23945_vm0, %v23946_v8 }
 0xde5   :  { %22579 = vmatmul.mubr.f32.vlgmr.msra.gmra.mrb[42].mxu0 %v18080_v5 }
 0xde6   :  { %22582 = vmatpush3.msra.mxu0 %v18092_v6  ;;  %22583 = vmatprep.mubr.msk.f32.mxu0 %vm23945_vm0, %v23946_v8 }
 0xde7   :  { %22586 = vmatprep.subr.mxu0 %v23946_v8 }
 0xded   :  { %22584 = vmatmul.mubr.f32.vlgmr.msra.gmra.mrb[42].mxu0 %v18081_v56 }
 0xdee   :  { %22587 = vmatpush3.msra.mxu0 %v18015_v30  ;;  %22588 = vmatprep.mubr.msk.f32.mxu0 %vm23945_vm0, %v23946_v8 }
 0xdef   :  { %22591 = vmatprep.subr.mxu0 %v23946_v8 }
 0xdf5   :  { %22589 = vmatmul.mubr.f32.vlgmr.msra.gmra.mrb[42].mxu0 %v18082_v20 }
 0xdf6   :  { %22592 = vmatpush3.msra.mxu0 %v18093_v63  ;;  %22593 = vmatprep.mubr.msk.f32.mxu0 %vm23945_vm0, %v23946_v8 }
 0xdf7   :  { %22596 = vmatprep.subr.mxu0 %v23946_v8 }
 0xdfd   :  { %22594 = vmatmul.mubr.f32.vlgmr.msra.gmra.mrb[42].mxu0 %v18080_v5 }
 0xdfe   :  { %22597 = vmatpush3.msra.mxu0 %v18015_v30  ;;  %22598 = vmatprep.mubr.msk.f32.mxu0 %vm23945_vm0, %v23946_v8 }
 0xdff   :  { %23291 = vmatprep.subr.bf16.mxu0 %v23944_v3 }
 0xe05   :  { %22599 = vmatmul.mubr.f32.vlgmr.msra.gmra.mrb[42].mxu0 %v18080_v5 }
 0xe06   :  { %22723 = vmatprep.mubr.msk.f32.mxu0 %vm23945_vm0, %v23946_v8 }
 0xe34   :  { %v18465_v12 = vpop.xlane.xlu1 %18464 }
 0xe35   :  { %v18473_v49 = vmax.f32 %v18465_v12, 1e-30 }
 0xe38   :  { %v18462_v62 = vpop.xlane.xlu1 %18461  ;;  %v18468_v47 = vpop.xlane.xlu0 %18467 }
 0xe39   :  { %v18472_v21 = vmax.f32 %v18462_v62, 1e-30  ;;  %v18474_v40 = vmax.f32 %v18468_v47, 1e-30 }
 0xe3b   :  { %23870 = vrcp.f32 %v18472_v21 }
 0xe3c   :  { %23872 = vrcp.f32 %v18473_v49  ;;  %v14777_v11 = vpop.xlane.xlu1 %14776 }
 0xe3d   :  { %v14781_v15 = vmax.f32 %v14777_v11, 1e-30 }
 0xe45   :  { %v23871_v51 = vpop.eup %23870 }
 0xe46   :  { %v18480_v9 = vmul.f32 %v23871_v51, %v18472_v21  ;;  %v23873_v61 = vpop.eup %23872 }
 0xe47   :  { %v18481_v25 = vmul.f32 %v23873_v61, %v18473_v49 }
 0xe48   :  { %v18484_v28 = vsub.f32 2.0, %v18480_v9 }
 0xe49   :  { %v18485_v14 = vsub.f32 2.0, %v18481_v25  ;;  %v18523_v25 = vld [vmem:[%s26455_s14 + $0x38] sm:$0xff] }
 0xe4a   :  { %v18488_v34 = vmul.f32 %v23871_v51, %v18484_v28  ;;  %v18517_v28 = vld [vmem:[%s26455_s14 + $0x8] sm:$0xff] }
 0xe4b   :  { %v18489_v54 = vmul.f32 %v23873_v61, %v18485_v14 }
 0xe60   :  { %v18471_v45 = vpop.xlane.xlu0 %18470 }
 0xe61   :  { %v18475_v29 = vmax.f32 %v18471_v45, 1e-30 }
 0xe64   :  { %v14771_v13 = vpop.xlane.xlu0 %14770 }
 0xe65   :  { %v14779_v27 = vmax.f32 %v14771_v13, 1e-30  ;;  %v18519_v13 = vld [vmem:[%s26455_s14 + $0x18] sm:$0xff] }
 0xe67   :  { %23874 = vrcp.f32 %v14779_v27 }
 0xe68   :  { %v14774_v16 = vpop.xlane.xlu0 %14773  ;;  %23876 = vrcp.f32 %v18474_v40 }
 0xe69   :  { %v14780_v1 = vmax.f32 %v14774_v16, 1e-30 }
 0xe6b   :  { %23878 = vrcp.f32 %v14780_v1 }
 0xe6c   :  { %23880 = vrcp.f32 %v14781_v15 }
 0xe6d   :  { %23882 = vrcp.f32 %v18475_v29 }
 0xe71   :  { %v23875_v22 = vpop.eup %23874 }
 0xe72   :  { %v23877_v53 = vpop.eup %23876  ;;  %v14787_v42 = vmul.f32 %v23875_v22, %v14779_v27  ;;  %v18544_v27 = vand.u32 4294901760, %v18519_v13 }
 0xe73   :  { %v18482_v36 = vmul.f32 %v23877_v53, %v18474_v40  ;;  %v18520_v40 = vld [vmem:[%s26455_s14 + $0x20] sm:$0xff] }
 0xe74   :  { %v14791_v37 = vsub.f32 2.0, %v14787_v42  ;;  %v18547_v11 = vand.u32 4294901760, %v18520_v40 }
 0xe75   :  { %v23879_v46 = vpop.eup %23878  ;;  %v18486_v33 = vsub.f32 2.0, %v18482_v36 }
 0xe76   :  { %v14788_v10 = vmul.f32 %v23879_v46, %v14780_v1  ;;  %v23881_v4 = vpop.eup %23880  ;;  %v14795_v30 = vmul.f32 %v23875_v22, %v14791_v37  ;;  %v18521_v1 = vld [vmem:[%s26455_s14 + $0x28] sm:$0xff]  ;;  %v18522_v22 = vld [vmem:[%s26455_s14 + $0x30] sm:$0xff] }
 0xe77   :  { %v14789_v44 = vmul.f32 %v23881_v4, %v14781_v15  ;;  %v18490_v31 = vmul.f32 %v23877_v53, %v18486_v33  ;;  %v23883_v17 = vpop.eup %23882  ;;  %v18550_v15 = vand.u32 4294901760, %v18521_v1  ;;  %v18553_v42 = vand.u32 4294901760, %v18522_v22 }
 0xe78   :  { %v14792_v18 = vsub.f32 2.0, %v14788_v10  ;;  %v14799_v20 = vmul.f32 %v14795_v30, %v25924_v43  ;;  %v18483_v12 = vmul.f32 %v23883_v17, %v18475_v29  ;;  %v26118_v10 = vsub.f32 %v18519_v13, %v18544_v27  ;;  %v23895_v13 = vld [vmem:[%s26494_s6] sm:$0xff] }
 0xe79   :  { %v14793_v5 = vsub.f32 2.0, %v14789_v44  ;;  %v26105_v61 = vpack.c.bf16 %v18550_v15, %v18547_v11 }
 0xe7a   :  { %v14796_v63 = vmul.f32 %v23879_v46, %v14792_v18  ;;  %v18487_v62 = vsub.f32 2.0, %v18483_v12  ;;  %v18556_v46 = vand.u32 4294901760, %v18523_v25  ;;  %v26145_v12 = vsub.f32 %v18522_v22, %v18553_v42 }
 0xe7b   :  { %v14797_v57 = vmul.f32 %v23881_v4, %v14793_v5  ;;  %v26132_v5 = vsub.f32 %v18520_v40, %v18547_v11 }
 0xe7c   :  { %v14800_v2 = vmul.f32 %v14796_v63, %v25926_v41  ;;  %v18491_v21 = vmul.f32 %v23883_v17, %v18487_v62  ;;  %v14766_v41 = vsel %vm1075_vm2, %v25648_v24, 0.0  ;;  %v18518_v24 = vld [vmem:[%s26455_s14 + $0x10] sm:$0xff]  ;;  %v26121_v33 = vpack.c.bf16 %v18556_v46, %v18553_v42 }
 0xe7d   :  { %v14801_v7 = vmul.f32 %v14797_v57, %v25928_v60  ;;  %v18516_v60 = vld [vmem:[%s26455_s14] sm:$0xff]  ;;  %v18541_v49 = vand.u32 4294901760, %v18518_v24  ;;  %v26134_v63 = vsub.f32 %v18521_v1, %v18550_v15  ;;  %v26147_v62 = vsub.f32 %v18523_v25, %v18556_v46 }
 0xe7f   :  { %v26095_v16 = vpack.c.bf16 %v18544_v27, %v18541_v49  ;;  %v26116_v37 = vsub.f32 %v18518_v24, %v18541_v49  ;;  %v23250_v15 = vpack.c.bf16 %v26134_v63, %v26132_v5  ;;  %v23253_v22 = vpack.c.bf16 %v26147_v62, %v26145_v12 }
 0xe81   :  { %v23247_v11 = vpack.c.bf16 %v26118_v10, %v26116_v37 }
 0xe84   :  { %v17100_v50 = vpop.f32.mrb[50].mxu1 }
 0xe85   :  { %v26062_v19 = vmul.f32 %v18488_v34, %v17100_v50  ;;  %v22510_v52 = vpop.f32.mrb[51].mxu1  ;;  %v18535_v34 = vand.u32 4294901760, %v18516_v60  ;;  %v18538_v50 = vand.u32 4294901760, %v18517_v28 }
 0xe87   :  { %v26081_v47 = vpack.c.bf16 %v18538_v50, %v18535_v34  ;;  %v26083_v52 = vsub.f32 %v18516_v60, %v18535_v34  ;;  %v26085_v45 = vsub.f32 %v18517_v28, %v18538_v50  ;;  %v18662_v60 = vand.u32 4294901760, %v26145_v12 }
 0xe88   :  { %v18669_v28 = vand.u32 4294901760, %v26147_v62 }
 0xe89   :  { %23221 = vmatpush3.bf16.msra.mxu1 %v26081_v47  ;;  %v18620_v14 = vand.u32 4294901760, %v26083_v52  ;;  %v18627_v36 = vand.u32 4294901760, %v26085_v45  ;;  %v18663_v50 = vsub.f32 %v26145_v12, %v18662_v60  ;;  %v23244_v1 = vpack.c.bf16 %v26085_v45, %v26083_v52 }
 0xe8a   :  { %23222 = vmatprep.subr.bf16.mxu1 %v23944_v3  ;;  %v18670_v24 = vsub.f32 %v26147_v62, %v18669_v28  ;;  %v23277_v46 = vpack.c.bf16 %v18669_v28, %v18662_v60 }
 0xe8b   :  { %v18664_v49 = vand.u32 4294901760, %v18663_v50  ;;  %v23268_v25 = vpack.c.bf16 %v18627_v36, %v18620_v14 }
 0xe8c   :  { %v18671_v27 = vand.u32 4294901760, %v18670_v24 }
 0xe8d   :  { %23224 = vmatpush3.bf16.msra.mxu1 %v26095_v16 }
 0xe8e   :  { %23225 = vmatprep.subr.bf16.mxu1 %v23944_v3  ;;  %v23241_v40 = vpack.c.bf16 %v18671_v27, %v18664_v49 }
 0xe91   :  { %23227 = vmatpush3.bf16.msra.mxu1 %v26105_v61 }
 0xe92   :  { %23228 = vmatprep.subr.bf16.mxu1 %v23944_v3 }
 0xe95   :  { %23230 = vmatpush3.bf16.msra.mxu1 %v26121_v33 }
 0xe96   :  { %23231 = vmatprep.subr.bf16.mxu1 %v23944_v3 }
 0xeac   :  { %v17552_v32 = vpop.f32.mrb[40].mxu0 }
 0xead   :  { %v18493_v6 = vmul.f32 %v18489_v54, %v17552_v32  ;;  %v22540_v55 = vpop.f32.mrb[41].mxu0  ;;  %v18621_v54 = vsub.f32 %v26083_v52, %v18620_v14  ;;  %v18628_v32 = vsub.f32 %v26085_v45, %v18627_v36 }
 0xeae   :  { %v18641_v55 = vand.u32 4294901760, %v26118_v10 }
 0xeaf   :  { %18497 = vrot.lane.b32.xlu0 %v18493_v6, %s26503_s7  ;;  %v18622_v30 = vand.u32 4294901760, %v18621_v54  ;;  %v18629_v18 = vand.u32 4294901760, %v18628_v32  ;;  %v18634_v6 = vand.u32 4294901760, %v26116_v37 }
 0xeb0   :  { %v18004_v38 = vpop.f32.mrb[52].mxu1 }
 0xeb1   :  { %v18494_v56 = vmul.f32 %v18490_v31, %v18004_v38  ;;  %v22570_v48 = vpop.f32.mrb[53].mxu1 }
 0xeb3   :  { %18501 = vrot.lane.b32.xlu1 %v18494_v56, %s26504_s3  ;;  %14803 = vrot.lane.b32.xlu0 %v14799_v20, %s26503_s7  ;;  %v23232_v56 = vpack.c.bf16 %v18629_v18, %v18622_v30  ;;  %v18642_v20 = vsub.f32 %v26118_v10, %v18641_v55 }
 0xeb5   :  { %v18643_v17 = vand.u32 4294901760, %v18642_v20 }
 0xeb7   :  { %14807 = vrot.lane.b32.xlu0 %v14800_v2, %s26504_s3  ;;  %v18648_v2 = vand.u32 4294901760, %v26132_v5 }
 0xebb   :  { %14811 = vrot.lane.b32.xlu0 %v14801_v7, %s26505_s11  ;;  %v18655_v7 = vand.u32 4294901760, %v26134_v63 }
 0xebd   :  { %v23274_v42 = vpack.c.bf16 %v18655_v7, %v18648_v2 }
 0xed8   :  { %v18456_v43 = vpop.f32.mrb[42].mxu0 }
 0xed9   :  { %v18495_v51 = vmul.f32 %v18491_v21, %v18456_v43  ;;  %v22600_v9 = vpop.f32.mrb[43].mxu0  ;;  %v18649_v21 = vsub.f32 %v26132_v5, %v18648_v2  ;;  %v18656_v43 = vsub.f32 %v26134_v63, %v18655_v7 }
 0xedb   :  { %18505 = vrot.lane.b32.xlu1 %v18495_v51, %s26505_s11  ;;  %s26506_s11 = sld [smem:[#allocation15_spill]]  ;;  %v18650_v9 = vand.u32 4294901760, %v18649_v21 }
 0xee1   :  { %v20299_v29 = vld [vmem:[%s26506_s11] ss:$0 sm:$0xff] }
 0xeff   :  { %14767 = vadd.xlane.f32.xlu1 %v14766_v41  ;;  %v18657_v41 = vand.u32 4294901760, %v18656_v43 }
 0xf01   :  { %v23238_v34 = vpack.c.bf16 %v18657_v41, %v18650_v9 }
 0xf21   :  { %v18498_v53 = vpop.permute.xlu0 %18497 }
 0xf22   :  { %v18508_v44 = vsel %vm1075_vm2, %v26062_v19, %v18498_v53  ;;  %v18635_v19 = vsub.f32 %v26116_v37, %v18634_v6  ;;  %v23271_v53 = vpack.c.bf16 %v18641_v55, %v18634_v6 }
 0xf24   :  { %v18636_v57 = vand.u32 4294901760, %v18635_v19 }
 0xf25   :  { %v18502_v4 = vpop.permute.xlu1 %18501  ;;  %v14804_v52 = vpop.permute.xlu0 %14803 }
 0xf26   :  { %v18509_v31 = vsel %vm4764_vm5, %v18508_v44, %v18502_v4  ;;  %v23235_v51 = vpack.c.bf16 %v18643_v17, %v18636_v57 }
 0xf29   :  { %v14808_v18 = vpop.permute.xlu0 %14807 }
 0xf4d   :  { %v18506_v38 = vpop.permute.xlu1 %18505 }
 0xf4e   :  { %v18510_v48 = vsel %vm4766_vm6, %v18509_v31, %v18506_v38  ;;  %v14812_v31 = vpop.permute.xlu0 %14811 }
 0xf4f   :  { %18512 = vrot.lane.b32.xlu0 %v18510_v48, %s23951_s0 }
 0xf53   :  { %19077 = vrot.lane.b32.xlu0 %v20299_v29, %s26501_s25 }
 0xf57   :  { %19089 = vrot.lane.b32.xlu0 %v23895_v13, %s26501_s25 }
 0xf8c   :  { %v14768_v4 = vpop.xlane.xlu1 %14767 }
 0xf8d   :  { %v14778_v54 = vmax.f32 %v14768_v4, 1e-30  ;;  %v19139_v4 = vld [vmem:[%s26457_s16] sm:$0xff] }
 0xf8f   :  { %23884 = vrcp.f32 %v14778_v54 }
 0xf99   :  { %v23885_v32 = vpop.eup %23884 }
 0xf9a   :  { %v14786_v44 = vmul.f32 %v23885_v32, %v14778_v54  ;;  %v19140_v54 = vld [vmem:[%s26457_s16 + $0x8] sm:$0xff] }
 0xf9c   :  { %v14790_v30 = vsub.f32 2.0, %v14786_v44  ;;  %v19159_v44 = vand.u32 4294901760, %v19140_v54 }
 0xf9e   :  { %v14794_v45 = vmul.f32 %v23885_v32, %v14790_v30  ;;  %v19156_v32 = vand.u32 4294901760, %v19139_v4 }
 0xfa0   :  { %v14798_v37 = vmul.f32 %v14794_v45, %v25907_v23  ;;  %v20298_v23 = vld [vmem:[%s26456_s15] ss:$0 sm:$0xff]  ;;  %v19236_v45 = vsub.f32 %v19139_v4, %v19156_v32  ;;  %v19646_v4 = vld [vmem:[%s26459_s18 + $0x28] sm:$0xff] }
 0xfa2   :  { %v14814_v10 = vsel %vm1075_vm2, %v14798_v37, %v14804_v52  ;;  %v26241_v52 = vpack.c.bf16 %v19159_v44, %v19156_v32  ;;  %v19141_v37 = vld [vmem:[%s26457_s16 + $0x10] sm:$0xff]  ;;  %v19675_v32 = vand.u32 4294901760, %v19646_v4 }
 0xfa3   :  { %v14815_v38 = vsel %vm4764_vm5, %v14814_v10, %v14808_v18  ;;  %v19243_v18 = vsub.f32 %v19140_v54, %v19159_v44  ;;  %v19142_v10 = vld [vmem:[%s26457_s16 + $0x18] sm:$0xff] }
 0xfa4   :  { %v14816_v36 = vsel %vm4766_vm6, %v14815_v38, %v14812_v31  ;;  %23293 = vmatpush3.bf16.msra.mxu0 %v26241_v52  ;;  %v19162_v31 = vand.u32 4294901760, %v19141_v37  ;;  %v19165_v38 = vand.u32 4294901760, %v19142_v10 }
 0xfa5   :  { %23294 = vmatprep.subr.bf16.mxu0 %v23944_v3 }
 0xfc1   :  { %v18513_v14 = vpop.permute.xlu0 %18512 }
 0xfc2   :  { %v18515_v6 = vsel %vm85_vm1, %v14816_v36, %v18513_v14  ;;  %v19237_v14 = vand.u32 4294901760, %v19236_v45  ;;  %v19244_v36 = vand.u32 4294901760, %v19243_v18 }
 0xfc3   :  { %v18532_v55 = vsel %vm8482_vm7, %v18515_v6, 0 }
 0xfc4   :  { %v18607_v5 = vand.u32 4294901760, %v18532_v55 }
 0xfc5   :  { %v19078_v2 = vpop.permute.xlu0 %19077 }
 0xfc6   :  { %v18608_v63 = vsub.f32 %v18532_v55, %v18607_v5  ;;  %v19080_v7 = vadd.f32 %v19078_v2, %v25478_v39  ;;  %v23295_v55 = vpack.c.bf16 %v19165_v38, %v19162_v31 }
 0xfc8   :  { %v18609_v19 = vand.u32 4294901760, %v18608_v63  ;;  %v20300_v29 = vmul.f32 -1.442695, %v19080_v7  ;;  %23296 = vmatpush3.bf16.msra.mxu0 %v23295_v55 }
 0xfc9   :  { %v19090_v21 = vpop.permute.xlu0 %19089  ;;  %23297 = vmatprep.subr.bf16.mxu0 %v23944_v3 }
 0xfca   :  { %v18610_v48 = vsub.f32 %v18608_v63, %v18609_v19  ;;  %23886 = vpow2.f32 %v20300_v29 }
 0xfcc   :  { %v18611_v20 = vand.u32 4294901760, %v18610_v48 }
 0xfce   :  { %22618 = vmatmul.mubr.f32.vlgmr.msra.gmra.mrb[54].mxu1 %v18611_v20  ;;  %v19245_v20 = vsub.f32 %v19243_v18, %v19244_v36 }
 0xfcf   :  { %23233 = vmatpush3.bf16.msra.mxu1 %v23232_v56  ;;  %22636 = vmatprep.mubr.msk.f32.mxu1 %vm23945_vm0, %v23946_v8  ;;  %v26217_v56 = vld [vmem:[%s26462_s21] sm:$0xf] }
 0xfd0   :  { %23234 = vmatprep.subr.bf16.mxu1 %v23944_v3 }
 0xfd3   :  { %23236 = vmatpush3.bf16.msra.mxu1 %v23235_v51 }
 0xfd4   :  { %23237 = vmatprep.subr.bf16.mxu1 %v23944_v3  ;;  %v23887_v17 = vpop.eup %23886 }
 0xfd5   :  { %v19084_v12 = vadd.f32 1.0, %v23887_v17 }
 0xfd7   :  { %23239 = vmatpush3.bf16.msra.mxu1 %v23238_v34  ;;  %23888 = vrcp.f32 %v19084_v12 }
 0xfd8   :  { %23240 = vmatprep.subr.bf16.mxu1 %v23944_v3 }
 0xfdb   :  { %23242 = vmatpush3.bf16.msra.mxu1 %v23241_v40 }
 0xfdc   :  { %23243 = vmatprep.subr.bf16.mxu1 %v23944_v3 }
 0xfde   :  { %22637 = vmatmul.mubr.f32.vlgmr.msra.gmra.mrb[54].mxu1 %v18607_v5 }
 0xfdf   :  { %23245 = vmatpush3.bf16.msra.mxu1 %v23244_v1  ;;  %22655 = vmatprep.mubr.msk.f32.mxu1 %vm23945_vm0, %v23946_v8 }
 0xfe0   :  { %23246 = vmatprep.subr.bf16.mxu1 %v23944_v3 }
 0xfe1   :  { %v26229_v62 = vpop.eup %23888 }
 0xfe3   :  { %23248 = vmatpush3.bf16.msra.mxu1 %v23247_v11 }
 0xfe4   :  { %23249 = vmatprep.subr.bf16.mxu1 %v23944_v3 }
 0xfe7   :  { %23251 = vmatpush3.bf16.msra.mxu1 %v23250_v15 }
 0xfe8   :  { %23252 = vmatprep.subr.bf16.mxu1 %v23944_v3 }
 0xfeb   :  { %23254 = vmatpush3.bf16.msra.mxu1 %v23253_v22 }
 0xfec   :  { %23255 = vmatprep.subr.bf16.mxu1 %v23944_v3 }
 0xfee   :  { %22656 = vmatmul.mubr.f32.vlgmr.msra.gmra.mrb[54].mxu1 %v18608_v63  ;;  %v19257_v63 = vsub.f32 %v19142_v10, %v19165_v38 }
 0xfef   :  { %23257 = vmatpush3.bf16.msra.mxu1 %v26081_v47  ;;  %22674 = vmatprep.mubr.msk.f32.mxu1 %vm23945_vm0, %v23946_v8 }
 0xff0   :  { %23258 = vmatprep.subr.bf16.mxu1 %v23944_v3 }
 0xff3   :  { %23260 = vmatpush3.bf16.msra.mxu1 %v26095_v16 }
 0xff4   :  { %23261 = vmatprep.subr.bf16.mxu1 %v23944_v3 }
 0xff7   :  { %23263 = vmatpush3.bf16.msra.mxu1 %v26105_v61 }
 0xff8   :  { %23264 = vmatprep.subr.bf16.mxu1 %v23944_v3 }
 0xffb   :  { %23266 = vmatpush3.bf16.msra.mxu1 %v26121_v33 }
 0xffc   :  { %23267 = vmatprep.subr.bf16.mxu1 %v23944_v3 }
 0xffe   :  { %22675 = vmatmul.mubr.f32.vlgmr.msra.gmra.mrb[54].mxu1 %v18609_v19  ;;  %v19238_v19 = vsub.f32 %v19236_v45, %v19237_v14 }
 0xfff   :  { %23269 = vmatpush3.bf16.msra.mxu1 %v23268_v25  ;;  %22693 = vmatprep.mubr.msk.f32.mxu1 %vm23945_vm0, %v23946_v8 }
0x1000   :  { %23270 = vmatprep.subr.bf16.mxu1 %v23944_v3 }
0x1003   :  { %23272 = vmatpush3.bf16.msra.mxu1 %v23271_v53 }
0x1004   :  { %23273 = vmatprep.subr.bf16.mxu1 %v23944_v3 }
0x1007   :  { %23275 = vmatpush3.bf16.msra.mxu1 %v23274_v42 }
0x1008   :  { %23276 = vmatprep.subr.bf16.mxu1 %v23944_v3 }
0x100b   :  { %23278 = vmatpush3.bf16.msra.mxu1 %v23277_v46 }
0x100c   :  { %23279 = vmatprep.subr.bf16.mxu1 %v23944_v3 }
0x100e   :  { %22694 = vmatmul.mubr.f32.vlgmr.msra.gmra.mrb[54].mxu1 %v18607_v5 }
0x100f   :  { %23281 = vmatpush3.bf16.msra.mxu1 %v26081_v47  ;;  %22712 = vmatprep.mubr.msk.f32.mxu1 %vm23945_vm0, %v23946_v8 }
0x1010   :  { %23282 = vmatprep.subr.bf16.mxu1 %v23944_v3 }
0x1013   :  { %23284 = vmatpush3.bf16.msra.mxu1 %v26095_v16 }
0x1014   :  { %23285 = vmatprep.subr.bf16.mxu1 %v23944_v3 }
0x1017   :  { %23287 = vmatpush3.bf16.msra.mxu1 %v26105_v61  ;;  %v19124_v61 = vrot.slane %v26217_v56, %v9049_v35  ;;  %v19088_v35 = vsub.f32 1.0, %v26229_v62 }
0x1018   :  { %23288 = vmatprep.subr.bf16.mxu1 %v23944_v3 }
0x1019   :  { %v19092_v51 = vmul.f32 %v19090_v21, %v19088_v35 }
0x101b   :  { %23290 = vmatpush3.bf16.msra.mxu1 %v26121_v33  ;;  %v19133_v33 = vrot.slane %v26217_v56, %v9054_v26 }
0x101e   :  { %22713 = vmatmul.mubr.f32.vlgmr.msra.gmra.mrb[54].mxu1 %v18607_v5  ;;  %v19250_v5 = vsub.f32 %v19141_v37, %v19162_v31 }
0x10f1   :  { %v19067_v47 = vpop.f32.mrb[54].mxu1 }
0x10f2   :  { %v23400_v16 = vadd.f32 %v20298_v23, %v19067_v47  ;;  %v22714_v57 = vpop.f32.mrb[55].mxu1  ;;  %v19239_v47 = vand.u32 4294901760, %v19238_v19 }
0x10f3   :  { %v19258_v57 = vand.u32 4294901760, %v19257_v63 }
0x10f4   :  { %19094 = vrot.lane.b32.xlu0 %v23400_v16, %s26501_s25  ;;  %v19251_v16 = vand.u32 4294901760, %v19250_v5 }
0x10f5   :  { %v19259_v7 = vsub.f32 %v19257_v63, %v19258_v57 }
0x10f6   :  { %v19252_v2 = vsub.f32 %v19250_v5, %v19251_v16 }
0x10f7   :  { %v19260_v21 = vand.u32 4294901760, %v19259_v7 }
0x10f8   :  { %19126 = vrot.lane.b32.xlu0 %v19124_v61, %s26501_s25  ;;  %v19253_v12 = vand.u32 4294901760, %v19252_v2 }
0x10fc   :  { %19135 = vrot.lane.b32.xlu0 %v19133_v33, %s26501_s25  ;;  %v19246_v33 = vand.u32 4294901760, %v19245_v20 }
0x10fe   :  { %v23298_v17 = vpack.c.bf16 %v19246_v33, %v19239_v47 }
0x1166   :  { %v19095_v43 = vpop.permute.xlu0 %19094 }
0x1167   :  { %v19097_v26 = vmul.f32 %v26229_v62, %v19095_v43  ;;  %v23301_v43 = vpack.c.bf16 %v19260_v21, %v19253_v12 }
0x1169   :  { %v19098_v9 = vadd.f32 %v19097_v26, %v19092_v51  ;;  %v23304_v51 = vpack.c.bf16 %v19243_v18, %v19236_v45  ;;  %v23307_v26 = vpack.c.bf16 %v19257_v63, %v19250_v5  ;;  %v19647_v45 = vld [vmem:[%s26459_s18 + $0x30] sm:$0xff]  ;;  %v19648_v18 = vld [vmem:[%s26459_s18 + $0x38] sm:$0xff] }
0x116a   :  { %v19127_v30 = vpop.permute.xlu0 %19126  ;;  %v19678_v37 = vand.u32 4294901760, %v19647_v45  ;;  %v19681_v10 = vand.u32 4294901760, %v19648_v18 }
0x116b   :  { %v19100_v41 = vsel %vm19099_vm8, %v19098_v9, 0.0 }
0x116c   :  { %v19101_v39 = vrot.slane %v19100_v41, 4  ;;  %v26329_v5 = vpack.c.bf16 %v19681_v10, %v19678_v37  ;;  %v26331_v63 = vsub.f32 %v19647_v45, %v19678_v37  ;;  %v26333_v19 = vsub.f32 %v19648_v18, %v19681_v10 }
0x116e   :  { %v19102_v60 = vadd.f32 %v19101_v39, %v19100_v41  ;;  %v19136_v23 = vpop.permute.xlu0 %19135  ;;  %v23319_v41 = vpack.c.bf16 %v19258_v57, %v19251_v16 }
0x1170   :  { %v19103_v28 = vrot.slane %v19102_v60, 2 }
0x1172   :  { %v19104_v34 = vadd.f32 %v19103_v28, %v19102_v60 }
0x1174   :  { %v19105_v50 = vrot.slane %v19104_v34, 1 }
0x1176   :  { %v19106_v24 = vadd.f32 %v19105_v50, %v19104_v34 }
0x1178   :  { %v19107_v13 = vmul.f32 0.125, %v19106_v24 }
0x117a   :  { %v19108_v49 = vsub.f32 %v19098_v9, %v19107_v13  ;;  %v23316_v9 = vpack.c.bf16 %v19244_v36, %v19237_v14 }
0x117c   :  { %v19109_v27 = vmul.f32 %v19108_v49, %v19108_v49 }
0x117e   :  { %v19110_v40 = vsel %vm19099_vm8, %v19109_v27, 0.0  ;;  %v19642_v27 = vld [vmem:[%s26459_s18 + $0x8] sm:$0xff] }
0x117f   :  { %v19111_v1 = vrot.slane %v19110_v40, 4 }
0x1181   :  { %v19112_v11 = vadd.f32 %v19111_v1, %v19110_v40  ;;  %v19663_v1 = vand.u32 4294901760, %v19642_v27 }
0x1183   :  { %v19113_v15 = vrot.slane %v19112_v11, 2 }
0x1185   :  { %v19114_v22 = vadd.f32 %v19113_v15, %v19112_v11  ;;  %v19643_v15 = vld [vmem:[%s26459_s18 + $0x10] sm:$0xff] }
0x1187   :  { %v19115_v25 = vrot.slane %v19114_v22, 1 }
0x1189   :  { %v19116_v53 = vadd.f32 %v19115_v25, %v19114_v22  ;;  %v19644_v22 = vld [vmem:[%s26459_s18 + $0x18] sm:$0xff]  ;;  %v19666_v25 = vand.u32 4294901760, %v19643_v15 }
0x118b   :  { %v19117_v42 = vmul.f32 0.125, %v19116_v53  ;;  %v19669_v53 = vand.u32 4294901760, %v19644_v22  ;;  %v26321_v14 = vsub.f32 %v19643_v15, %v19666_v25 }
0x118d   :  { %v19118_v46 = vadd.f32 1e-05, %v19117_v42  ;;  %v26295_v42 = vpack.c.bf16 %v19669_v53, %v19666_v25  ;;  %v26323_v36 = vsub.f32 %v19644_v22, %v19669_v53  ;;  %v19759_v47 = vand.u32 4294901760, %v26321_v14 }
0x118f   :  { %23890 = vrsqrt.f32 %v19118_v46  ;;  %v19645_v46 = vld [vmem:[%s26459_s18 + $0x20] sm:$0xff]  ;;  %v19766_v16 = vand.u32 4294901760, %v26323_v36 }
0x1190   :  { %v19672_v54 = vand.u32 4294901760, %v19645_v46 }
0x1191   :  { %v19767_v33 = vsub.f32 %v26323_v36, %v19766_v16  ;;  %v23379_v22 = vpack.c.bf16 %v19766_v16, %v19759_v47 }
0x1199   :  { %v23891_v6 = vpop.eup %23890 }
0x119a   :  { %v19120_v48 = vmul.f32 %v23891_v6, %v19108_v49  ;;  %v19641_v49 = vld [vmem:[%s26459_s18] sm:$0xff]  ;;  %v26325_v6 = vsub.f32 %v19645_v46, %v19672_v54 }
0x119b   :  { %v19660_v40 = vand.u32 4294901760, %v19641_v49  ;;  %v20301_v46 = vld [vmem:[%s26458_s17] ss:$0 sm:$0xff] }
0x119c   :  { %v19129_v61 = vmul.f32 %v19127_v30, %v19120_v48  ;;  %v26307_v30 = vsub.f32 %v19642_v27, %v19663_v1  ;;  %v23355_v27 = vpack.c.bf16 %v26323_v36, %v26321_v14 }
0x119d   :  { %v26285_v11 = vpack.c.bf16 %v19663_v1, %v19660_v40  ;;  %v26305_v44 = vsub.f32 %v19641_v49, %v19660_v40  ;;  %v23361_v1 = vpack.c.bf16 %v26333_v19, %v26331_v63 }
0x119e   :  { %v19138_v29 = vadd.f32 %v19136_v23, %v19129_v61  ;;  %v19752_v38 = vand.u32 4294901760, %v26307_v30  ;;  %v19760_v61 = vsub.f32 %v26321_v14, %v19759_v47 }
0x119f   :  { %v19745_v31 = vand.u32 4294901760, %v26305_v44  ;;  %v23352_v49 = vpack.c.bf16 %v26307_v30, %v26305_v44 }
0x11a0   :  { %20196 = vrot.lane.b32.xlu0 %v19138_v29, %s23951_s0  ;;  %19151 = vrot.lane.b32.xlu1 %v19138_v29, %s26501_s25  ;;  %v19753_v20 = vsub.f32 %v26307_v30, %v19752_v38  ;;  %v19761_v7 = vand.u32 4294901760, %v19760_v61  ;;  %v19768_v29 = vand.u32 4294901760, %v19767_v33 }
0x11a1   :  { %v19746_v48 = vsub.f32 %v26305_v44, %v19745_v31  ;;  %v23376_v15 = vpack.c.bf16 %v19752_v38, %v19745_v31 }
0x11a2   :  { %v19754_v57 = vand.u32 4294901760, %v19753_v20  ;;  %v23343_v21 = vpack.c.bf16 %v19768_v29, %v19761_v7 }
0x11a3   :  { %v19747_v23 = vand.u32 4294901760, %v19746_v48 }
0x11a5   :  { %v23340_v2 = vpack.c.bf16 %v19754_v57, %v19747_v23 }
0x1212   :  { %v19152_v39 = vpop.permute.xlu1 %19151 }
0x1213   :  { %v19153_v60 = vsel %vm85_vm1, %v19152_v39, 0  ;;  %v19794_v39 = vand.u32 4294901760, %v26333_v19 }
0x1214   :  { %v19224_v28 = vand.u32 4294901760, %v19153_v60 }
0x1216   :  { %v19225_v34 = vsub.f32 %v19153_v60, %v19224_v28 }
0x1218   :  { %v19226_v50 = vand.u32 4294901760, %v19225_v34 }
0x121a   :  { %v19227_v24 = vsub.f32 %v19225_v34, %v19226_v50 }
0x121c   :  { %v19228_v13 = vand.u32 4294901760, %v19227_v24 }
0x121e   :  { %22724 = vmatmul.mubr.f32.vlgmr.msra.gmra.mrb[44].mxu0 %v19228_v13 }
0x121f   :  { %23299 = vmatpush3.bf16.msra.mxu0 %v23298_v17  ;;  %22734 = vmatprep.mubr.msk.f32.mxu0 %vm23945_vm0, %v23946_v8  ;;  %v19773_v17 = vand.u32 4294901760, %v26325_v6 }
0x1220   :  { %23300 = vmatprep.subr.bf16.mxu0 %v23944_v3 }
0x1223   :  { %23302 = vmatpush3.bf16.msra.mxu0 %v23301_v43  ;;  %v19774_v43 = vsub.f32 %v26325_v6, %v19773_v17 }
0x1224   :  { %23303 = vmatprep.subr.bf16.mxu0 %v23944_v3 }
0x1226   :  { %22735 = vmatmul.mubr.f32.vlgmr.msra.gmra.mrb[44].mxu0 %v19224_v28 }
0x1227   :  { %23305 = vmatpush3.bf16.msra.mxu0 %v23304_v51  ;;  %22745 = vmatprep.mubr.msk.f32.mxu0 %vm23945_vm0, %v23946_v8 }
0x1228   :  { %23306 = vmatprep.subr.bf16.mxu0 %v23944_v3 }
0x122b   :  { %23308 = vmatpush3.bf16.msra.mxu0 %v23307_v26  ;;  %v19775_v26 = vand.u32 4294901760, %v19774_v43 }
0x122c   :  { %23309 = vmatprep.subr.bf16.mxu0 %v23944_v3 }
0x122e   :  { %22746 = vmatmul.mubr.f32.vlgmr.msra.gmra.mrb[44].mxu0 %v19225_v34  ;;  %v19795_v34 = vsub.f32 %v26333_v19, %v19794_v39 }
0x122f   :  { %23311 = vmatpush3.bf16.msra.mxu0 %v26241_v52  ;;  %22756 = vmatprep.mubr.msk.f32.mxu0 %vm23945_vm0, %v23946_v8 }
0x1230   :  { %23312 = vmatprep.subr.bf16.mxu0 %v23944_v3  ;;  %v19796_v24 = vand.u32 4294901760, %v19795_v34 }
0x1233   :  { %23314 = vmatpush3.bf16.msra.mxu0 %v23295_v55 }
0x1234   :  { %23315 = vmatprep.subr.bf16.mxu0 %v23944_v3 }
0x1236   :  { %22757 = vmatmul.mubr.f32.vlgmr.msra.gmra.mrb[44].mxu0 %v19226_v50 }
0x1237   :  { %23317 = vmatpush3.bf16.msra.mxu0 %v23316_v9  ;;  %22767 = vmatprep.mubr.msk.f32.mxu0 %vm23945_vm0, %v23946_v8 }
0x1238   :  { %23318 = vmatprep.subr.bf16.mxu0 %v23944_v3 }
0x123b   :  { %23320 = vmatpush3.bf16.msra.mxu0 %v23319_v41  ;;  %v19787_v41 = vand.u32 4294901760, %v26331_v63 }
0x123c   :  { %23321 = vmatprep.subr.bf16.mxu0 %v23944_v3 }
0x123d   :  { %v23385_v53 = vpack.c.bf16 %v19794_v39, %v19787_v41 }
0x123e   :  { %22768 = vmatmul.mubr.f32.vlgmr.msra.gmra.mrb[44].mxu0 %v19224_v28 }
0x123f   :  { %23323 = vmatpush3.bf16.msra.mxu0 %v26241_v52  ;;  %22778 = vmatprep.mubr.msk.f32.mxu0 %vm23945_vm0, %v23946_v8  ;;  %v26309_v52 = vpack.c.bf16 %v19675_v32, %v19672_v54 }
0x1240   :  { %23324 = vmatprep.subr.bf16.mxu0 %v23944_v3 }
0x1243   :  { %23326 = vmatpush3.bf16.msra.mxu0 %v23295_v55  ;;  %v26327_v55 = vsub.f32 %v19646_v4, %v19675_v32 }
0x1244   :  { %23327 = vmatprep.subr.bf16.mxu0 %v23944_v3 }
0x1245   :  { %v19780_v12 = vand.u32 4294901760, %v26327_v55  ;;  %v23358_v40 = vpack.c.bf16 %v26327_v55, %v26325_v6 }
0x1246   :  { %22779 = vmatmul.mubr.f32.vlgmr.msra.gmra.mrb[44].mxu0 %v19224_v28  ;;  %v19788_v28 = vsub.f32 %v26331_v63, %v19787_v41 }
0x1247   :  { %22797 = vmatprep.mubr.msk.f32.mxu0 %vm23945_vm0, %v23946_v8  ;;  %23329 = vmatpush3.bf16.msra.mxu0 %v26285_v11  ;;  %v19781_v51 = vsub.f32 %v26327_v55, %v19780_v12  ;;  %v23382_v25 = vpack.c.bf16 %v19780_v12, %v19773_v17 }
0x1248   :  { %23330 = vmatprep.subr.bf16.mxu0 %v23944_v3  ;;  %v19789_v50 = vand.u32 4294901760, %v19788_v28 }
0x1249   :  { %v19782_v9 = vand.u32 4294901760, %v19781_v51 }
0x124a   :  { %v23349_v13 = vpack.c.bf16 %v19796_v24, %v19789_v50 }
0x124b   :  { %23332 = vmatpush3.bf16.msra.mxu0 %v26295_v42  ;;  %v23346_v60 = vpack.c.bf16 %v19782_v9, %v19775_v26 }
0x124c   :  { %23333 = vmatprep.subr.bf16.mxu0 %v23944_v3 }
0x124f   :  { %23335 = vmatpush3.bf16.msra.mxu0 %v26309_v52 }
0x1250   :  { %23336 = vmatprep.subr.bf16.mxu0 %v23944_v3 }
0x1253   :  { %23338 = vmatpush3.bf16.msra.mxu0 %v26329_v5 }
0x1254   :  { %23339 = vmatprep.subr.bf16.mxu0 %v23944_v3 }
0x1319   :  { %v19636_v4 = vpop.f32.mrb[44].mxu0 }
0x131a   :  { %v23401_v54 = vadd.f32 %v20301_v46, %v19636_v4  ;;  %v22780_v32 = vpop.f32.mrb[45].mxu0 }
0x131c   :  { %v19640_v44 = vmax.f32 %v23401_v54, 0.0 }
0x131e   :  { %v19657_v30 = vsel %vm8482_vm7, %v19640_v44, 0 }
0x131f   :  { %v19732_v45 = vand.u32 4294901760, %v19657_v30 }
0x1321   :  { %v19733_v18 = vsub.f32 %v19657_v30, %v19732_v45 }
0x1323   :  { %v19734_v37 = vand.u32 4294901760, %v19733_v18 }
0x1325   :  { %v19735_v10 = vsub.f32 %v19733_v18, %v19734_v37 }
0x1327   :  { %v19736_v14 = vand.u32 4294901760, %v19735_v10 }
0x1329   :  { %22798 = vmatmul.mubr.f32.vlgmr.msra.gmra.mrb[46].mxu0 %v19736_v14 }
0x132a   :  { %23341 = vmatpush3.bf16.msra.mxu0 %v23340_v2  ;;  %22816 = vmatprep.mubr.msk.f32.mxu0 %vm23945_vm0, %v23946_v8 }
0x132b   :  { %23342 = vmatprep.subr.bf16.mxu0 %v23944_v3 }
0x132e   :  { %23344 = vmatpush3.bf16.msra.mxu0 %v23343_v21 }
0x132f   :  { %23345 = vmatprep.subr.bf16.mxu0 %v23944_v3 }
0x1332   :  { %23347 = vmatpush3.bf16.msra.mxu0 %v23346_v60 }
0x1333   :  { %23348 = vmatprep.subr.bf16.mxu0 %v23944_v3 }
0x1336   :  { %23350 = vmatpush3.bf16.msra.mxu0 %v23349_v13 }
0x1337   :  { %23351 = vmatprep.subr.bf16.mxu0 %v23944_v3 }
0x1339   :  { %22817 = vmatmul.mubr.f32.vlgmr.msra.gmra.mrb[46].mxu0 %v19732_v45 }
0x133a   :  { %23353 = vmatpush3.bf16.msra.mxu0 %v23352_v49  ;;  %22835 = vmatprep.mubr.msk.f32.mxu0 %vm23945_vm0, %v23946_v8 }
0x133b   :  { %23354 = vmatprep.subr.bf16.mxu0 %v23944_v3 }
0x133e   :  { %23356 = vmatpush3.bf16.msra.mxu0 %v23355_v27 }
0x133f   :  { %23357 = vmatprep.subr.bf16.mxu0 %v23944_v3 }
0x1342   :  { %23359 = vmatpush3.bf16.msra.mxu0 %v23358_v40 }
0x1343   :  { %23360 = vmatprep.subr.bf16.mxu0 %v23944_v3 }
0x1346   :  { %23362 = vmatpush3.bf16.msra.mxu0 %v23361_v1 }
0x1347   :  { %23363 = vmatprep.subr.bf16.mxu0 %v23944_v3 }
0x1349   :  { %22836 = vmatmul.mubr.f32.vlgmr.msra.gmra.mrb[46].mxu0 %v19733_v18 }
0x134a   :  { %23365 = vmatpush3.bf16.msra.mxu0 %v26285_v11  ;;  %22854 = vmatprep.mubr.msk.f32.mxu0 %vm23945_vm0, %v23946_v8 }
0x134b   :  { %23366 = vmatprep.subr.bf16.mxu0 %v23944_v3 }
0x134e   :  { %23368 = vmatpush3.bf16.msra.mxu0 %v26295_v42 }
0x134f   :  { %23369 = vmatprep.subr.bf16.mxu0 %v23944_v3 }
0x1352   :  { %23371 = vmatpush3.bf16.msra.mxu0 %v26309_v52 }
0x1353   :  { %23372 = vmatprep.subr.bf16.mxu0 %v23944_v3 }
0x1356   :  { %23374 = vmatpush3.bf16.msra.mxu0 %v26329_v5 }
0x1357   :  { %23375 = vmatprep.subr.bf16.mxu0 %v23944_v3 }
0x1359   :  { %22855 = vmatmul.mubr.f32.vlgmr.msra.gmra.mrb[46].mxu0 %v19734_v37 }
0x135a   :  { %23377 = vmatpush3.bf16.msra.mxu0 %v23376_v15  ;;  %22873 = vmatprep.mubr.msk.f32.mxu0 %vm23945_vm0, %v23946_v8 }
0x135b   :  { %23378 = vmatprep.subr.bf16.mxu0 %v23944_v3 }
0x135e   :  { %23380 = vmatpush3.bf16.msra.mxu0 %v23379_v22 }
0x135f   :  { %23381 = vmatprep.subr.bf16.mxu0 %v23944_v3 }
0x1362   :  { %23383 = vmatpush3.bf16.msra.mxu0 %v23382_v25 }
0x1363   :  { %23384 = vmatprep.subr.bf16.mxu0 %v23944_v3 }
0x1366   :  { %23386 = vmatpush3.bf16.msra.mxu0 %v23385_v53 }
0x1367   :  { %23387 = vmatprep.subr.bf16.mxu0 %v23944_v3 }
0x1369   :  { %22874 = vmatmul.mubr.f32.vlgmr.msra.gmra.mrb[46].mxu0 %v19732_v45 }
0x136a   :  { %23389 = vmatpush3.bf16.msra.mxu0 %v26285_v11  ;;  %22892 = vmatprep.mubr.msk.f32.mxu0 %vm23945_vm0, %v23946_v8  ;;  %v20302_v11 = vld [vmem:[%s26460_s19] ss:$0 sm:$0xff]  ;;  %s23957_s19 = smov [#allocation2]  }
0x136b   :  { %23390 = vmatprep.subr.bf16.mxu0 %v23944_v3 }
0x136e   :  { %23392 = vmatpush3.bf16.msra.mxu0 %v26295_v42  ;;  %v20231_v42 = vrot.slane %v26217_v56, %v10136_v0 }
0x136f   :  { %23393 = vmatprep.subr.bf16.mxu0 %v23944_v3 }
0x1372   :  { %23395 = vmatpush3.bf16.msra.mxu0 %v26309_v52  ;;  %v20197_v52 = vpop.permute.xlu0 %20196 }
0x1373   :  { %23396 = vmatprep.subr.bf16.mxu0 %v23944_v3  ;;  %v20240_v3 = vrot.slane %v26217_v56, %v10141_v59  ;;  %v20199_v6 = vmul.f32 %v20197_v52, %v19088_v35 }
0x1376   :  { %23398 = vmatpush3.bf16.msra.mxu0 %v26329_v5 }
0x1379   :  { %22893 = vmatmul.mubr.f32.vlgmr.msra.gmra.mrb[46].mxu0 %v19732_v45 }
0x144c   :  { %v20192_v31 = vpop.f32.mrb[46].mxu0 }
0x144d   :  { %v23402_v38 = vadd.f32 %v20302_v11, %v20192_v31  ;;  %v22894_v8 = vpop.f32.mrb[47].mxu0 }
0x144f   :  { %20201 = vrot.lane.b32.xlu0 %v23402_v38, %s26502_s2 }
0x1453   :  { %20233 = vrot.lane.b32.xlu0 %v20231_v42, %s26502_s2 }
0x1457   :  { %20242 = vrot.lane.b32.xlu0 %v20240_v3, %s26502_s2  ;;  %s20257_s2 = sshll.u32 %s23957_s19, 4  ;;  %s20258_s2 = int_to_ptr.vmem [resolvable:$true] %s20257_s2 }
0x1458   :  { %s23896_s5 = scalar_lea.vmem %s20258_s2, 128  ;;  %p23901_p1 = scmp.lt.s32.totalorder %s20258_s2, %s20258_s2 }
0x1459   :  { %p23897_p0 = scmp.ne.s32.totalorder %s20258_s2, %s23896_s5  ;;  %p23902_p2 = scmp.lt.s32.totalorder %s23896_s5, %s23896_s5 }
0x145b   :  { %p23903_p3 = por %p23902_p2, %p23901_p1 }
0x145d   :  { %p23904_p4 = pnand %p23903_p3, %p23897_p0 }
0x14c1   :  { %v20202_v36 = vpop.permute.xlu0 %20201 }
0x14c2   :  { %v20204_v55 = vmul.f32 %v26229_v62, %v20202_v36 }
0x14c4   :  { %v20205_v5 = vadd.f32 %v20204_v55, %v20199_v6 }
0x14c6   :  { %v20207_v63 = vsel %vm20206_vm9, %v20205_v5, 0.0 }
0x14c7   :  { %v20208_v19 = vrot.slane %v20207_v63, 4 }
0x14c9   :  { %v20209_v0 = vadd.f32 %v20208_v19, %v20207_v63 }
0x14cb   :  { %v20210_v48 = vrot.slane %v20209_v0, 2 }
0x14cd   :  { %v20211_v20 = vadd.f32 %v20210_v48, %v20209_v0 }
0x14cf   :  { %v20212_v23 = vrot.slane %v20211_v20, 1 }
0x14d1   :  { %v20213_v58 = vadd.f32 %v20212_v23, %v20211_v20 }
0x14d3   :  { %v20214_v47 = vmul.f32 0.125, %v20213_v58 }
0x14d5   :  { %v20215_v59 = vsub.f32 %v20205_v5, %v20214_v47 }
0x14d7   :  { %v20216_v56 = vmul.f32 %v20215_v59, %v20215_v59 }
0x14d9   :  { %v20217_v16 = vsel %vm20206_vm9, %v20216_v56, 0.0 }
0x14da   :  { %v20218_v57 = vrot.slane %v20217_v16, 4 }
0x14dc   :  { %v20219_v61 = vadd.f32 %v20218_v57, %v20217_v16 }
0x14de   :  { %v20220_v33 = vrot.slane %v20219_v61, 2 }
0x14e0   :  { %v20221_v2 = vadd.f32 %v20220_v33, %v20219_v61 }
0x14e2   :  { %v20222_v35 = vrot.slane %v20221_v2, 1 }
0x14e4   :  { %v20223_v7 = vadd.f32 %v20222_v35, %v20221_v2 }
0x14e6   :  { %v20224_v62 = vmul.f32 0.125, %v20223_v7 }
0x14e8   :  { %v20225_v29 = vadd.f32 1e-05, %v20224_v62 }
0x14ea   :  { %23892 = vrsqrt.f32 %v20225_v29 }
0x14eb   :  { %23907 = shalt.err (!%p23904_p4)
}
0x14ec   :  { %s23908_s1 = scalar_lea.hbm %s26463_s22, 128 }
0x14ed   :  { %p23909_p5 = scmp.ne.s32.totalorder %s26463_s22, %s23908_s1  ;;  %p23912_p6 = scmp.lt.u32.totalorder %s23908_s1, %s26463_s22 }
0x14ef   :  { %p23914_p7 = pnand %p23912_p6, %p23909_p5 }
0x14f1   :  { %23917 = shalt.err (!%p23914_p7)
}
0x14f2   :  { %20260 = dma.vmem_to_hbm [thread:$0]  %s20258_s2, 128, %s26463_s22, [#allocation3]   ;;  %v20234_v17 = vpop.permute.xlu0 %20233 }
0x14f3   :  { %s23958_s20 = smov [#allocation4]  }
0x14f4   :  { %v23893_v12 = vpop.eup %23892  ;;  %s20267_s13 = sshll.u32 %s23958_s20, 4  ;;  %s20268_s13 = int_to_ptr.vmem [resolvable:$true] %s20267_s13 }
0x14f5   :  { %v20227_v21 = vmul.f32 %v23893_v12, %v20215_v59  ;;  %s23918_s7 = scalar_lea.vmem %s20268_s13, 128  ;;  %p23923_p9 = scmp.lt.s32.totalorder %s20268_s13, %s20268_s13 }
0x14f6   :  { %v20243_v43 = vpop.permute.xlu0 %20242  ;;  %p23919_p8 = scmp.ne.s32.totalorder %s20268_s13, %s23918_s7  ;;  %p23924_p10 = scmp.lt.s32.totalorder %s23918_s7, %s23918_s7 }
0x14f7   :  { %v20236_v51 = vmul.f32 %v20234_v17, %v20227_v21 }
0x14f8   :  { %p23925_p11 = por %p23924_p10, %p23923_p9 }
0x14f9   :  { %v20245_v26 = vadd.f32 %v20243_v43, %v20236_v51 }
0x14fa   :  { %p23926_p12 = pnand %p23925_p11, %p23919_p8 }
0x14fb   :  { %20247 = vrot.lane.b32.xlu0 %v20245_v26, %s23951_s0 }
0x156d   :  { %v20248_v9 = vpop.permute.xlu0 %20247 }
0x156e   :  { %20250 = vst.msk [vmem:[#allocation4] sm:$0xff] %vm85_vm1, %v20248_v9 }
0x156f   :  { %23929 = shalt.err (!%p23926_p12)
}
0x1570   :  { %s23930_s3 = scalar_lea.hbm %s26464_s23, 128 }
0x1571   :  { %p23931_p13 = scmp.ne.s32.totalorder %s26464_s23, %s23930_s3  ;;  %p23934_p0 = scmp.lt.u32.totalorder %s23930_s3, %s26464_s23 }
0x1573   :  { %p23936_p1 = pnand %p23934_p0, %p23931_p13 }
0x1575   :  { %23939 = shalt.err (!%p23936_p1)
}
0x1576   :  { %20270 = dma.vmem_to_hbm [thread:$0]  %s20268_s13, 128, %s26464_s23, [#allocation5]  }
0x1577   :  { %23940 = dma.done.wait [#allocation3], 128  }
0x1578   :  { %23941 = vsyncadd [#allocation3], 4294967168 }
0x1579   :  { %23942 = dma.done.wait [#allocation5], 128  }
0x157a   :  { %23943 = vsyncadd [#allocation5], 4294967168 }
0x157b   :  { %20277 = vsyncpa [#allocation3], 1 }
0x157c   :  { %20278 = vsyncpa [#allocation5], 1 }

</bundles_post_ra>
